<compile_context>
chip_gen: v7x
topology: tpu7x:2x2x1
jax: 0.10.0
libtpu: 0.0.40
codegen_flags: <defaults>
</compile_context>

<pallas_src>
import jax
import jax.numpy as jnp
from jax.experimental import pallas as pl
from jax.experimental.pallas import tpu as pltpu


def basic_block_kernel(x_ref, w1_ref, b1_ref, w2_ref, b2_ref, o_ref, mid_ref):
    # x_ref:   (Nb, Hp, Wp, C)   f32   spatially padded input, real channel width
    # w1_ref:  (Kpad, Co)        bf16  conv1 weights, rows = (kh, kw, cin), K-padded
    # b1_ref:  (1, Co)           f32   BN1 shift (scale folded into w1)
    # w2_ref:  (Kpad, Co)        bf16  conv2 weights (BN2 scale folded)
    # b2_ref:  (1, Co)           f32   BN2 shift
    # o_ref:   (Nb, H, W, Co)    f32   output block (real channel width)
    # mid_ref: (Nb, Hp, Wp, Co)  bf16  padded intermediate-activation scratch
    Nb, Hp, Wp, C = x_ref.shape
    H, W = Hp - 2, Wp - 2
    M = Nb * H * W
    K = 9 * C
    Kpad = w1_ref.shape[0]
    f32, bf16 = jnp.float32, jnp.bfloat16

    def im2col(src_ref):
        # (M, Kpad) patch matrix: 9 taps of C channels each + zero K-padding.
        taps = [src_ref[:, kh:kh + H, kw:kw + W, :].reshape(M, C).astype(bf16)
                for kh in range(3) for kw in range(3)]
        if Kpad > K:
            taps.append(jnp.zeros((M, Kpad - K), bf16))
        return jnp.concatenate(taps, axis=1)

    # ---- conv1 (+ folded BN1 scale) as one im2col matmul, then bias + ReLU ----
    y1 = jnp.dot(im2col(x_ref), w1_ref[...], preferred_element_type=f32)   # (M, Co)
    out1 = jnp.maximum(y1 + b1_ref[...], 0.0).astype(bf16)

    # ---- stage intermediate in padded bf16 scratch: zero ONLY the 1-px border ----
    mid_ref[:, 0:1, :, :] = jnp.zeros((Nb, 1, Wp, C), bf16)
    mid_ref[:, Hp - 1:Hp, :, :] = jnp.zeros((Nb, 1, Wp, C), bf16)
    mid_ref[:, :, 0:1, :] = jnp.zeros((Nb, Hp, 1, C), bf16)
    mid_ref[:, :, Wp - 1:Wp, :] = jnp.zeros((Nb, Hp, 1, C), bf16)
    mid_ref[:, 1:1 + H, 1:1 + W, :] = out1.reshape(Nb, H, W, C)

    # ---- conv2 (+ folded BN2 scale), bias + identity residual + ReLU ----
    y2 = jnp.dot(im2col(mid_ref), w2_ref[...], preferred_element_type=f32)  # (M, Co)
    residual = x_ref[:, 1:1 + H, 1:1 + W, :].reshape(M, C)                  # f32 center tap
    out = jnp.maximum(y2 + b2_ref[...] + residual, 0.0)
    o_ref[...] = out.reshape(Nb, H, W, C).astype(o_ref.dtype)


def _pick_batch_chunk(N, H, W, C, Kpad):
    """Largest per-step batch chunk fitting a conservative VMEM budget while keeping
    >= 2 grid steps (pipelining overlap + v7x megacore sharding)."""
    Hp, Wp = H + 2, W + 2
    budget = 40 * 1024 * 1024          # headroom under v7x's 64 MiB physical VMEM
    best = 1
    for nb in range(1, N + 1):
        if N % nb != 0:
            continue
        if N >= 2 and N // nb < 2:
            continue                   # keep at least two grid steps
        m = nb * H * W
        need = (2 * nb * Hp * Wp * C * 4     # input block, double-buffered (f32)
                + 2 * nb * H * W * C * 4     # output block, double-buffered (f32)
                + nb * Hp * Wp * C * 2       # bf16 mid scratch
                + 2 * m * Kpad * 2           # im2col matrices (bf16), 2x slack
                + 2 * m * max(C, 8) * 4      # f32 matmul results / live temporaries
                + 4 * Kpad * 128 * 2)        # weights (lane-padded layout), 2 buffers
        if need <= budget:
            best = nb
    return best


def basic_block_forward(x_nchw, w1_oihw, scale1, shift1, w2_oihw, scale2, shift2):
    """x_nchw: (N, C, H, W) float32; conv weights in PyTorch OIHW. Returns NCHW."""
    N, C, H, W = x_nchw.shape
    Cout = w1_oihw.shape[0]
    assert C == Cout, "identity residual requires in_channel == out_channel"

    K = 9 * C
    Kpad = ((K + 127) // 128) * 128        # flattened (kh,kw,cin) axis, padded ONCE
    Hp, Wp = H + 2, W + 2
    Nb = _pick_batch_chunk(N, H, W, C, Kpad)

    # NCHW -> NHWC, spatial pad by 1 (conv padding=1).  Channels stay at real width:
    # no zero-channel DMA to or from HBM.
    x_nhwc = jnp.transpose(x_nchw, (0, 2, 3, 1))
    x_pad = jnp.pad(x_nhwc, ((0, 0), (1, 1), (1, 1), (0, 0)))

    # Weights: OIHW -> HWIO, fold BN scale into output channels, flatten taps to
    # (9*C, Cout) in (kh, kw, cin) order, zero-pad the contraction axis to Kpad.
    def prep_weight(w_oihw, scale):
        w = jnp.transpose(w_oihw, (2, 3, 1, 0)) * scale[None, None, None, :]
        w = w.reshape(K, Cout)
        w = jnp.pad(w, ((0, Kpad - K), (0, 0)))
        return w.astype(jnp.bfloat16)

    w1 = prep_weight(w1_oihw, scale1)
    w2 = prep_weight(w2_oihw, scale2)
    b1 = shift1.reshape(1, Cout).astype(jnp.float32)
    b2 = shift2.reshape(1, Cout).astype(jnp.float32)

    out_nhwc = pl.pallas_call(
        basic_block_kernel,
        out_shape=jax.ShapeDtypeStruct((N, H, W, Cout), x_nchw.dtype),
        grid_spec=pltpu.PrefetchScalarGridSpec(
            num_scalar_prefetch=0,
            grid=(N // Nb,),
            in_specs=[
                pl.BlockSpec((Nb, Hp, Wp, C), lambda b: (b, 0, 0, 0)),
                # Weights/biases: whole-array blocks with constant index_map; Mosaic
                # keeps them resident across grid steps (no per-step re-DMA).
                pl.BlockSpec((Kpad, Cout), lambda b: (0, 0)),
                pl.BlockSpec((1, Cout), lambda b: (0, 0)),
                pl.BlockSpec((Kpad, Cout), lambda b: (0, 0)),
                pl.BlockSpec((1, Cout), lambda b: (0, 0)),
            ],
            out_specs=pl.BlockSpec((Nb, H, W, Cout), lambda b: (b, 0, 0, 0)),
            scratch_shapes=[pltpu.VMEM((Nb, Hp, Wp, Cout), jnp.bfloat16)],
        ),
        compiler_params=pltpu.CompilerParams(
            dimension_semantics=("parallel",),       # batch chunks are independent
            vmem_limit_bytes=48 * 1024 * 1024,       # within v7x 64 MiB physical VMEM
        ),
    )(x_pad, w1, b1, w2, b2)

    return jnp.transpose(out_nhwc, (0, 3, 1, 2))


def reference_forward(x_nchw, w1_oihw, scale1, shift1, w2_oihw, scale2, shift2):
    dn = ("NCHW", "OIHW", "NCHW")
    y = jax.lax.conv_general_dilated(x_nchw, w1_oihw, (1, 1), ((1, 1), (1, 1)),
                                     dimension_numbers=dn)
    y = y * scale1[None, :, None, None] + shift1[None, :, None, None]
    y = jnp.maximum(y, 0.0)
    y = jax.lax.conv_general_dilated(y, w2_oihw, (1, 1), ((1, 1), (1, 1)),
                                     dimension_numbers=dn)
    y = y * scale2[None, :, None, None] + shift2[None, :, None, None]
    return jnp.maximum(y + x_nchw, 0.0)


if __name__ == "__main__":
    N, C, H, W = 2, 4, 16, 16     # in_channel == out_channel == 4, stride == 1
    Cout = C
    eps = 1e-5

    key = jax.random.PRNGKey(0)
    kx, kw1, kw2 = jax.random.split(key, 3)

    x = jax.random.normal(kx, (N, C, H, W), dtype=jnp.float32)

    # Conv weights (PyTorch OIHW), deterministic init.
    w1_oihw = 0.1 * jax.random.normal(kw1, (Cout, C, 3, 3), dtype=jnp.float32)
    w2_oihw = 0.1 * jax.random.normal(kw2, (Cout, Cout, 3, 3), dtype=jnp.float32)

    # BatchNorm parameters (PyTorch defaults), folded into scale/shift.
    gamma1 = jnp.ones((Cout,), jnp.float32); beta1 = jnp.zeros((Cout,), jnp.float32)
    mean1 = jnp.zeros((Cout,), jnp.float32); var1 = jnp.ones((Cout,), jnp.float32)
    gamma2 = jnp.ones((Cout,), jnp.float32); beta2 = jnp.zeros((Cout,), jnp.float32)
    mean2 = jnp.zeros((Cout,), jnp.float32); var2 = jnp.ones((Cout,), jnp.float32)

    scale1 = gamma1 / jnp.sqrt(var1 + eps)
    shift1 = beta1 - mean1 * scale1
    scale2 = gamma2 / jnp.sqrt(var2 + eps)
    shift2 = beta2 - mean2 * scale2

    out = basic_block_forward(x, w1_oihw, scale1, shift1, w2_oihw, scale2, shift2)
    out = jax.block_until_ready(out)

    ref = reference_forward(x, w1_oihw, scale1, shift1, w2_oihw, scale2, shift2)
    ref = jax.block_until_ready(ref)

    assert out.shape == (N, C, H, W)
    # bf16 MXU operands / bf16 mid activations (f32 accumulation) => ~1e-2 abs error.
    assert jnp.max(jnp.abs(out - ref)) < 5e-2, "mismatch vs reference"
    print("KERNEL_OK")
</pallas_src>

<mosaic_0001>
module attributes {stable_mosaic.version = 11 : i64} {
  func.func @basic_block_kernel(%arg0: i32, %arg1: memref<1x18x18x4xf32, #tpu.memory_space<vmem>>, %arg2: memref<128x4xbf16, #tpu.memory_space<vmem>>, %arg3: memref<1x4xf32, #tpu.memory_space<vmem>>, %arg4: memref<128x4xbf16, #tpu.memory_space<vmem>>, %arg5: memref<1x4xf32, #tpu.memory_space<vmem>>, %arg6: memref<1x16x16x4xf32, #tpu.memory_space<vmem>>, %arg7: memref<1x18x18x4xbf16, #tpu.memory_space<vmem>>) attributes {dimension_semantics = [#tpu.dimension_semantics<parallel>], iteration_bounds = array<i64: 2>, scalar_prefetch = 0 : i64, scratch_operands = 1 : i64, tpu.core_type = #tpu.core_type<tc>, window_params = [{transform_indices = @transform_0, window_bounds = array<i64: 1, 18, 18, 4>}, {pipeline_mode = #tpu.pipeline_mode<synchronous>, transform_indices = @transform_1, window_bounds = array<i64: 128, 4>}, {pipeline_mode = #tpu.pipeline_mode<synchronous>, transform_indices = @transform_2, window_bounds = array<i64: 1, 4>}, {pipeline_mode = #tpu.pipeline_mode<synchronous>, transform_indices = @transform_3, window_bounds = array<i64: 128, 4>}, {pipeline_mode = #tpu.pipeline_mode<synchronous>, transform_indices = @transform_4, window_bounds = array<i64: 1, 4>}, {transform_indices = @transform_5, window_bounds = array<i64: 1, 16, 16, 4>}]} {
    %c0 = arith.constant 0 : index
    %c0_0 = arith.constant 0 : index
    %c0_1 = arith.constant 0 : index
    %c0_2 = arith.constant 0 : index
    %0 = vector.load %arg1[%c0, %c0_0, %c0_1, %c0_2] : memref<1x18x18x4xf32, #tpu.memory_space<vmem>>, vector<1x16x16x4xf32>
    %1 = vector.shape_cast %0 : vector<1x16x16x4xf32> to vector<256x4xf32>
    %2 = arith.truncf %1 : vector<256x4xf32> to vector<256x4xbf16>
    %c0_3 = arith.constant 0 : index
    %c0_4 = arith.constant 0 : index
    %c1 = arith.constant 1 : index
    %c0_5 = arith.constant 0 : index
    %3 = vector.load %arg1[%c0_3, %c0_4, %c1, %c0_5] : memref<1x18x18x4xf32, #tpu.memory_space<vmem>>, vector<1x16x16x4xf32>
    %4 = vector.shape_cast %3 : vector<1x16x16x4xf32> to vector<256x4xf32>
    %5 = arith.truncf %4 : vector<256x4xf32> to vector<256x4xbf16>
    %c0_6 = arith.constant 0 : index
    %c0_7 = arith.constant 0 : index
    %c2 = arith.constant 2 : index
    %c0_8 = arith.constant 0 : index
    %6 = vector.load %arg1[%c0_6, %c0_7, %c2, %c0_8] : memref<1x18x18x4xf32, #tpu.memory_space<vmem>>, vector<1x16x16x4xf32>
    %7 = vector.shape_cast %6 : vector<1x16x16x4xf32> to vector<256x4xf32>
    %8 = arith.truncf %7 : vector<256x4xf32> to vector<256x4xbf16>
    %c0_9 = arith.constant 0 : index
    %c1_10 = arith.constant 1 : index
    %c0_11 = arith.constant 0 : index
    %c0_12 = arith.constant 0 : index
    %9 = vector.load %arg1[%c0_9, %c1_10, %c0_11, %c0_12] : memref<1x18x18x4xf32, #tpu.memory_space<vmem>>, vector<1x16x16x4xf32>
    %10 = vector.shape_cast %9 : vector<1x16x16x4xf32> to vector<256x4xf32>
    %11 = arith.truncf %10 : vector<256x4xf32> to vector<256x4xbf16>
    %c0_13 = arith.constant 0 : index
    %c1_14 = arith.constant 1 : index
    %c1_15 = arith.constant 1 : index
    %c0_16 = arith.constant 0 : index
    %12 = vector.load %arg1[%c0_13, %c1_14, %c1_15, %c0_16] : memref<1x18x18x4xf32, #tpu.memory_space<vmem>>, vector<1x16x16x4xf32>
    %13 = vector.shape_cast %12 : vector<1x16x16x4xf32> to vector<256x4xf32>
    %14 = arith.truncf %13 : vector<256x4xf32> to vector<256x4xbf16>
    %c0_17 = arith.constant 0 : index
    %c1_18 = arith.constant 1 : index
    %c2_19 = arith.constant 2 : index
    %c0_20 = arith.constant 0 : index
    %15 = vector.load %arg1[%c0_17, %c1_18, %c2_19, %c0_20] : memref<1x18x18x4xf32, #tpu.memory_space<vmem>>, vector<1x16x16x4xf32>
    %16 = vector.shape_cast %15 : vector<1x16x16x4xf32> to vector<256x4xf32>
    %17 = arith.truncf %16 : vector<256x4xf32> to vector<256x4xbf16>
    %c0_21 = arith.constant 0 : index
    %c2_22 = arith.constant 2 : index
    %c0_23 = arith.constant 0 : index
    %c0_24 = arith.constant 0 : index
    %18 = vector.load %arg1[%c0_21, %c2_22, %c0_23, %c0_24] : memref<1x18x18x4xf32, #tpu.memory_space<vmem>>, vector<1x16x16x4xf32>
    %19 = vector.shape_cast %18 : vector<1x16x16x4xf32> to vector<256x4xf32>
    %20 = arith.truncf %19 : vector<256x4xf32> to vector<256x4xbf16>
    %c0_25 = arith.constant 0 : index
    %c2_26 = arith.constant 2 : index
    %c1_27 = arith.constant 1 : index
    %c0_28 = arith.constant 0 : index
    %21 = vector.load %arg1[%c0_25, %c2_26, %c1_27, %c0_28] : memref<1x18x18x4xf32, #tpu.memory_space<vmem>>, vector<1x16x16x4xf32>
    %22 = vector.shape_cast %21 : vector<1x16x16x4xf32> to vector<256x4xf32>
    %23 = arith.truncf %22 : vector<256x4xf32> to vector<256x4xbf16>
    %c0_29 = arith.constant 0 : index
    %c2_30 = arith.constant 2 : index
    %c2_31 = arith.constant 2 : index
    %c0_32 = arith.constant 0 : index
    %24 = vector.load %arg1[%c0_29, %c2_30, %c2_31, %c0_32] : memref<1x18x18x4xf32, #tpu.memory_space<vmem>>, vector<1x16x16x4xf32>
    %25 = vector.shape_cast %24 : vector<1x16x16x4xf32> to vector<256x4xf32>
    %26 = arith.truncf %25 : vector<256x4xf32> to vector<256x4xbf16>
    %cst = arith.constant 0.000000e+00 : bf16
    %27 = vector.broadcast %cst : bf16 to vector<256x92xbf16>
    %28 = tpu.concatenate %2, %5, %8, %11, %14, %17, %20, %23, %26, %27 in 1 : vector<256x4xbf16>, vector<256x4xbf16>, vector<256x4xbf16>, vector<256x4xbf16>, vector<256x4xbf16>, vector<256x4xbf16>, vector<256x4xbf16>, vector<256x4xbf16>, vector<256x4xbf16>, vector<256x92xbf16> -> vector<256x128xbf16>
    %c0_33 = arith.constant 0 : index
    %c0_34 = arith.constant 0 : index
    %29 = vector.load %arg2[%c0_33, %c0_34] : memref<128x4xbf16, #tpu.memory_space<vmem>>, vector<128x4xbf16>
    %cst_35 = arith.constant dense<0.000000e+00> : vector<256x4xf32>
    %30 = tpu.matmul %28, %29, %cst_35 {dimension_numbers = #tpu.dot_dimension_numbers<[1], [0], [0], [1], [0, 0, 1, 1], [], []>} : vector<256x128xbf16>, vector<128x4xbf16>, vector<256x4xf32> -> vector<256x4xf32>
    %c0_36 = arith.constant 0 : index
    %c0_37 = arith.constant 0 : index
    %31 = vector.load %arg3[%c0_36, %c0_37] : memref<1x4xf32, #tpu.memory_space<vmem>>, vector<1x4xf32>
    %32 = vector.broadcast %31 : vector<1x4xf32> to vector<256x4xf32>
    %33 = arith.addf %30, %32 : vector<256x4xf32>
    %cst_38 = arith.constant 0.000000e+00 : f32
    %34 = vector.broadcast %cst_38 : f32 to vector<256x4xf32>
    %35 = arith.maximumf %33, %34 : vector<256x4xf32>
    %36 = arith.truncf %35 : vector<256x4xf32> to vector<256x4xbf16>
    %cst_39 = arith.constant 0.000000e+00 : bf16
    %37 = vector.broadcast %cst_39 : bf16 to vector<1x1x18x4xbf16>
    %c0_40 = arith.constant 0 : index
    %c0_41 = arith.constant 0 : index
    %c0_42 = arith.constant 0 : index
    %c0_43 = arith.constant 0 : index
    %38 = vector.load %arg7[%c0_40, %c0_41, %c0_42, %c0_43] : memref<1x18x18x4xbf16, #tpu.memory_space<vmem>>, vector<1x1x18x4xbf16>
    tpu.vector_store %arg7[%c0_40, %c0_41, %c0_42, %c0_43], %37 {strides = array<i32>} : memref<1x18x18x4xbf16, #tpu.memory_space<vmem>>, vector<1x1x18x4xbf16>,
    %cst_44 = arith.constant 0.000000e+00 : bf16
    %39 = vector.broadcast %cst_44 : bf16 to vector<1x1x18x4xbf16>
    %c0_45 = arith.constant 0 : index
    %c17 = arith.constant 17 : index
    %c0_46 = arith.constant 0 : index
    %c0_47 = arith.constant 0 : index
    %40 = vector.load %arg7[%c0_45, %c17, %c0_46, %c0_47] : memref<1x18x18x4xbf16, #tpu.memory_space<vmem>>, vector<1x1x18x4xbf16>
    tpu.vector_store %arg7[%c0_45, %c17, %c0_46, %c0_47], %39 {strides = array<i32>} : memref<1x18x18x4xbf16, #tpu.memory_space<vmem>>, vector<1x1x18x4xbf16>,
    %cst_48 = arith.constant 0.000000e+00 : bf16
    %41 = vector.broadcast %cst_48 : bf16 to vector<1x18x1x4xbf16>
    %c0_49 = arith.constant 0 : index
    %c0_50 = arith.constant 0 : index
    %c0_51 = arith.constant 0 : index
    %c0_52 = arith.constant 0 : index
    %42 = vector.load %arg7[%c0_49, %c0_50, %c0_51, %c0_52] : memref<1x18x18x4xbf16, #tpu.memory_space<vmem>>, vector<1x18x1x4xbf16>
    tpu.vector_store %arg7[%c0_49, %c0_50, %c0_51, %c0_52], %41 {strides = array<i32>} : memref<1x18x18x4xbf16, #tpu.memory_space<vmem>>, vector<1x18x1x4xbf16>,
    %cst_53 = arith.constant 0.000000e+00 : bf16
    %43 = vector.broadcast %cst_53 : bf16 to vector<1x18x1x4xbf16>
    %c0_54 = arith.constant 0 : index
    %c0_55 = arith.constant 0 : index
    %c17_56 = arith.constant 17 : index
    %c0_57 = arith.constant 0 : index
    %44 = vector.load %arg7[%c0_54, %c0_55, %c17_56, %c0_57] : memref<1x18x18x4xbf16, #tpu.memory_space<vmem>>, vector<1x18x1x4xbf16>
    tpu.vector_store %arg7[%c0_54, %c0_55, %c17_56, %c0_57], %43 {strides = array<i32>} : memref<1x18x18x4xbf16, #tpu.memory_space<vmem>>, vector<1x18x1x4xbf16>,
    %45 = vector.shape_cast %36 : vector<256x4xbf16> to vector<1x16x16x4xbf16>
    %c0_58 = arith.constant 0 : index
    %c1_59 = arith.constant 1 : index
    %c1_60 = arith.constant 1 : index
    %c0_61 = arith.constant 0 : index
    %46 = vector.load %arg7[%c0_58, %c1_59, %c1_60, %c0_61] : memref<1x18x18x4xbf16, #tpu.memory_space<vmem>>, vector<1x16x16x4xbf16>
    tpu.vector_store %arg7[%c0_58, %c1_59, %c1_60, %c0_61], %45 {strides = array<i32>} : memref<1x18x18x4xbf16, #tpu.memory_space<vmem>>, vector<1x16x16x4xbf16>,
    %c0_62 = arith.constant 0 : index
    %c0_63 = arith.constant 0 : index
    %c0_64 = arith.constant 0 : index
    %c0_65 = arith.constant 0 : index
    %47 = vector.load %arg7[%c0_62, %c0_63, %c0_64, %c0_65] : memref<1x18x18x4xbf16, #tpu.memory_space<vmem>>, vector<1x16x16x4xbf16>
    %48 = vector.shape_cast %47 : vector<1x16x16x4xbf16> to vector<256x4xbf16>
    %c0_66 = arith.constant 0 : index
    %c0_67 = arith.constant 0 : index
    %c1_68 = arith.constant 1 : index
    %c0_69 = arith.constant 0 : index
    %49 = vector.load %arg7[%c0_66, %c0_67, %c1_68, %c0_69] : memref<1x18x18x4xbf16, #tpu.memory_space<vmem>>, vector<1x16x16x4xbf16>
    %50 = vector.shape_cast %49 : vector<1x16x16x4xbf16> to vector<256x4xbf16>
    %c0_70 = arith.constant 0 : index
    %c0_71 = arith.constant 0 : index
    %c2_72 = arith.constant 2 : index
    %c0_73 = arith.constant 0 : index
    %51 = vector.load %arg7[%c0_70, %c0_71, %c2_72, %c0_73] : memref<1x18x18x4xbf16, #tpu.memory_space<vmem>>, vector<1x16x16x4xbf16>
    %52 = vector.shape_cast %51 : vector<1x16x16x4xbf16> to vector<256x4xbf16>
    %c0_74 = arith.constant 0 : index
    %c1_75 = arith.constant 1 : index
    %c0_76 = arith.constant 0 : index
    %c0_77 = arith.constant 0 : index
    %53 = vector.load %arg7[%c0_74, %c1_75, %c0_76, %c0_77] : memref<1x18x18x4xbf16, #tpu.memory_space<vmem>>, vector<1x16x16x4xbf16>
    %54 = vector.shape_cast %53 : vector<1x16x16x4xbf16> to vector<256x4xbf16>
    %c0_78 = arith.constant 0 : index
    %c1_79 = arith.constant 1 : index
    %c1_80 = arith.constant 1 : index
    %c0_81 = arith.constant 0 : index
    %55 = vector.load %arg7[%c0_78, %c1_79, %c1_80, %c0_81] : memref<1x18x18x4xbf16, #tpu.memory_space<vmem>>, vector<1x16x16x4xbf16>
    %56 = vector.shape_cast %55 : vector<1x16x16x4xbf16> to vector<256x4xbf16>
    %c0_82 = arith.constant 0 : index
    %c1_83 = arith.constant 1 : index
    %c2_84 = arith.constant 2 : index
    %c0_85 = arith.constant 0 : index
    %57 = vector.load %arg7[%c0_82, %c1_83, %c2_84, %c0_85] : memref<1x18x18x4xbf16, #tpu.memory_space<vmem>>, vector<1x16x16x4xbf16>
    %58 = vector.shape_cast %57 : vector<1x16x16x4xbf16> to vector<256x4xbf16>
    %c0_86 = arith.constant 0 : index
    %c2_87 = arith.constant 2 : index
    %c0_88 = arith.constant 0 : index
    %c0_89 = arith.constant 0 : index
    %59 = vector.load %arg7[%c0_86, %c2_87, %c0_88, %c0_89] : memref<1x18x18x4xbf16, #tpu.memory_space<vmem>>, vector<1x16x16x4xbf16>
    %60 = vector.shape_cast %59 : vector<1x16x16x4xbf16> to vector<256x4xbf16>
    %c0_90 = arith.constant 0 : index
    %c2_91 = arith.constant 2 : index
    %c1_92 = arith.constant 1 : index
    %c0_93 = arith.constant 0 : index
    %61 = vector.load %arg7[%c0_90, %c2_91, %c1_92, %c0_93] : memref<1x18x18x4xbf16, #tpu.memory_space<vmem>>, vector<1x16x16x4xbf16>
    %62 = vector.shape_cast %61 : vector<1x16x16x4xbf16> to vector<256x4xbf16>
    %c0_94 = arith.constant 0 : index
    %c2_95 = arith.constant 2 : index
    %c2_96 = arith.constant 2 : index
    %c0_97 = arith.constant 0 : index
    %63 = vector.load %arg7[%c0_94, %c2_95, %c2_96, %c0_97] : memref<1x18x18x4xbf16, #tpu.memory_space<vmem>>, vector<1x16x16x4xbf16>
    %64 = vector.shape_cast %63 : vector<1x16x16x4xbf16> to vector<256x4xbf16>
    %cst_98 = arith.constant 0.000000e+00 : bf16
    %65 = vector.broadcast %cst_98 : bf16 to vector<256x92xbf16>
    %66 = tpu.concatenate %48, %50, %52, %54, %56, %58, %60, %62, %64, %65 in 1 : vector<256x4xbf16>, vector<256x4xbf16>, vector<256x4xbf16>, vector<256x4xbf16>, vector<256x4xbf16>, vector<256x4xbf16>, vector<256x4xbf16>, vector<256x4xbf16>, vector<256x4xbf16>, vector<256x92xbf16> -> vector<256x128xbf16>
    %c0_99 = arith.constant 0 : index
    %c0_100 = arith.constant 0 : index
    %67 = vector.load %arg4[%c0_99, %c0_100] : memref<128x4xbf16, #tpu.memory_space<vmem>>, vector<128x4xbf16>
    %cst_101 = arith.constant dense<0.000000e+00> : vector<256x4xf32>
    %68 = tpu.matmul %66, %67, %cst_101 {dimension_numbers = #tpu.dot_dimension_numbers<[1], [0], [0], [1], [0, 0, 1, 1], [], []>} : vector<256x128xbf16>, vector<128x4xbf16>, vector<256x4xf32> -> vector<256x4xf32>
    %c0_102 = arith.constant 0 : index
    %c1_103 = arith.constant 1 : index
    %c1_104 = arith.constant 1 : index
    %c0_105 = arith.constant 0 : index
    %69 = vector.load %arg1[%c0_102, %c1_103, %c1_104, %c0_105] : memref<1x18x18x4xf32, #tpu.memory_space<vmem>>, vector<1x16x16x4xf32>
    %70 = vector.shape_cast %69 : vector<1x16x16x4xf32> to vector<256x4xf32>
    %c0_106 = arith.constant 0 : index
    %c0_107 = arith.constant 0 : index
    %71 = vector.load %arg5[%c0_106, %c0_107] : memref<1x4xf32, #tpu.memory_space<vmem>>, vector<1x4xf32>
    %72 = vector.broadcast %71 : vector<1x4xf32> to vector<256x4xf32>
    %73 = arith.addf %68, %72 : vector<256x4xf32>
    %74 = arith.addf %73, %70 : vector<256x4xf32>
    %cst_108 = arith.constant 0.000000e+00 : f32
    %75 = vector.broadcast %cst_108 : f32 to vector<256x4xf32>
    %76 = arith.maximumf %74, %75 : vector<256x4xf32>
    %77 = vector.shape_cast %76 : vector<256x4xf32> to vector<1x16x16x4xf32>
    %c0_109 = arith.constant 0 : index
    %c0_110 = arith.constant 0 : index
    %c0_111 = arith.constant 0 : index
    %c0_112 = arith.constant 0 : index
    %78 = vector.load %arg6[%c0_109, %c0_110, %c0_111, %c0_112] : memref<1x16x16x4xf32, #tpu.memory_space<vmem>>, vector<1x16x16x4xf32>
    tpu.vector_store %arg6[%c0_109, %c0_110, %c0_111, %c0_112], %77 {strides = array<i32>} : memref<1x16x16x4xf32, #tpu.memory_space<vmem>>, vector<1x16x16x4xf32>,
    return
  }
  func.func @transform_0(%arg0: i32) -> (i32, i32, i32, i32) {
    %c0_i32 = arith.constant 0 : i32
    %c0_i32_0 = arith.constant 0 : i32
    %c0_i32_1 = arith.constant 0 : i32
    %c0_i32_2 = arith.constant 0 : i32
    return %arg0, %c0_i32, %c0_i32_0, %c0_i32_1 : i32, i32, i32, i32
  }
  func.func @transform_1(%arg0: i32) -> (i32, i32) {
    %c0_i32 = arith.constant 0 : i32
    %c0_i32_0 = arith.constant 0 : i32
    %c0_i32_1 = arith.constant 0 : i32
    return %c0_i32, %c0_i32_0 : i32, i32
  }
  func.func @transform_2(%arg0: i32) -> (i32, i32) {
    %c0_i32 = arith.constant 0 : i32
    %c0_i32_0 = arith.constant 0 : i32
    %c0_i32_1 = arith.constant 0 : i32
    return %c0_i32, %c0_i32_0 : i32, i32
  }
  func.func @transform_3(%arg0: i32) -> (i32, i32) {
    %c0_i32 = arith.constant 0 : i32
    %c0_i32_0 = arith.constant 0 : i32
    %c0_i32_1 = arith.constant 0 : i32
    return %c0_i32, %c0_i32_0 : i32, i32
  }
  func.func @transform_4(%arg0: i32) -> (i32, i32) {
    %c0_i32 = arith.constant 0 : i32
    %c0_i32_0 = arith.constant 0 : i32
    %c0_i32_1 = arith.constant 0 : i32
    return %c0_i32, %c0_i32_0 : i32, i32
  }
  func.func @transform_5(%arg0: i32) -> (i32, i32, i32, i32) {
    %c0_i32 = arith.constant 0 : i32
    %c0_i32_0 = arith.constant 0 : i32
    %c0_i32_1 = arith.constant 0 : i32
    %c0_i32_2 = arith.constant 0 : i32
    return %arg0, %c0_i32, %c0_i32_0, %c0_i32_1 : i32, i32, i32, i32
  }
}

</mosaic_0001>

<bundles_post_ra>
// kernel: tpu_custom_call.1
= control target key start
LH: loop header
LB: loop body
LE: loop exit
PB: predicated region body
PF: predicated region fallthrough
CT: control target
= control target key end

     0   :  { %s6390_s18 = smov 0   ;;  %s9080_s0 = inlined_call_operand.vmem [shape: f32[2,18,18,4], index: 0, kind: input, shape index: {}]   ;;  %s9081_s1 = inlined_call_operand.vmem [shape: bf16[128,4], index: 1, kind: input, shape index: {}]   ;;  %s9082_s2 = inlined_call_operand.vmem [shape: f32[1,4], index: 2, kind: input, shape index: {}]   ;;  %s9083_s3 = inlined_call_operand.vmem [shape: bf16[128,4], index: 3, kind: input, shape index: {}]   ;;  %s9084_s4 = inlined_call_operand.vmem [shape: f32[1,4], index: 4, kind: input, shape index: {}]   ;;  %s9085_s5 = inlined_call_operand.vmem [shape: f32[2,16,16,4], index: 5, kind: output, shape index: {}]  }
   0x1 LB: > { %s5563_s19 = sadd.s32 4294967295, %s6349_s18   ;;  %p5567_p0 = scmp.ge.s32.totalorder %s6349_s18, 1  ;;  %s6349_s18 = sphi %s6390_s18, %s15_s18  }
   0x2   : > { %p187_p1 = scmp.lt.s32.totalorder %s6349_s18, 3 }
   0x4   : > { %p188_p2 = pnand %p5567_p0, %p187_p1 }
   0x6   : > { %191 = sbr.rel (%p188_p2) target bundleno = 1138 (0x472), region = 40 }
   0xd   : > { %p215_p3 = scmp.lt.s32.totalorder %s5563_s19, 1  ;;  %v6266_v0 = vld [vmem:[%s9081_s1] sm:$0xff]   ;;  %v6267_v1 = vld [vmem:[%s9081_s1 + $0x8] sm:$0xff]   ;;  %v6268_v2 = vld [vmem:[%s9081_s1 + $0x10] sm:$0xff]   ;;  %s6351_s30 = smov 8   ;;  %vm1044_vm0 = vcmask 31744  }
   0xe   : > { %6152 = vmatprep.subr.bf16.mxu0 %v6266_v0  ;;  %s6352_s6 = smov 4   ;;  %s6353_s7 = smov 12   ;;  %v6269_v31 = vld [vmem:[%s9081_s1 + $0x18] sm:$0xff]   ;;  %v6270_v33 = vld [vmem:[%s9081_s1 + $0x20] sm:$0xff]   ;;  %v6271_v35 = vld [vmem:[%s9081_s1 + $0x28] sm:$0xff]   ;;  %vm1093_vm1 = vcmask 64512  }
   0xf   : > { %s9224_s19 = smov (!%p215_p3, %s5563_s19), 1  ;;  %6153 = vmatpush3.bf16.msra.mxu0 %v6266_v0  ;;  %s6354_s8 = smov 16   ;;  %v6272_v36 = vld [vmem:[%s9081_s1 + $0x30] sm:$0xff]   ;;  %v6273_v39 = vld [vmem:[%s9081_s1 + $0x38] sm:$0xff]   ;;  %vm1126_vm2 = vcmask 97280   ;;  %vm1159_vm3 = vcmask 130048  }
  0x10   : > { %s6248_s24 = smul.u32 432, %s9224_s19  ;;  %6154 = vmatprep.subr.bf16.mxu0 %v6267_v1  ;;  %s6355_s9 = smov 20   ;;  %vm1192_vm4 = vcmask 162816   ;;  %vm9089_vm5 = vcmask 195584   ;;  %vm9091_vm6 = vcmask 228352   ;;  %vm9090_vm7 = vcmask 261120  }
  0x11   : > { %s6356_s14 = smov 24   ;;  %s6357_s21 = smov 28   ;;  %vm1324_vm8 = vcmask 293888   ;;  %vm9087_vm9 = vcmask 27648   ;;  %vm1641_vm10 = vcmask 24576  }
  0x12   : > { %s6413_s29 = scalar_lea.vmem %s9080_s0, %s6248_s24  ;;  %s6358_s24 = smov 32   ;;  %vm9086_vm11 = vsmask.f32 256  ;;  %vm9088_vm13 = vsmask.f32 7938 }
  0x13   : > { %v322_v3 = vld [vmem:[%s6413_s29 + $0x2] sm:$0xff]  ;;  %v323_v4 = vld [vmem:[%s6413_s29 + $0xa] sm:$0xff]  ;;  %6155 = vmatpush3.bf16.msra.mxu0 %v6267_v1  ;;  %v324_v8 = vld [vmem:[%s6413_s29 + $0x1a] sm:$0xff]  ;;  %vm2325_vm15 = vsmask.f32 3328 }
  0x14   : > { %v274_v5 = vld [vmem:[%s6413_s29 + $0x1] sm:$0xff]  ;;  %v354_v6 = vpack.c.bf16 %v323_v4, %v322_v3  ;;  %v275_v7 = vld [vmem:[%s6413_s29 + $0x9] sm:$0xff]  ;;  %6156 = vmatprep.subr.bf16.mxu0 %v6268_v2  ;;  %v276_v11 = vld [vmem:[%s6413_s29 + $0x19] sm:$0xff] }
  0x15   : > { %v325_v9 = vld [vmem:[%s6413_s29 + $0x22] sm:$0xff]  ;;  %v306_v10 = vpack.c.bf16 %v275_v7, %v274_v5  ;;  %v5573_v15 = vld [vmem:[%s6413_s29 + $0x30] sm:$0xff]  ;;  %v5574_v16 = vld [vmem:[%s6413_s29 + $0x38] sm:$0xff] }
  0x16   : > { %v277_v12 = vld [vmem:[%s6413_s29 + $0x21] sm:$0xff]  ;;  %724 = vrot.lane.b32.xlu1 %v354_v6, %s6351_s30  ;;  %v355_v13 = vpack.c.bf16 %v325_v9, %v324_v8  ;;  %v5571_v17 = vld [vmem:[%s6413_s29 + $0x18] sm:$0xff]  ;;  %v6430_v19 = vpack.c.bf16 %v5574_v16, %v5573_v15  ;;  %v5670_v28 = vld [vmem:[%s6413_s29 + $0x50] sm:$0xff] }
  0x17   : > { %676 = vrot.lane.b32.xlu0 %v306_v10, %s6352_s6  ;;  %v307_v14 = vpack.c.bf16 %v277_v12, %v276_v11  ;;  %6157 = vmatpush3.bf16.msra.mxu0 %v6268_v2  ;;  %v5572_v18 = vld [vmem:[%s6413_s29 + $0x20] sm:$0xff]  ;;  %v5605_v21 = vld [vmem:[%s6413_s29 + $0x31] sm:$0xff]  ;;  %v5669_v27 = vld [vmem:[%s6413_s29 + $0x48] sm:$0xff] }
  0x18   : > { %v6433_v20 = vpack.c.bf16 %v5572_v18, %v5571_v17  ;;  %v5606_v22 = vld [vmem:[%s6413_s29 + $0x39] sm:$0xff]  ;;  %v6448_v29 = vpack.c.bf16 %v5670_v28, %v5669_v27  ;;  %v5701_v30 = vld [vmem:[%s6413_s29 + $0x49] sm:$0xff]  ;;  %v5702_v32 = vld [vmem:[%s6413_s29 + $0x51] sm:$0xff]  ;;  %6158 = vmatprep.subr.bf16.mxu0 %v6269_v31 }
  0x19   : > { %v452_v23 = vpack.c.bf16 %v5606_v22, %v5605_v21  ;;  %v5637_v24 = vld [vmem:[%s6413_s29 + $0x32] sm:$0xff]  ;;  %v5638_v25 = vld [vmem:[%s6413_s29 + $0x3a] sm:$0xff]  ;;  %v597_v34 = vpack.c.bf16 %v5702_v32, %v5701_v30  ;;  %v5733_v37 = vld [vmem:[%s6413_s29 + $0x4a] sm:$0xff] }
  0x1a   : > { %726 = vrot.lane.b32.xlu1 %v355_v13, %s6351_s30  ;;  %v500_v26 = vpack.c.bf16 %v5638_v25, %v5637_v24  ;;  %v5734_v38 = vld [vmem:[%s6413_s29 + $0x52] sm:$0xff]  ;;  %v5577_v41 = vld [vmem:[%s6413_s29 + $0x60] sm:$0xff]  ;;  %v5578_v42 = vld [vmem:[%s6413_s29 + $0x68] sm:$0xff] }
  0x1b   : > { %678 = vrot.lane.b32.xlu0 %v307_v14, %s6352_s6  ;;  %6159 = vmatpush3.bf16.msra.mxu0 %v6269_v31  ;;  %v645_v40 = vpack.c.bf16 %v5734_v38, %v5733_v37  ;;  %v6483_v43 = vpack.c.bf16 %v5578_v42, %v5577_v41  ;;  %v5609_v44 = vld [vmem:[%s6413_s29 + $0x61] sm:$0xff]  ;;  %v5610_v45 = vld [vmem:[%s6413_s29 + $0x69] sm:$0xff]  ;;  %v5673_v50 = vld [vmem:[%s6413_s29 + $0x78] sm:$0xff] }
  0x1c   : > { %6160 = vmatprep.subr.bf16.mxu0 %v6270_v33  ;;  %v454_v46 = vpack.c.bf16 %v5610_v45, %v5609_v44  ;;  %v5641_v47 = vld [vmem:[%s6413_s29 + $0x62] sm:$0xff]  ;;  %v5642_v48 = vld [vmem:[%s6413_s29 + $0x6a] sm:$0xff]  ;;  %v5705_v53 = vld [vmem:[%s6413_s29 + $0x79] sm:$0xff] }
  0x1d   : > { %v502_v49 = vpack.c.bf16 %v5642_v48, %v5641_v47  ;;  %v5674_v51 = vld [vmem:[%s6413_s29 + $0x80] sm:$0xff]  ;;  %v5581_v59 = vld [vmem:[%s6413_s29 + $0x90] sm:$0xff]  ;;  %v5582_v60 = vld [vmem:[%s6413_s29 + $0x98] sm:$0xff] }
  0x1e   : > { %774 = vrot.lane.b32.xlu1 %v6430_v19, %s6353_s7  ;;  %v6499_v52 = vpack.c.bf16 %v5674_v51, %v5673_v50  ;;  %v5706_v54 = vld [vmem:[%s6413_s29 + $0x81] sm:$0xff]  ;;  %v6519_v61 = vpack.c.bf16 %v5582_v60, %v5581_v59  ;;  %v5613_v62 = vld [vmem:[%s6413_s29 + $0x91] sm:$0xff]  ;;  %v5614_v63 = vld [vmem:[%s6413_s29 + $0x99] sm:$0xff] }
  0x1f   : > { %772 = vrot.lane.b32.xlu0 %v6433_v20, %s6353_s7  ;;  %6161 = vmatpush3.bf16.msra.mxu0 %v6270_v33  ;;  %v599_v55 = vpack.c.bf16 %v5706_v54, %v5705_v53  ;;  %v5737_v56 = vld [vmem:[%s6413_s29 + $0x7a] sm:$0xff]  ;;  %v5738_v57 = vld [vmem:[%s6413_s29 + $0x82] sm:$0xff]  ;;  %v456_v0 = vpack.c.bf16 %v5614_v63, %v5613_v62  ;;  %v5645_v1 = vld [vmem:[%s6413_s29 + $0x92] sm:$0xff] }
  0x20   : > { %6162 = vmatprep.subr.bf16.mxu0 %v6271_v35  ;;  %v647_v58 = vpack.c.bf16 %v5738_v57, %v5737_v56  ;;  %v5646_v2 = vld [vmem:[%s6413_s29 + $0x9a] sm:$0xff]  ;;  %v5677_v4 = vld [vmem:[%s6413_s29 + $0xa8] sm:$0xff]  ;;  %v5678_v5 = vld [vmem:[%s6413_s29 + $0xb0] sm:$0xff] }
  0x21   : > { %v504_v3 = vpack.c.bf16 %v5646_v2, %v5645_v1  ;;  %v6535_v6 = vpack.c.bf16 %v5678_v5, %v5677_v4  ;;  %v5709_v7 = vld [vmem:[%s6413_s29 + $0xa9] sm:$0xff]  ;;  %v5710_v8 = vld [vmem:[%s6413_s29 + $0xb1] sm:$0xff]  ;;  %v5617_v16 = vld [vmem:[%s6413_s29 + $0xc1] sm:$0xff] }
  0x22   : > { %822 = vrot.lane.b32.xlu1 %v452_v23, %s6354_s8  ;;  %v601_v9 = vpack.c.bf16 %v5710_v8, %v5709_v7  ;;  %v5741_v10 = vld [vmem:[%s6413_s29 + $0xaa] sm:$0xff]  ;;  %v5742_v11 = vld [vmem:[%s6413_s29 + $0xb2] sm:$0xff]  ;;  %v5649_v21 = vld [vmem:[%s6413_s29 + $0xc2] sm:$0xff] }
  0x23   : > { %820 = vrot.lane.b32.xlu0 %v307_v14, %s6354_s8  ;;  %6163 = vmatpush3.bf16.msra.mxu0 %v6271_v35  ;;  %v649_v12 = vpack.c.bf16 %v5742_v11, %v5741_v10  ;;  %v5586_v14 = vld [vmem:[%s6413_s29 + $0xc8] sm:$0xff]  ;;  %v5681_v24 = vld [vmem:[%s6413_s29 + $0xd8] sm:$0xff]  ;;  %v5682_v25 = vld [vmem:[%s6413_s29 + $0xe0] sm:$0xff] }
  0x24   : > { %6164 = vmatprep.subr.bf16.mxu0 %v6272_v36  ;;  %v5618_v17 = vld [vmem:[%s6413_s29 + $0xc9] sm:$0xff]  ;;  %v5713_v27 = vld [vmem:[%s6413_s29 + $0xd9] sm:$0xff]  ;;  %v5714_v28 = vld [vmem:[%s6413_s29 + $0xe1] sm:$0xff] }
  0x25   : > { %v458_v18 = vpack.c.bf16 %v5618_v17, %v5617_v16  ;;  %v5650_v22 = vld [vmem:[%s6413_s29 + $0xca] sm:$0xff]  ;;  %v603_v32 = vpack.c.bf16 %v5714_v28, %v5713_v27  ;;  %v5746_v37 = vld [vmem:[%s6413_s29 + $0xe2] sm:$0xff]  ;;  %v5622_v53 = vld [vmem:[%s6413_s29 + $0xf9] sm:$0xff] }
  0x26   : > { %870 = vrot.lane.b32.xlu1 %v500_v26, %s6355_s9  ;;  %v226_v42 = vld [vmem:[%s6413_s29] sm:$0xff]  ;;  %v227_v44 = vld [vmem:[%s6413_s29 + $0x8] sm:$0xff]  ;;  %v5589_v45 = vld [vmem:[%s6413_s29 + $0xf0] sm:$0xff] }
  0x27   : > { %868 = vrot.lane.b32.xlu0 %v355_v13, %s6355_s9  ;;  %6165 = vmatpush3.bf16.msra.mxu0 %v6272_v36  ;;  %v5585_v13 = vld [vmem:[%s6413_s29 + $0xc0] sm:$0xff]  ;;  %v258_v48 = vpack.c.bf16 %v227_v44, %v226_v42  ;;  %v5621_v51 = vld [vmem:[%s6413_s29 + $0xf1] sm:$0xff]  ;;  %v5685_v5 = vld [vmem:[%s6413_s29 + $0x108] sm:$0xff] }
  0x28   : > { %6166 = vmatprep.subr.bf16.mxu0 %v6273_v39  ;;  %v6555_v15 = vpack.c.bf16 %v5586_v14, %v5585_v13  ;;  %v5745_v36 = vld [vmem:[%s6413_s29 + $0xda] sm:$0xff]  ;;  %v460_v57 = vpack.c.bf16 %v5622_v53, %v5621_v51  ;;  %v5686_v7 = vld [vmem:[%s6413_s29 + $0x110] sm:$0xff]  ;;  %vm6787_vm12 = vmand %vm1641_vm10, %vm9086_vm11 }
  0x29   : > { %v5654_v59 = vld [vmem:[%s6413_s29 + $0xfa] sm:$0xff]  ;;  %v6622_v16 = vpack.c.bf16 %v5686_v7, %v5685_v5  ;;  %vm6809_vm14 = vmand %vm1641_vm10, %vm9088_vm13  ;;  %vm2777_vm13 = vcmask 1046532  }
  0x2a   : > { %918 = vrot.lane.b32.xlu1 %v6448_v29, %s6356_s14 }
  0x2b   : > { %916 = vrot.lane.b32.xlu0 %v6430_v19, %s6356_s14  ;;  %6167 = vmatpush3.bf16.msra.mxu0 %v6273_v39  ;;  %v651_v39 = vpack.c.bf16 %v5746_v37, %v5745_v36 }
  0x2e   : > { %966 = vrot.lane.b32.xlu1 %v597_v34, %s6357_s21 }
  0x2f   : > { %964 = vrot.lane.b32.xlu0 %v452_v23, %s6357_s21 }
  0x32   : > { %680 = vrot.lane.b32.xlu1 %v452_v23, %s6352_s6  ;;  %v506_v23 = vpack.c.bf16 %v5650_v22, %v5649_v21  ;;  %v5718_v21 = vld [vmem:[%s6413_s29 + $0x111] sm:$0xff] }
  0x33   : > { %1012 = vrot.lane.b32.xlu0 %v500_v26, %s6358_s24 }
  0x36   : > { %682 = vrot.lane.b32.xlu1 %v597_v34, %s6352_s6 }
  0x37   : > { %1014 = vrot.lane.b32.xlu0 %v645_v40, %s6358_s24 }
  0x3a   : > { %730 = vrot.lane.b32.xlu1 %v645_v40, %s6351_s30 }
  0x3b   : > { %728 = vrot.lane.b32.xlu0 %v500_v26, %s6351_s30  ;;  %v6571_v26 = vpack.c.bf16 %v5682_v25, %v5681_v24 }
  0x3e   : > { %778 = vrot.lane.b32.xlu1 %v6483_v43, %s6353_s7 }
  0x3f   : > { %776 = vrot.lane.b32.xlu0 %v6448_v29, %s6353_s7 }
  0x42   : > { %826 = vrot.lane.b32.xlu1 %v454_v46, %s6354_s8 }
  0x43   : > { %824 = vrot.lane.b32.xlu0 %v597_v34, %s6354_s8 }
  0x46   : > { %874 = vrot.lane.b32.xlu1 %v502_v49, %s6355_s9 }
  0x47   : > { %872 = vrot.lane.b32.xlu0 %v645_v40, %s6355_s9 }
  0x4a   : > { %922 = vrot.lane.b32.xlu1 %v6499_v52, %s6356_s14 }
  0x4b   : > { %920 = vrot.lane.b32.xlu0 %v6483_v43, %s6356_s14 }
  0x4e   : > { %970 = vrot.lane.b32.xlu1 %v599_v55, %s6357_s21 }
  0x4f   : > { %968 = vrot.lane.b32.xlu0 %v454_v46, %s6357_s21 }
  0x52   : > { %684 = vrot.lane.b32.xlu1 %v454_v46, %s6352_s6  ;;  %v5590_v46 = vld [vmem:[%s6413_s29 + $0xf8] sm:$0xff] }
  0x53   : > { %1016 = vrot.lane.b32.xlu0 %v502_v49, %s6358_s24  ;;  %v6593_v50 = vpack.c.bf16 %v5590_v46, %v5589_v45  ;;  %v5625_v45 = vld [vmem:[%s6413_s29 + $0x121] sm:$0xff]  ;;  %v5626_v46 = vld [vmem:[%s6413_s29 + $0x129] sm:$0xff] }
  0x54   : > { %v462_v51 = vpack.c.bf16 %v5626_v46, %v5625_v45 }
  0x56   : > { %686 = vrot.lane.b32.xlu1 %v599_v55, %s6352_s6 }
  0x57   : > { %1018 = vrot.lane.b32.xlu0 %v647_v58, %s6358_s24 }
  0x5a   : > { %734 = vrot.lane.b32.xlu1 %v647_v58, %s6351_s30 }
  0x5b   : > { %732 = vrot.lane.b32.xlu0 %v502_v49, %s6351_s30 }
  0x5e   : > { %782 = vrot.lane.b32.xlu1 %v6519_v61, %s6353_s7 }
  0x5f   : > { %780 = vrot.lane.b32.xlu0 %v6499_v52, %s6353_s7 }
  0x62   : > { %830 = vrot.lane.b32.xlu1 %v456_v0, %s6354_s8 }
  0x63   : > { %828 = vrot.lane.b32.xlu0 %v599_v55, %s6354_s8 }
  0x66   : > { %878 = vrot.lane.b32.xlu1 %v504_v3, %s6355_s9 }
  0x67   : > { %876 = vrot.lane.b32.xlu0 %v647_v58, %s6355_s9  ;;  %v5653_v58 = vld [vmem:[%s6413_s29 + $0xf2] sm:$0xff] }
  0x6a   : > { %926 = vrot.lane.b32.xlu1 %v6535_v6, %s6356_s14 }
  0x6b   : > { %924 = vrot.lane.b32.xlu0 %v6519_v61, %s6356_s14 }
  0x6e   : > { %974 = vrot.lane.b32.xlu1 %v601_v9, %s6357_s21 }
  0x6f   : > { %972 = vrot.lane.b32.xlu0 %v456_v0, %s6357_s21 }
  0x72   : > { %688 = vrot.lane.b32.xlu1 %v456_v0, %s6352_s6 }
  0x73   : > { %1020 = vrot.lane.b32.xlu0 %v504_v3, %s6358_s24 }
  0x76   : > { %690 = vrot.lane.b32.xlu1 %v601_v9, %s6352_s6 }
  0x77   : > { %1022 = vrot.lane.b32.xlu0 %v649_v12, %s6358_s24 }
  0x7a   : > { %738 = vrot.lane.b32.xlu1 %v649_v12, %s6351_s30 }
  0x7b   : > { %736 = vrot.lane.b32.xlu0 %v504_v3, %s6351_s30  ;;  %v508_v3 = vpack.c.bf16 %v5654_v59, %v5653_v58 }
  0x7e   : > { %786 = vrot.lane.b32.xlu1 %v6555_v15, %s6353_s7 }
  0x7f   : > { %784 = vrot.lane.b32.xlu0 %v6535_v6, %s6353_s7 }
  0x82   : > { %834 = vrot.lane.b32.xlu1 %v458_v18, %s6354_s8 }
  0x83   : > { %832 = vrot.lane.b32.xlu0 %v601_v9, %s6354_s8 }
  0x86   : > { %882 = vrot.lane.b32.xlu1 %v506_v23, %s6355_s9 }
  0x87   : > { %880 = vrot.lane.b32.xlu0 %v649_v12, %s6355_s9 }
  0x88   : > { %v725_v30 = vpop.permute.xlu1 %724 }
  0x89   : > { %v677_v31 = vpop.permute.xlu0 %676 }
  0x8a   : > { %930 = vrot.lane.b32.xlu1 %v6571_v26, %s6356_s14  ;;  %v1047_v55 = vsel %vm1044_vm0, %v258_v48, %v677_v31 }
  0x8b   : > { %928 = vrot.lane.b32.xlu0 %v6555_v15, %s6356_s14  ;;  %v1095_v60 = vsel %vm1093_vm1, %v1047_v55, %v725_v30  ;;  %v5658_v55 = vld [vmem:[%s6413_s29 + $0x12a] sm:$0xff] }
  0x8c   : > { %v727_v33 = vpop.permute.xlu1 %726 }
  0x8d   : > { %v679_v34 = vpop.permute.xlu0 %678 }
  0x8e   : > { %978 = vrot.lane.b32.xlu1 %v603_v32, %s6357_s21  ;;  %v1050_v63 = vsel %vm1044_vm0, %v6433_v20, %v679_v34  ;;  %v5750_v34 = vld [vmem:[%s6413_s29 + $0x112] sm:$0xff] }
  0x8f   : > { %976 = vrot.lane.b32.xlu0 %v458_v18, %s6357_s21  ;;  %v1097_v20 = vsel %vm1093_vm1, %v1050_v63, %v727_v33  ;;  %v5749_v33 = vld [vmem:[%s6413_s29 + $0x10a] sm:$0xff]  ;;  %v5689_v63 = vld [vmem:[%s6413_s29 + $0x138] sm:$0xff] }
  0x90   : > { %v775_v35 = vpop.permute.xlu1 %774  ;;  %v653_v36 = vpack.c.bf16 %v5750_v34, %v5749_v33  ;;  %v5597_v33 = vld [vmem:[%s6413_s29 + $0x150] sm:$0xff]  ;;  %v5598_v34 = vld [vmem:[%s6413_s29 + $0x158] sm:$0xff] }
  0x91   : > { %v773_v38 = vpop.permute.xlu0 %772  ;;  %v1130_v10 = vsel %vm1126_vm2, %v1097_v20, %v775_v35 }
  0x92   : > { %692 = vrot.lane.b32.xlu1 %v458_v18, %s6352_s6  ;;  %v1128_v0 = vsel %vm1126_vm2, %v1095_v60, %v773_v38  ;;  %v5717_v18 = vld [vmem:[%s6413_s29 + $0x109] sm:$0xff] }
  0x93   : > { %1024 = vrot.lane.b32.xlu0 %v506_v23, %s6358_s24  ;;  %v605_v28 = vpack.c.bf16 %v5718_v21, %v5717_v18 }
  0x94   : > { %v823_v40 = vpop.permute.xlu1 %822 }
  0x95   : > { %v821_v41 = vpop.permute.xlu0 %820  ;;  %v1163_v13 = vsel %vm1159_vm3, %v1130_v10, %v823_v40  ;;  %v5594_v40 = vld [vmem:[%s6413_s29 + $0x128] sm:$0xff]  ;;  %v5721_v10 = vld [vmem:[%s6413_s29 + $0x139] sm:$0xff] }
  0x96   : > { %694 = vrot.lane.b32.xlu1 %v603_v32, %s6352_s6  ;;  %v1161_v2 = vsel %vm1159_vm3, %v1128_v0, %v821_v41  ;;  %v5690_v0 = vld [vmem:[%s6413_s29 + $0x140] sm:$0xff] }
  0x97   : > { %1026 = vrot.lane.b32.xlu0 %v651_v39, %s6358_s24 }
  0x98   : > { %v871_v47 = vpop.permute.xlu1 %870 }
  0x99   : > { %v869_v49 = vpop.permute.xlu0 %868  ;;  %v1196_v17 = vsel %vm1192_vm4, %v1163_v13, %v871_v47 }
  0x9a   : > { %742 = vrot.lane.b32.xlu1 %v651_v39, %s6351_s30  ;;  %v1194_v4 = vsel %vm1192_vm4, %v1161_v2, %v869_v49 }
  0x9b   : > { %740 = vrot.lane.b32.xlu0 %v506_v23, %s6351_s30 }
  0x9c   : > { %v919_v54 = vpop.permute.xlu1 %918 }
  0x9d   : > { %v917_v56 = vpop.permute.xlu0 %916  ;;  %v1229_v22 = vsel %vm9089_vm5, %v1196_v17, %v919_v54  ;;  %v5657_v54 = vld [vmem:[%s6413_s29 + $0x122] sm:$0xff] }
  0x9e   : > { %790 = vrot.lane.b32.xlu1 %v6593_v50, %s6353_s7  ;;  %v1227_v8 = vsel %vm9089_vm5, %v1194_v4, %v917_v56 }
  0x9f   : > { %788 = vrot.lane.b32.xlu0 %v6571_v26, %s6353_s7 }
  0xa0   : > { %v967_v62 = vpop.permute.xlu1 %966 }
  0xa1   : > { %v965_v1 = vpop.permute.xlu0 %964  ;;  %v1262_v24 = vsel %vm9091_vm6, %v1229_v22, %v967_v62  ;;  %v510_v62 = vpack.c.bf16 %v5658_v55, %v5657_v54 }
  0xa2   : > { %838 = vrot.lane.b32.xlu1 %v460_v57, %s6354_s8  ;;  %v1260_v11 = vsel %vm9091_vm6, %v1227_v8, %v965_v1  ;;  %v6678_v8 = vpack.c.bf16 %v5690_v0, %v5689_v63 }
  0xa3   : > { %836 = vrot.lane.b32.xlu0 %v603_v32, %s6354_s8 }
  0xa4   : > { %v681_v9 = vpop.permute.xlu1 %680 }
  0xa5   : > { %v1013_v12 = vpop.permute.xlu0 %1012  ;;  %v1053_v48 = vsel %vm1044_vm0, %v6430_v19, %v681_v9 }
  0xa6   : > { %886 = vrot.lane.b32.xlu1 %v508_v3, %s6355_s9  ;;  %v1293_v14 = vsel %vm9090_vm7, %v1260_v11, %v1013_v12  ;;  %v5722_v11 = vld [vmem:[%s6413_s29 + $0x141] sm:$0xff] }
  0xa7   : > { %884 = vrot.lane.b32.xlu0 %v651_v39, %s6355_s9  ;;  %6168 = vmatprep.mubr.msk.bf16.mxu0 %vm1324_vm8, %v1293_v14  ;;  %v5593_v39 = vld [vmem:[%s6413_s29 + $0x120] sm:$0xff]  ;;  %v607_v21 = vpack.c.bf16 %v5722_v11, %v5721_v10 }
  0xa8   : > { %v683_v23 = vpop.permute.xlu1 %682  ;;  %v6648_v44 = vpack.c.bf16 %v5594_v40, %v5593_v39  ;;  %v5630_v39 = vld [vmem:[%s6413_s29 + $0x159] sm:$0xff] }
  0xa9   : > { %v1015_v25 = vpop.permute.xlu0 %1014  ;;  %v1056_v53 = vsel %vm1044_vm0, %v6448_v29, %v683_v23 }
  0xaa   : > { %v1295_v27 = vsel %vm9090_vm7, %v1262_v24, %v1015_v25  ;;  %934 = vrot.lane.b32.xlu1 %v6622_v16, %s6356_s14  ;;  %v5753_v25 = vld [vmem:[%s6413_s29 + $0x13a] sm:$0xff] }
  0xab   : > { %932 = vrot.lane.b32.xlu0 %v6593_v50, %s6356_s14  ;;  %6169 = vmatmul.mubr.msk.bf16.vlgmr.msra.gmra.mrb[0].mxu0 %vm1324_vm8, %v1295_v27  ;;  %v5754_v27 = vld [vmem:[%s6413_s29 + $0x142] sm:$0xff] }
  0xac   : > { %v731_v30 = vpop.permute.xlu1 %730 }
  0xad   : > { %v729_v31 = vpop.permute.xlu0 %728  ;;  %v1101_v59 = vsel %vm1093_vm1, %v1056_v53, %v731_v30  ;;  %v655_v30 = vpack.c.bf16 %v5754_v27, %v5753_v25  ;;  %v5601_v27 = vld [vmem:[%s6413_s29 + $0x180] sm:$0xff] }
  0xae   : > { %982 = vrot.lane.b32.xlu1 %v605_v28, %s6357_s21  ;;  %v1099_v56 = vsel %vm1093_vm1, %v1053_v48, %v729_v31  ;;  %v5662_v48 = vld [vmem:[%s6413_s29 + $0x15a] sm:$0xff] }
  0xaf   : > { %980 = vrot.lane.b32.xlu0 %v460_v57, %s6357_s21 }
  0xb0   : > { %v779_v32 = vpop.permute.xlu1 %778 }
  0xb1   : > { %v777_v35 = vpop.permute.xlu0 %776 }
  0xb2   : > { %696 = vrot.lane.b32.xlu1 %v460_v57, %s6352_s6  ;;  %v1132_v19 = vsel %vm1126_vm2, %v1099_v56, %v777_v35 }
  0xb3   : > { %1028 = vrot.lane.b32.xlu0 %v508_v3, %s6358_s24 }
  0xb4   : > { %v827_v37 = vpop.permute.xlu1 %826 }
  0xb5   : > { %v825_v38 = vpop.permute.xlu0 %824 }
  0xb6   : > { %698 = vrot.lane.b32.xlu1 %v605_v28, %s6352_s6  ;;  %v1165_v60 = vsel %vm1159_vm3, %v1132_v19, %v825_v38  ;;  %v5629_v38 = vld [vmem:[%s6413_s29 + $0x151] sm:$0xff] }
  0xb7   : > { %1030 = vrot.lane.b32.xlu0 %v653_v36, %s6358_s24  ;;  %v464_v45 = vpack.c.bf16 %v5630_v39, %v5629_v38  ;;  %v5694_v19 = vld [vmem:[%s6413_s29 + $0x170] sm:$0xff] }
  0xb8   : > { %v875_v41 = vpop.permute.xlu1 %874 }
  0xb9   : > { %v873_v42 = vpop.permute.xlu0 %872 }
  0xba   : > { %746 = vrot.lane.b32.xlu1 %v653_v36, %s6351_s30  ;;  %v1198_v29 = vsel %vm1192_vm4, %v1165_v60, %v873_v42 }
  0xbb   : > { %744 = vrot.lane.b32.xlu0 %v508_v3, %s6351_s30  ;;  %v1134_v3 = vsel %vm1126_vm2, %v1101_v59, %v779_v32 }
  0xbc   : > { %v923_v47 = vpop.permute.xlu1 %922  ;;  %v1167_v7 = vsel %vm1159_vm3, %v1134_v3, %v827_v37  ;;  %v6704_v37 = vpack.c.bf16 %v5598_v34, %v5597_v33  ;;  %v5725_v3 = vld [vmem:[%s6413_s29 + $0x169] sm:$0xff]  ;;  %v5633_v33 = vld [vmem:[%s6413_s29 + $0x181] sm:$0xff] }
  0xbd   : > { %v921_v49 = vpop.permute.xlu0 %920  ;;  %v1200_v9 = vsel %vm1192_vm4, %v1167_v7, %v875_v41  ;;  %v5634_v34 = vld [vmem:[%s6413_s29 + $0x189] sm:$0xff] }
  0xbe   : > { %794 = vrot.lane.b32.xlu1 %v6648_v44, %s6353_s7  ;;  %v1231_v1 = vsel %vm9089_vm5, %v1198_v29, %v921_v49  ;;  %v1233_v12 = vsel %vm9089_vm5, %v1200_v9, %v923_v47  ;;  %v5661_v47 = vld [vmem:[%s6413_s29 + $0x152] sm:$0xff] }
  0xbf   : > { %792 = vrot.lane.b32.xlu0 %v6622_v16, %s6353_s7  ;;  %v512_v56 = vpack.c.bf16 %v5662_v48, %v5661_v47  ;;  %v5666_v47 = vld [vmem:[%s6413_s29 + $0x18a] sm:$0xff] }
  0xc0   : > { %v971_v57 = vpop.permute.xlu1 %970 }
  0xc1   : > { %v969_v58 = vpop.permute.xlu0 %968  ;;  %v1266_v14 = vsel %vm9091_vm6, %v1233_v12, %v971_v57  ;;  %v5693_v57 = vld [vmem:[%s6413_s29 + $0x168] sm:$0xff] }
  0xc2   : > { %842 = vrot.lane.b32.xlu1 %v462_v51, %s6354_s8  ;;  %v1264_v4 = vsel %vm9091_vm6, %v1231_v1, %v969_v58  ;;  %v6734_v1 = vpack.c.bf16 %v5694_v19, %v5693_v57 }
  0xc3   : > { %840 = vrot.lane.b32.xlu0 %v605_v28, %s6354_s8 }
  0xc4   : > { %v685_v2 = vpop.permute.xlu1 %684 }
  0xc5   : > { %v1017_v5 = vpop.permute.xlu0 %1016  ;;  %v1059_v41 = vsel %vm1044_vm0, %v6483_v43, %v685_v2 }
  0xc6   : > { %v1297_v20 = vsel %vm9090_vm7, %v1264_v4, %v1017_v5  ;;  %890 = vrot.lane.b32.xlu1 %v510_v62, %s6355_s9  ;;  %v5726_v4 = vld [vmem:[%s6413_s29 + $0x171] sm:$0xff] }
  0xc7   : > { %888 = vrot.lane.b32.xlu0 %v653_v36, %s6355_s9  ;;  %6172 = vmatprep.mubr.msk.bf16.mxu0 %vm1324_vm8, %v1297_v20  ;;  %v6746_v11 = vpack.c.bf16 %v5726_v4, %v5725_v3 }
  0xc8   : > { %v687_v13 = vpop.permute.xlu1 %686 }
  0xc9   : > { %v1019_v17 = vpop.permute.xlu0 %1018  ;;  %v1062_v46 = vsel %vm1044_vm0, %v6499_v52, %v687_v13 }
  0xca   : > { %v1299_v18 = vsel %vm9090_vm7, %v1266_v14, %v1019_v17  ;;  %938 = vrot.lane.b32.xlu1 %v6678_v8, %s6356_s14  ;;  %v5757_v17 = vld [vmem:[%s6413_s29 + $0x16a] sm:$0xff] }
  0xcb   : > { %936 = vrot.lane.b32.xlu0 %v6648_v44, %s6356_s14  ;;  %6173 = vmatmul.mubr.msk.bf16.gmra.mrb[4].mxu0 %vm1324_vm8, %v1299_v18  ;;  %v5758_v18 = vld [vmem:[%s6413_s29 + $0x172] sm:$0xff] }
  0xcc   : > { %v735_v22 = vpop.permute.xlu1 %734 }
  0xcd   : > { %v733_v23 = vpop.permute.xlu0 %732  ;;  %v1105_v54 = vsel %vm1093_vm1, %v1062_v46, %v735_v22  ;;  %v6760_v22 = vpack.c.bf16 %v5758_v18, %v5757_v17  ;;  %v5665_v46 = vld [vmem:[%s6413_s29 + $0x182] sm:$0xff] }
  0xce   : > { %986 = vrot.lane.b32.xlu1 %v607_v21, %s6357_s21  ;;  %v1103_v49 = vsel %vm1093_vm1, %v1059_v41, %v733_v23  ;;  %v6823_v19 = vpack.c.bf16 %v5666_v47, %v5665_v46 }
  0xcf   : > { %984 = vrot.lane.b32.xlu0 %v462_v51, %s6357_s21 }
  0xd0   : > { %v783_v24 = vpop.permute.xlu1 %782 }
  0xd1   : > { %v781_v28 = vpop.permute.xlu0 %780  ;;  %v1138_v60 = vsel %vm1126_vm2, %v1105_v54, %v783_v24  ;;  %v6359_v24 = vmov 0  }
  0xd2   : > { %700 = vrot.lane.b32.xlu1 %v462_v51, %s6352_s6  ;;  %v1136_v43 = vsel %vm1126_vm2, %v1103_v49, %v781_v28  ;;  %1639 = vst.msk [vmem:[#allocation2] sm:$0xf] %vm9087_vm9, %v6359_v24  ;;  %1640 = vst.msk [vmem:[#allocation2 + $0x4] sm:$0xf] %vm9087_vm9, %v6359_v24  ;;  %v5602_v28 = vld [vmem:[%s6413_s29 + $0x188] sm:$0xff] }
  0xd3   : > { %1032 = vrot.lane.b32.xlu0 %v510_v62, %s6358_s24  ;;  %1644 = vst.msk [vmem:[#allocation2 + $0xcc] sm:$0xf] %vm9087_vm9, %v6359_v24  ;;  %1645 = vst.msk [vmem:[#allocation2 + $0xd0] sm:$0xf] %vm9087_vm9, %v6359_v24  ;;  %vm2776_vm9 = vcmask 1042432  }
  0xd4   : > { %v831_v31 = vpop.permute.xlu1 %830  ;;  %1642 = vst.msk [vmem:[#allocation2 + $0x8] sm:$0x1] %vm1641_vm10, %v6359_v24  ;;  %1646 = vst.msk [vmem:[#allocation2 + $0xd4] sm:$0x1] %vm1641_vm10, %v6359_v24  ;;  %vm2326_vm10 = vsmask.f32 7440 }
  0xd5   : > { %v829_v32 = vpop.permute.xlu0 %828  ;;  %v1171_v63 = vsel %vm1159_vm3, %v1138_v60, %v831_v31  ;;  %vm6872_vm11 = vmor %vm2325_vm15, %vm2326_vm10  ;;  %vm9110_vm10 = vcmask 27648  }
  0xd6   : > { %702 = vrot.lane.b32.xlu1 %v607_v21, %s6352_s6  ;;  %v1169_v55 = vsel %vm1159_vm3, %v1136_v43, %v829_v32  ;;  %v6780_v32 = vpack.c.bf16 %v5602_v28, %v5601_v27  ;;  %vm6884_vm15 = vmor %vm2776_vm9, %vm2777_vm13  ;;  %vm1840_vm9 = vsmask.f32 4368  ;;  %vm9109_vm13 = vsmask.f32 7938 }
  0xd7   : > { %1034 = vrot.lane.b32.xlu0 %v655_v30, %s6358_s24 }
  0xd8   : > { %v879_v35 = vpop.permute.xlu1 %878 }
  0xd9   : > { %v877_v36 = vpop.permute.xlu0 %876  ;;  %v1204_v2 = vsel %vm1192_vm4, %v1171_v63, %v879_v35 }
  0xda   : > { %750 = vrot.lane.b32.xlu1 %v655_v30, %s6351_s30  ;;  %v1202_v52 = vsel %vm1192_vm4, %v1169_v55, %v877_v36  ;;  %v1650_v36 = vld [vmem:[#allocation2] sm:$0x1]  ;;  %v5697_v55 = vld [vmem:[%s6413_s29 + $0x198] sm:$0xff] }
  0xdb   : > { %748 = vrot.lane.b32.xlu0 %v510_v62, %s6351_s30  ;;  %v1651_v39 = vsel %vm6787_vm12, 0, %v1650_v36  ;;  %v1706_v48 = vld [vmem:[#allocation2 + $0x8] sm:$0x1] }
  0xdc   : > { %v927_v40 = vpop.permute.xlu1 %926  ;;  %1652 = vst [vmem:[#allocation2] sm:$0x1] %v1651_v39 }
  0xdd   : > { %v925_v42 = vpop.permute.xlu0 %924  ;;  %v1237_v5 = vsel %vm9089_vm5, %v1204_v2, %v927_v40 }
  0xde   : > { %798 = vrot.lane.b32.xlu1 %v6704_v37, %s6353_s7  ;;  %v1235_v58 = vsel %vm9089_vm5, %v1202_v52, %v925_v42  ;;  %v1656_v52 = vld [vmem:[#allocation2 + $0x18] sm:$0x1] }
  0xdf   : > { %796 = vrot.lane.b32.xlu0 %v6678_v8, %s6353_s7 }
  0xe0   : > { %v975_v51 = vpop.permute.xlu1 %974 }
  0xe1   : > { %v973_v53 = vpop.permute.xlu0 %972  ;;  %v1270_v20 = vsel %vm9091_vm6, %v1237_v5, %v975_v51  ;;  %v1707_v51 = vsel %vm6809_vm14, 0, %v1706_v48  ;;  %v1709_v5 = vld [vmem:[#allocation2 + $0x14] sm:$0x1]  ;;  %v5762_v48 = vld [vmem:[%s6413_s29 + $0x1a2] sm:$0xff] }
  0xe2   : > { %846 = vrot.lane.b32.xlu1 %v464_v45, %s6354_s8  ;;  %v1268_v62 = vsel %vm9091_vm6, %v1235_v58, %v973_v53  ;;  %1708 = vst [vmem:[#allocation2 + $0x8] sm:$0x1] %v1707_v51  ;;  %v1657_v58 = vsel %vm6787_vm12, 0, %v1656_v52 }
  0xe3   : > { %844 = vrot.lane.b32.xlu0 %v607_v21, %s6354_s8  ;;  %1658 = vst [vmem:[#allocation2 + $0x18] sm:$0x1] %v1657_v58 }
  0xe4   : > { %v689_v59 = vpop.permute.xlu1 %688 }
  0xe5   : > { %v1021_v29 = vpop.permute.xlu0 %1020  ;;  %v1065_v40 = vsel %vm1044_vm0, %v6519_v61, %v689_v59  ;;  %v1653_v59 = vld [vmem:[#allocation2 + $0xc] sm:$0x1] }
  0xe6   : > { %v1301_v0 = vsel %vm9090_vm7, %v1268_v62, %v1021_v29  ;;  %894 = vrot.lane.b32.xlu1 %v512_v56, %s6355_s9  ;;  %v1654_v62 = vsel %vm6787_vm12, 0, %v1653_v59  ;;  %v1712_v29 = vld [vmem:[#allocation2 + $0x20] sm:$0x1] }
  0xe7   : > { %892 = vrot.lane.b32.xlu0 %v655_v30, %s6355_s9  ;;  %6176 = vmatprep.mubr.msk.bf16.mxu0 %vm1324_vm8, %v1301_v0  ;;  %1655 = vst [vmem:[#allocation2 + $0xc] sm:$0x1] %v1654_v62  ;;  %v1713_v4 = vsel %vm6809_vm14, 0, %v1712_v29 }
  0xe8   : > { %v691_v7 = vpop.permute.xlu1 %690  ;;  %1714 = vst [vmem:[#allocation2 + $0x20] sm:$0x1] %v1713_v4 }
  0xe9   : > { %v1023_v9 = vpop.permute.xlu0 %1022  ;;  %v1068_v42 = vsel %vm1044_vm0, %v6535_v6, %v691_v7  ;;  %v6839_v7 = vld [vmem:[#allocation2] sm:$0xf] }
  0xea   : > { %v1303_v10 = vsel %vm9090_vm7, %v1270_v20, %v1023_v9  ;;  %942 = vrot.lane.b32.xlu1 %v6734_v1, %s6356_s14 }
  0xeb   : > { %940 = vrot.lane.b32.xlu0 %v6704_v37, %s6356_s14  ;;  %6177 = vmatmul.mubr.msk.bf16.gmra.mrb[8].mxu0 %vm1324_vm8, %v1303_v10  ;;  %v1710_v10 = vsel %vm6809_vm14, 0, %v1709_v5 }
  0xec   : > { %v739_v12 = vpop.permute.xlu1 %738  ;;  %1711 = vst [vmem:[#allocation2 + $0x14] sm:$0x1] %v1710_v10 }
  0xed   : > { %v737_v13 = vpop.permute.xlu0 %736  ;;  %v1109_v43 = vsel %vm1093_vm1, %v1068_v42, %v739_v12  ;;  %v2329_v12 = vshrl.u32 %v6839_v7, 16 }
  0xee   : > { %990 = vrot.lane.b32.xlu1 %v6746_v11, %s6357_s21  ;;  %v1107_v6 = vsel %vm1093_vm1, %v1065_v40, %v737_v13  ;;  %v2332_v13 = vshll.u32 %v6839_v7, 16 }
  0xef   : > { %988 = vrot.lane.b32.xlu0 %v464_v45, %s6357_s21  ;;  %v2331_v27 = vrot.slane %v2329_v12, 4 }
  0xf0   : > { %v6754_v14 = vpop.permute.xlu1 %786  ;;  %v2334_v28 = vrot.slane %v2332_v13, 5 }
  0xf1   : > { %v785_v21 = vpop.permute.xlu0 %784  ;;  %v1142_v63 = vsel %vm1126_vm2, %v1109_v43, %v6754_v14 }
  0xf2   : > { %704 = vrot.lane.b32.xlu1 %v464_v45, %s6352_s6  ;;  %v6801_v45 = vpack.c.bf16 %v5634_v34, %v5633_v33  ;;  %v1140_v53 = vsel %vm1126_vm2, %v1107_v6, %v785_v21  ;;  %v2309_v34 = vld [vmem:[#allocation2 + $0x8] sm:$0x1] }
  0xf3   : > { %1036 = vrot.lane.b32.xlu0 %v512_v56, %s6358_s24  ;;  %v2784_v62 = vrot.slane %v2309_v34, 5 }
  0xf4   : > { %v6762_v23 = vpop.permute.xlu1 %834 }
  0xf5   : > { %v833_v25 = vpop.permute.xlu0 %832  ;;  %v1175_v14 = vsel %vm1159_vm3, %v1142_v63, %v6762_v23  ;;  %v5730_v23 = vld [vmem:[%s6413_s29 + $0x1a1] sm:$0xff] }
  0xf6   : > { %706 = vrot.lane.b32.xlu1 %v6746_v11, %s6352_s6  ;;  %v1173_v57 = vsel %vm1159_vm3, %v1140_v53, %v833_v25  ;;  %v5729_v25 = vld [vmem:[%s6413_s29 + $0x199] sm:$0xff] }
  0xf7   : > { %1038 = vrot.lane.b32.xlu0 %v6760_v22, %s6358_s24  ;;  %v611_v46 = vpack.c.bf16 %v5730_v23, %v5729_v25  ;;  %v1662_v25 = vld [vmem:[#allocation2 + $0x30] sm:$0x1] }
  0xf8   : > { %v6774_v30 = vpop.permute.xlu1 %882 }
  0xf9   : > { %v881_v31 = vpop.permute.xlu0 %880  ;;  %v1208_v24 = vsel %vm1192_vm4, %v1175_v14, %v6774_v30 }
  0xfa   : > { %754 = vrot.lane.b32.xlu1 %v6760_v22, %s6351_s30  ;;  %v1206_v60 = vsel %vm1192_vm4, %v1173_v57, %v881_v31 }
  0xfb   : > { %752 = vrot.lane.b32.xlu0 %v512_v56, %s6351_s30  ;;  %v5698_v56 = vld [vmem:[%s6413_s29 + $0x1a0] sm:$0xff] }
  0xfc   : > { %v6791_v38 = vpop.permute.xlu1 %930  ;;  %v563_v3 = vpack.c.bf16 %v5698_v56, %v5697_v55  ;;  %v2712_v56 = vld [vmem:[#allocation2] sm:$0xe] }
  0xfd   : > { %v929_v41 = vpop.permute.xlu0 %928  ;;  %v1241_v31 = vsel %vm9089_vm5, %v1208_v24, %v6791_v38  ;;  %v5761_v38 = vld [vmem:[%s6413_s29 + $0x19a] sm:$0xff]  ;;  %v5820_v59 = vrot.slane %v2712_v56, 9 }
  0xfe   : > { %802 = vrot.lane.b32.xlu1 %v6780_v32, %s6353_s7  ;;  %v1239_v0 = vsel %vm9089_vm5, %v1206_v60, %v929_v41  ;;  %v2335_v41 = vor.u32 %v2334_v28, %v2331_v27  ;;  %v1663_v28 = vsel %vm6787_vm12, 0, %v1662_v25 }
  0xff   : > { %800 = vrot.lane.b32.xlu0 %v6734_v1, %s6353_s7  ;;  %1664 = vst [vmem:[#allocation2 + $0x30] sm:$0x1] %v1663_v28 }
 0x100   : > { %v979_v49 = vpop.permute.xlu1 %978 }
 0x101   : > { %v977_v54 = vpop.permute.xlu0 %976  ;;  %v1274_v30 = vsel %vm9091_vm6, %v1241_v31, %v979_v49  ;;  %v2336_v49 = vrot.slane %v2335_v41, 4 }
 0x102   : > { %850 = vrot.lane.b32.xlu1 %v6801_v45, %s6354_s8  ;;  %v1272_v20 = vsel %vm9091_vm6, %v1239_v0, %v977_v54 }
 0x103   : > { %848 = vrot.lane.b32.xlu0 %v6746_v11, %s6354_s8  ;;  %v6844_v11 = vld [vmem:[#allocation2 + $0x4] sm:$0xf] }
 0x104   : > { %v6835_v2 = vpop.permute.xlu1 %692  ;;  %v2338_v18 = vshll.u32 %v6844_v11, 16  ;;  %v2342_v21 = vshrl.u32 %v6844_v11, 16  ;;  %v2781_v55 = vrot.slane %v6844_v11, 5 }
 0x105   : > { %v1025_v9 = vpop.permute.xlu0 %1024 }
 0x106   : > { %v1305_v17 = vsel %vm9090_vm7, %v1272_v20, %v1025_v9  ;;  %898 = vrot.lane.b32.xlu1 %v6823_v19, %s6355_s9  ;;  %v2340_v36 = vrot.slane %v2338_v18, 5  ;;  %v2344_v39 = vrot.slane %v2342_v21, 4  ;;  %v2783_v60 = vrot.slane %v2781_v55, 4 }
 0x107   : > { %896 = vrot.lane.b32.xlu0 %v6760_v22, %s6355_s9  ;;  %6180 = vmatprep.mubr.msk.bf16.mxu0 %vm1324_vm8, %v1305_v17  ;;  %v2348_v22 = vshll.u32 %v2309_v34, 16 }
 0x108   : > { %v695_v33 = vpop.permute.xlu1 %694  ;;  %v2345_v47 = vor.u32 %v2344_v39, %v2340_v36  ;;  %v2341_v52 = vsel %vm6872_vm11, %v2336_v49, %v2340_v36  ;;  %v2785_v4 = vsel %vm6884_vm15, %v2783_v60, %v2784_v62  ;;  %v1715_v49 = vld [vmem:[#allocation2 + $0x2c] sm:$0x1] }
 0x109   : > { %v1027_v40 = vpop.permute.xlu0 %1026  ;;  %v2350_v54 = vrot.slane %v2348_v22, 5  ;;  %v1074_v14 = vsel %vm1044_vm0, %v6571_v26, %v695_v33 }
 0x10a   : > { %v1307_v42 = vsel %vm9090_vm7, %v1274_v30, %v1027_v40  ;;  %946 = vrot.lane.b32.xlu1 %v563_v3, %s6356_s14  ;;  %v2346_v51 = vrot.slane %v2345_v47, 4  ;;  %v2782_v3 = vsel %vm6884_vm15, %v5820_v59, %v2781_v55  ;;  %v1659_v40 = vld [vmem:[#allocation2 + $0x24] sm:$0x1] }
 0x10b   : > { %944 = vrot.lane.b32.xlu0 %v6780_v32, %s6356_s14  ;;  %6181 = vmatmul.mubr.msk.bf16.gmra.mrb[12].mxu0 %vm1324_vm8, %v1307_v42  ;;  %v659_v32 = vpack.c.bf16 %v5762_v48, %v5761_v38  ;;  %v5900_v20 = vcombine.low %v2782_v3, %v2785_v4  ;;  %v1660_v42 = vsel %vm6787_vm12, 0, %v1659_v40 }
 0x10c   : > { %v743_v6 = vpop.permute.xlu1 %742  ;;  %v2351_v58 = vsel %vm6872_vm11, %v2346_v51, %v2350_v54  ;;  %1661 = vst [vmem:[#allocation2 + $0x24] sm:$0x1] %v1660_v42  ;;  %v1716_v51 = vsel %vm6809_vm14, 0, %v1715_v49 }
 0x10d   : > { %v741_v43 = vpop.permute.xlu0 %740  ;;  %v1113_v23 = vsel %vm1093_vm1, %v1074_v14, %v743_v6  ;;  %1717 = vst [vmem:[#allocation2 + $0x2c] sm:$0x1] %v1716_v51 }
 0x10e   : > { %994 = vrot.lane.b32.xlu1 %v611_v46, %s6357_s21  ;;  %v1718_v46 = vld [vmem:[#allocation2 + $0x38] sm:$0x1] }
 0x10f   : > { %992 = vrot.lane.b32.xlu0 %v6801_v45, %s6357_s21  ;;  %v5884_v45 = vcombine.low %v2341_v52, %v2351_v58  ;;  %v1719_v48 = vsel %vm6809_vm14, 0, %v1718_v46 }
 0x110   : > { %v791_v57 = vpop.permute.xlu1 %790  ;;  %1720 = vst [vmem:[#allocation2 + $0x38] sm:$0x1] %v1719_v48 }
 0x111   : > { %v789_v29 = vpop.permute.xlu0 %788  ;;  %v1146_v31 = vsel %vm1126_vm2, %v1113_v23, %v791_v57 }
 0x112   : > { %1042 = vrot.lane.b32.xlu1 %v659_v32, %s6358_s24 }
 0x113   : > { %1040 = vrot.lane.b32.xlu0 %v6823_v19, %s6358_s24  ;;  %v1071_v19 = vsel %vm1044_vm0, %v6555_v15, %v6835_v2 }
 0x114   : > { %v839_v0 = vpop.permute.xlu1 %838  ;;  %v1111_v17 = vsel %vm1093_vm1, %v1071_v19, %v741_v43 }
 0x115   : > { %v837_v5 = vpop.permute.xlu0 %836  ;;  %v1144_v21 = vsel %vm1126_vm2, %v1111_v17, %v789_v29  ;;  %v1179_v36 = vsel %vm1159_vm3, %v1146_v31, %v839_v0 }
 0x116   : > { %v1177_v27 = vsel %vm1159_vm3, %v1144_v21, %v837_v5 }
 0x117   : > { %4220 = vrot.lane.b32.xlu0 %v5884_v45, %s6352_s6 }
 0x118   : > { %v887_v9 = vpop.permute.xlu1 %886 }
 0x119   : > { %v885_v10 = vpop.permute.xlu0 %884  ;;  %v1212_v30 = vsel %vm1192_vm4, %v1179_v36, %v887_v9  ;;  %v1721_v36 = vld [vmem:[#allocation2 + $0x44] sm:$0x1] }
 0x11a   : > { %v1210_v15 = vsel %vm1192_vm4, %v1177_v27, %v885_v10 }
 0x11b   : > { %4300 = vrot.lane.b32.xlu0 %v5900_v20, %s6351_s30  ;;  %v1668_v20 = vld [vmem:[#allocation2 + $0x48] sm:$0x1] }
 0x11c   : > { %v935_v12 = vpop.permute.xlu1 %934  ;;  %v1669_v10 = vsel %vm6787_vm12, 0, %v1668_v20 }
 0x11d   : > { %v933_v13 = vpop.permute.xlu0 %932  ;;  %v1245_v41 = vsel %vm9089_vm5, %v1212_v30, %v935_v12  ;;  %1670 = vst [vmem:[#allocation2 + $0x48] sm:$0x1] %v1669_v10  ;;  %v1671_v10 = vld [vmem:[#allocation2 + $0x54] sm:$0x1] }
 0x11e   : > { %v1243_v2 = vsel %vm9089_vm5, %v1210_v15, %v933_v13 }
 0x120   : > { %v983_v18 = vpop.permute.xlu1 %982 }
 0x121   : > { %v981_v24 = vpop.permute.xlu0 %980  ;;  %v1278_v47 = vsel %vm9091_vm6, %v1245_v41, %v983_v18 }
 0x122   : > { %v1276_v33 = vsel %vm9091_vm6, %v1243_v2, %v981_v24  ;;  %v1665_v2 = vld [vmem:[#allocation2 + $0x3c] sm:$0x1] }
 0x123   : > { %v1666_v31 = vsel %vm6787_vm12, 0, %v1665_v2 }
 0x124   : > { %v697_v26 = vpop.permute.xlu1 %696  ;;  %1667 = vst [vmem:[#allocation2 + $0x3c] sm:$0x1] %v1666_v31 }
 0x125   : > { %v1029_v34 = vpop.permute.xlu0 %1028  ;;  %v1077_v59 = vsel %vm1044_vm0, %v6593_v50, %v697_v26 }
 0x126   : > { %v1309_v39 = vsel %vm9090_vm7, %v1276_v33, %v1029_v34  ;;  %v1724_v33 = vld [vmem:[#allocation2 + $0x50] sm:$0x1] }
 0x127   : > { %6184 = vmatprep.mubr.msk.bf16.mxu0 %vm1324_vm8, %v1309_v39  ;;  %v1725_v34 = vsel %vm6809_vm14, 0, %v1724_v33  ;;  %v1722_v39 = vsel %vm6809_vm14, 0, %v1721_v36 }
 0x128   : > { %v699_v22 = vpop.permute.xlu1 %698  ;;  %1726 = vst [vmem:[#allocation2 + $0x50] sm:$0x1] %v1725_v34  ;;  %1723 = vst [vmem:[#allocation2 + $0x44] sm:$0x1] %v1722_v39 }
 0x129   : > { %v1031_v38 = vpop.permute.xlu0 %1030  ;;  %v1080_v62 = vsel %vm1044_vm0, %v6622_v16, %v699_v22 }
 0x12a   : > { %v1311_v6 = vsel %vm9090_vm7, %v1278_v47, %v1031_v38 }
 0x12b   : > { %6185 = vmatmul.mubr.msk.bf16.gmra.mrb[16].mxu0 %vm1324_vm8, %v1311_v6 }
 0x12c   : > { %v747_v43 = vpop.permute.xlu1 %746 }
 0x12d   : > { %v745_v54 = vpop.permute.xlu0 %744  ;;  %v1117_v0 = vsel %vm1093_vm1, %v1080_v62, %v747_v43  ;;  %v1674_v62 = vld [vmem:[#allocation2 + $0x60] sm:$0x1] }
 0x12e   : > { %v1115_v45 = vsel %vm1093_vm1, %v1077_v59, %v745_v54 }
 0x130   : > { %v795_v55 = vpop.permute.xlu1 %794 }
 0x131   : > { %v793_v32 = vpop.permute.xlu0 %792  ;;  %v1150_v50 = vsel %vm1126_vm2, %v1117_v0, %v795_v55 }
 0x132   : > { %v1148_v4 = vsel %vm1126_vm2, %v1115_v45, %v793_v32  ;;  %v1675_v45 = vsel %vm6787_vm12, 0, %v1674_v62 }
 0x133   : > { %1676 = vst [vmem:[#allocation2 + $0x60] sm:$0x1] %v1675_v45 }
 0x134   : > { %v843_v56 = vpop.permute.xlu1 %842 }
 0x135   : > { %v841_v52 = vpop.permute.xlu0 %840  ;;  %v1183_v17 = vsel %vm1159_vm3, %v1150_v50, %v843_v56 }
 0x136   : > { %v1181_v9 = vsel %vm1159_vm3, %v1148_v4, %v841_v52 }
 0x138   : > { %v891_v57 = vpop.permute.xlu1 %890 }
 0x139   : > { %v889_v58 = vpop.permute.xlu0 %888  ;;  %v1216_v21 = vsel %vm1192_vm4, %v1183_v17, %v891_v57 }
 0x13a   : > { %v1214_v12 = vsel %vm1192_vm4, %v1181_v9, %v889_v58 }
 0x13c   : > { %v939_v60 = vpop.permute.xlu1 %938 }
 0x13d   : > { %v937_v29 = vpop.permute.xlu0 %936  ;;  %v1249_v24 = vsel %vm9089_vm5, %v1216_v21, %v939_v60 }
 0x13e   : > { %v1247_v16 = vsel %vm9089_vm5, %v1214_v12, %v937_v29  ;;  %v1672_v12 = vsel %vm6787_vm12, 0, %v1671_v10  ;;  %v2172_v10 = vld [vmem:[#allocation2 + $0x18] sm:$0xf] }
 0x13f   : > { %1673 = vst [vmem:[#allocation2 + $0x54] sm:$0x1] %v1672_v12 }
 0x140   : > { %v987_v3 = vpop.permute.xlu1 %986 }
 0x141   : > { %v985_v5 = vpop.permute.xlu0 %984  ;;  %v1282_v23 = vsel %vm9091_vm6, %v1249_v24, %v987_v3 }
 0x142   : > { %v1280_v13 = vsel %vm9091_vm6, %v1247_v16, %v985_v5  ;;  %v1730_v16 = vld [vmem:[#allocation2 + $0x68] sm:$0x1] }
 0x144   : > { %v701_v19 = vpop.permute.xlu1 %700 }
 0x145   : > { %v1033_v14 = vpop.permute.xlu0 %1032  ;;  %v1083_v47 = vsel %vm1044_vm0, %v6648_v44, %v701_v19  ;;  %v1731_v19 = vsel %vm6809_vm14, 0, %v1730_v16 }
 0x146   : > { %v1313_v18 = vsel %vm9090_vm7, %v1280_v13, %v1033_v14  ;;  %v1727_v13 = vld [vmem:[#allocation2 + $0x5c] sm:$0x1]  ;;  %1732 = vst [vmem:[#allocation2 + $0x68] sm:$0x1] %v1731_v19 }
 0x147   : > { %6188 = vmatprep.mubr.msk.bf16.mxu0 %vm1324_vm8, %v1313_v18  ;;  %v1728_v14 = vsel %vm6809_vm14, 0, %v1727_v13  ;;  %v2165_v13 = vld [vmem:[#allocation2 + $0xc] sm:$0xf] }
 0x148   : > { %v703_v25 = vpop.permute.xlu1 %702  ;;  %1729 = vst [vmem:[#allocation2 + $0x5c] sm:$0x1] %v1728_v14 }
 0x149   : > { %v1035_v27 = vpop.permute.xlu0 %1034  ;;  %v1086_v48 = vsel %vm1044_vm0, %v6678_v8, %v703_v25 }
 0x14a   : > { %v1315_v28 = vsel %vm9090_vm7, %v1282_v23, %v1035_v27 }
 0x14b   : > { %6189 = vmatmul.mubr.msk.bf16.gmra.mrb[20].mxu0 %vm1324_vm8, %v1315_v28 }
 0x14c   : > { %v751_v15 = vpop.permute.xlu1 %750 }
 0x14d   : > { %v749_v26 = vpop.permute.xlu0 %748  ;;  %v1121_v51 = vsel %vm1093_vm1, %v1086_v48, %v751_v15 }
 0x14e   : > { %v1119_v49 = vsel %vm1093_vm1, %v1083_v47, %v749_v26  ;;  %v6990_v26 = vld [vmem:[%s9082_s2] ss:$0 sm:$0xff] }
 0x150   : > { %v799_v30 = vpop.permute.xlu1 %798 }
 0x151   : > { %v797_v40 = vpop.permute.xlu0 %796  ;;  %v1154_v56 = vsel %vm1126_vm2, %v1121_v51, %v799_v30 }
 0x152   : > { %v1152_v54 = vsel %vm1126_vm2, %v1119_v49, %v797_v40 }
 0x154   : > { %v847_v41 = vpop.permute.xlu1 %846 }
 0x155   : > { %v845_v22 = vpop.permute.xlu0 %844  ;;  %v1187_v59 = vsel %vm1159_vm3, %v1154_v56, %v847_v41 }
 0x156   : > { %v1185_v32 = vsel %vm1159_vm3, %v1152_v54, %v845_v22 }
 0x158   : > { %v895_v42 = vpop.permute.xlu1 %894 }
 0x159   : > { %v893_v46 = vpop.permute.xlu0 %892  ;;  %v1220_v29 = vsel %vm1192_vm4, %v1187_v59, %v895_v42 }
 0x15a   : > { %v1218_v52 = vsel %vm1192_vm4, %v1185_v32, %v893_v46 }
 0x15c   : > { %v943_v38 = vpop.permute.xlu1 %942 }
 0x15d   : > { %v941_v6 = vpop.permute.xlu0 %940  ;;  %v1253_v0 = vsel %vm9089_vm5, %v1220_v29, %v943_v38 }
 0x15e   : > { %v1251_v44 = vsel %vm9089_vm5, %v1218_v52, %v941_v6 }
 0x160   : > { %v991_v43 = vpop.permute.xlu1 %990 }
 0x161   : > { %v989_v55 = vpop.permute.xlu0 %988  ;;  %v1286_v4 = vsel %vm9091_vm6, %v1253_v0, %v991_v43 }
 0x162   : > { %v1284_v8 = vsel %vm9091_vm6, %v1251_v44, %v989_v55 }
 0x164   : > { %v705_v57 = vpop.permute.xlu1 %704 }
 0x165   : > { %v1037_v58 = vpop.permute.xlu0 %1036  ;;  %v1089_v28 = vsel %vm1044_vm0, %v6704_v37, %v705_v57 }
 0x166   : > { %v1317_v60 = vsel %vm9090_vm7, %v1284_v8, %v1037_v58 }
 0x167   : > { %6192 = vmatprep.mubr.msk.bf16.mxu0 %vm1324_vm8, %v1317_v60 }
 0x168   : > { %v707_v3 = vpop.permute.xlu1 %706 }
 0x169   : > { %v1039_v5 = vpop.permute.xlu0 %1038  ;;  %v1092_v25 = vsel %vm1044_vm0, %v6734_v1, %v707_v3 }
 0x16a   : > { %v1319_v20 = vsel %vm9090_vm7, %v1286_v4, %v1039_v5 }
 0x16b   : > { %6193 = vmatmul.mubr.msk.bf16.gmra.mrb[24].mxu0 %vm1324_vm8, %v1319_v20 }
 0x16c   : > { %v755_v9 = vpop.permute.xlu1 %754 }
 0x16d   : > { %v753_v50 = vpop.permute.xlu0 %752  ;;  %v1125_v15 = vsel %vm1093_vm1, %v1092_v25, %v755_v9  ;;  %v9111_v9 = vmov 0 }
 0x16e   : > { %v1123_v33 = vsel %vm1093_vm1, %v1089_v28, %v753_v50 }
 0x170   : > { %v803_v17 = vpop.permute.xlu1 %802 }
 0x171   : > { %v801_v18 = vpop.permute.xlu0 %800  ;;  %v1158_v34 = vsel %vm1126_vm2, %v1125_v15, %v803_v17 }
 0x172   : > { %v1156_v41 = vsel %vm1126_vm2, %v1123_v33, %v801_v18 }
 0x174   : > { %v851_v21 = vpop.permute.xlu1 %850 }
 0x175   : > { %v849_v24 = vpop.permute.xlu0 %848  ;;  %v1191_v22 = vsel %vm1159_vm3, %v1158_v34, %v851_v21 }
 0x176   : > { %v1189_v48 = vsel %vm1159_vm3, %v1156_v41, %v849_v24  ;;  %v2176_v24 = vld [vmem:[#allocation2 + $0x20] sm:$0x1] }
 0x178   : > { %v899_v23 = vpop.permute.xlu1 %898 }
 0x179   : > { %v897_v27 = vpop.permute.xlu0 %896  ;;  %v1224_v6 = vsel %vm1192_vm4, %v1191_v22, %v899_v23 }
 0x17a   : > { %v1222_v43 = vsel %vm1192_vm4, %v1189_v48, %v897_v27 }
 0x17c   : > { %v947_v2 = vpop.permute.xlu1 %946 }
 0x17d   : > { %v945_v31 = vpop.permute.xlu0 %944  ;;  %v1257_v54 = vsel %vm9089_vm5, %v1224_v6, %v947_v2 }
 0x17e   : > { %v6170_v36 = vpop.f32.mrb[0].mxu0  ;;  %v1255_v56 = vsel %vm9089_vm5, %v1222_v43, %v945_v31  ;;  %vm7012_vm5 = vmand %vm9110_vm10, %vm9109_vm13  ;;  %v2169_v31 = vld [vmem:[#allocation2 + $0x14] sm:$0x1] }
 0x17f   : > { %v1472_v1 = vadd.f32 %v6170_v36, %v6990_v26  ;;  %v1463_v39 = vpop.f32.mrb[1].mxu0  ;;  %v9112_v9 = vsel %vm7012_vm5, 4294967295, %v9111_v9 }
 0x180   : > { %v1464_v30 = vadd.f32 %v6990_v26, %v1463_v39  ;;  %v6171_v37 = vpop.f32.mrb[2].mxu0  ;;  %v995_v40 = vpop.permute.xlu1 %994  ;;  %9113 = vst [vmem:[#allocation3_spill] sm:$0xff] %v9112_v9 }
 0x181   : > { %v1592_v42 = vmax.f32 %v1472_v1, 0.0  ;;  %v1475_v46 = vadd.f32 %v6171_v37, %v6990_v26  ;;  %v993_v47 = vpop.permute.xlu0 %992  ;;  %v1466_v38 = vpop.f32.mrb[3].mxu0  ;;  %v1290_v44 = vsel %vm9091_vm6, %v1257_v54, %v995_v40 }
 0x182   : > { %v1590_v49 = vmax.f32 %v1464_v30, 0.0  ;;  %v1467_v51 = vadd.f32 %v6990_v26, %v1466_v38  ;;  %v1288_v60 = vsel %vm9091_vm6, %v1255_v56, %v993_v47 }
 0x183   : > { %v6074_v55 = vpack.c.bf16 %v1592_v42, %v1592_v42  ;;  %v1593_v32 = vmax.f32 %v1475_v46, 0.0 }
 0x184   : > { %v6072_v52 = vpack.c.bf16 %v1590_v49, %v1590_v49  ;;  %v1591_v57 = vmax.f32 %v1467_v51, 0.0  ;;  %v1043_v8 = vpop.permute.xlu1 %1042 }
 0x185   : > { %v1860_v58 = vshrl.u32 %v6074_v55, 16  ;;  %v6075_v59 = vpack.c.bf16 %v1593_v32, %v1593_v32  ;;  %v1323_v62 = vsel %vm9090_vm7, %v1290_v44, %v1043_v8  ;;  %v1041_v29 = vpop.permute.xlu0 %1040  ;;  %v1863_v5 = vshll.u32 %v6074_v55, 16 }
 0x186   : > { %v1843_v45 = vshrl.u32 %v6072_v52, 16  ;;  %v6073_v0 = vpack.c.bf16 %v1591_v57, %v1591_v57  ;;  %v1321_v3 = vsel %vm9090_vm7, %v1288_v60, %v1041_v29  ;;  %v1846_v12 = vshll.u32 %v6072_v52, 16 }
 0x187   : > { %v1862_v4 = vrot.slane %v1860_v58, 7  ;;  %v1868_v20 = vshrl.u32 %v6075_v59, 16  ;;  %6196 = vmatprep.mubr.msk.bf16.mxu0 %vm1324_vm8, %v1321_v3  ;;  %v1871_v17 = vshll.u32 %v6075_v59, 16  ;;  %vm9114_vm7 = vsmask.f32 256 }
 0x188   : > { %v1845_v50 = vrot.slane %v1843_v45, 7  ;;  %v1851_v16 = vshrl.u32 %v6073_v0, 16  ;;  %6197 = vmatmul.mubr.msk.bf16.gmra.mrb[28].mxu0 %vm1324_vm8, %v1323_v62  ;;  %vm7018_vm6 = vmor %vm9114_vm7, %vm1840_vm9  ;;  %v1854_v23 = vshll.u32 %v6073_v0, 16 }
 0x189   : > { %v1865_v19 = vor.u32 %v1863_v5, %v1862_v4  ;;  %v1870_v14 = vrot.slane %v1868_v20, 7  ;;  %v1866_v27 = vrot.slane %v1862_v4, 4  ;;  %vm9117_vm7 = vmmov %vm9110_vm10 }
 0x18a   : > { %v1848_v18 = vor.u32 %v1846_v12, %v1845_v50  ;;  %v1853_v25 = vrot.slane %v1851_v16, 7  ;;  %v1849_v33 = vrot.slane %v1845_v50, 4  ;;  %vm9118_vm9 = vmmov %vm9117_vm7 }
 0x18b   : > { %v2173_v28 = vsel %vm7012_vm5, %v1865_v19, %v2172_v10  ;;  %v1873_v15 = vor.u32 %v1871_v17, %v1870_v14  ;;  %v1875_v2 = vrot.slane %v1870_v14, 4  ;;  %vm9119_vm13 = vmmov %vm9117_vm7 }
 0x18c   : > { %2174 = vst [vmem:[#allocation2 + $0x18] sm:$0xf] %v2173_v28  ;;  %v2166_v34 = vsel %vm7012_vm5, %v1848_v18, %v2165_v13  ;;  %v1856_v36 = vor.u32 %v1854_v23, %v1853_v25  ;;  %v1858_v1 = vrot.slane %v1853_v25, 4  ;;  %vm9120_vm10 = vmmov %vm9117_vm7 }
 0x18d   : > { %2167 = vst [vmem:[#allocation2 + $0xc] sm:$0xf] %v2166_v34  ;;  %v1874_v39 = vsel %vm7018_vm6, %v1866_v27, %v1873_v15  ;;  %v2177_v30 = vsel %vm6787_vm12, %v1875_v2, %v2176_v24 }
 0x18e   : > { %2175 = vst.msk [vmem:[#allocation2 + $0x1c] sm:$0xf] %vm9117_vm7, %v1874_v39  ;;  %2178 = vst [vmem:[#allocation2 + $0x20] sm:$0x1] %v2177_v30  ;;  %v1857_v37 = vsel %vm7018_vm6, %v1849_v33, %v1856_v36  ;;  %v2170_v40 = vsel %vm6787_vm12, %v1858_v1, %v2169_v31 }
 0x18f   : > { %2168 = vst.msk [vmem:[#allocation2 + $0x10] sm:$0xf] %vm9118_vm9, %v1857_v37  ;;  %2171 = vst [vmem:[#allocation2 + $0x14] sm:$0x1] %v2170_v40 }
 0x190   : > { %vm9121_vm9 = vmmov %vm9117_vm7 }
 0x193   : > { %v3500_v41 = vld [vmem:[#allocation2 + $0x18] sm:$0xf] }
 0x194   : > { %v2893_v22 = vld [vmem:[#allocation2 + $0x18] sm:$0xf]  ;;  %v3549_v42 = vshrl.u32 %v3500_v41, 16  ;;  %v3552_v46 = vshll.u32 %v3500_v41, 16  ;;  %v2891_v48 = vld [vmem:[#allocation2 + $0xc] sm:$0xf] }
 0x195   : > { %v2964_v47 = vshrl.u32 %v2893_v22, 16  ;;  %v2967_v38 = vshll.u32 %v2893_v22, 16  ;;  %v7036_v6 = vld [vmem:[#allocation2 + $0x1c] sm:$0xf]  ;;  %v2940_v51 = vshrl.u32 %v2891_v48, 16  ;;  %v2943_v43 = vshll.u32 %v2891_v48, 16 }
 0x196   : > { %v7038_v49 = vld [vmem:[#allocation2 + $0x1c] sm:$0xf]  ;;  %v7040_v54 = vrot.slane %v3549_v42, 4  ;;  %v7042_v55 = vrot.slane %v3552_v46, 5  ;;  %v5964_v32 = vcombine.low %v3500_v41, %v7036_v6  ;;  %v7045_v56 = vld [vmem:[#allocation2 + $0x10] sm:$0xf] }
 0x197   : > { %v3324_v52 = vld [vmem:[#allocation2 + $0x18] sm:$0xe]  ;;  %v7047_v44 = vrot.slane %v2964_v47, 4  ;;  %v7049_v57 = vrot.slane %v2967_v38, 5  ;;  %v5917_v8 = vcombine.low %v2893_v22, %v7038_v49  ;;  %v7052_v58 = vld [vmem:[#allocation2 + $0x20] sm:$0x1]  ;;  %v5916_v60 = vcombine.low %v2891_v48, %v7045_v56 }
 0x198   : > { %4652 = vrot.lane.b32.xlu0 %v5964_v32, %s6356_s14  ;;  %v3562_v59 = vshrl.u32 %v7036_v6, 16  ;;  %v7057_v62 = vrot.slane %v2940_v51, 4  ;;  %v7059_v29 = vrot.slane %v2943_v43, 5  ;;  %v7061_v45 = vld [vmem:[#allocation2 + $0x20] sm:$0x1]  ;;  %v5837_v0 = vrot.slane %v3324_v52, 9 }
 0x199   : > { %4398 = vrot.lane.b32.xlu1 %v5917_v8, %s6353_s7  ;;  %v3396_v3 = vrot.slane %v7038_v49, 5  ;;  %v3399_v4 = vrot.slane %v7052_v58, 5  ;;  %v3932_v5 = vld [vmem:[#allocation2 + $0x18] sm:$0xe]  ;;  %v3998_v20 = vrot.slane %v7036_v6, 5  ;;  %v4001_v50 = vrot.slane %v7061_v45, 5 }
 0x19a   : > { %v5852_v10 = vrot.slane %v3932_v5, 9  ;;  %v7068_v12 = vld [vmem:[#allocation2 + $0x10] sm:$0xf]  ;;  %v7070_v16 = vld [vmem:[#allocation2 + $0x14] sm:$0x1]  ;;  %v3555_v19 = vor.u32 %v7042_v55, %v7040_v54  ;;  %v2970_v13 = vor.u32 %v7049_v57, %v7047_v44  ;;  %v2946_v31 = vor.u32 %v7059_v29, %v7057_v62 }
 0x19b   : > { %v3397_v14 = vsel %vm6884_vm15, %v5837_v0, %v3396_v3  ;;  %v3398_v17 = vrot.slane %v3396_v3, 4  ;;  %v4000_v18 = vrot.slane %v3998_v20, 4  ;;  %v2713_v24 = vld [vmem:[#allocation2 + $0xc] sm:$0xe]  ;;  %v2788_v25 = vrot.slane %v7068_v12, 5 }
 0x19c   : > { %4396 = vrot.lane.b32.xlu0 %v5916_v60, %s6353_s7  ;;  %v3999_v23 = vsel %vm6884_vm15, %v5852_v10, %v3998_v20  ;;  %v5821_v27 = vrot.slane %v2713_v24, 9  ;;  %v2791_v28 = vrot.slane %v7070_v16, 5  ;;  %v7083_v15 = vld [vmem:[#allocation2 + $0x1c] sm:$0xf]  ;;  %v7085_v2 = vld [vmem:[#allocation2 + $0x20] sm:$0x1] }
 0x19d   : > { %v3400_v33 = vsel %vm6884_vm15, %v3398_v17, %v3399_v4  ;;  %v4002_v34 = vsel %vm6884_vm15, %v4000_v18, %v4001_v50  ;;  %v2790_v36 = vrot.slane %v2788_v25, 4  ;;  %v2714_v1 = vld [vmem:[#allocation2 + $0x18] sm:$0xe]  ;;  %v2795_v39 = vrot.slane %v7083_v15, 5  ;;  %v3323_v51 = vld [vmem:[#allocation2 + $0xc] sm:$0xe] }
 0x19e   : > { %v5949_v30 = vcombine.low %v3397_v14, %v3400_v33  ;;  %v6174_v37 = vpop.f32.mrb[4].mxu0  ;;  %v5996_v40 = vcombine.low %v3999_v23, %v4002_v34  ;;  %v2789_v41 = vsel %vm6884_vm15, %v5821_v27, %v2788_v25  ;;  %v5822_v22 = vrot.slane %v2714_v1, 9  ;;  %v7106_v8 = vld [vmem:[#allocation2 + $0x14] sm:$0x1] }
 0x19f   : > { %v1488_v42 = vadd.f32 %v6174_v37, %v6990_v26  ;;  %v1479_v46 = vpop.f32.mrb[5].mxu0  ;;  %v2792_v47 = vsel %vm6884_vm15, %v2790_v36, %v2791_v28  ;;  %v2797_v38 = vrot.slane %v2795_v39, 4  ;;  %v2798_v48 = vrot.slane %v7085_v2, 5 }
 0x1a0   : > { %v2977_v43 = vshrl.u32 %v7038_v49, 16  ;;  %4558 = vrot.lane.b32.xlu1 %v5949_v30, %s6355_s9  ;;  %v1480_v54 = vadd.f32 %v6990_v26, %v1479_v46  ;;  %v6175_v55 = vpop.f32.mrb[6].mxu0  ;;  %4812 = vrot.lane.b32.xlu0 %v5996_v40, %s6358_s24  ;;  %v5901_v32 = vcombine.low %v2789_v41, %v2792_v47  ;;  %v2796_v52 = vsel %vm6884_vm15, %v5822_v22, %v2795_v39 }
 0x1a1   : > { %v1596_v60 = vmax.f32 %v1488_v42, 0.0  ;;  %v1491_v0 = vadd.f32 %v6175_v55, %v6990_v26  ;;  %v1482_v3 = vpop.f32.mrb[7].mxu0  ;;  %v2799_v4 = vsel %vm6884_vm15, %v2797_v38, %v2798_v48  ;;  %v3389_v5 = vrot.slane %v7045_v56, 5  ;;  %v2186_v38 = vld [vmem:[#allocation2 + $0x30] sm:$0xf] }
 0x1a2   : > { %v1594_v20 = vmax.f32 %v1480_v54, 0.0  ;;  %v1483_v10 = vadd.f32 %v6990_v26, %v1482_v3  ;;  %v5902_v50 = vcombine.low %v2796_v52, %v2799_v4  ;;  %v5836_v14 = vrot.slane %v3323_v51, 9  ;;  %v2179_v52 = vld [vmem:[#allocation2 + $0x24] sm:$0xf] }
 0x1a3   : > { %v6078_v17 = vpack.c.bf16 %v1596_v60, %v1596_v60  ;;  %v1597_v18 = vmax.f32 %v1491_v0, 0.0  ;;  %v3391_v24 = vrot.slane %v3389_v5, 4  ;;  %v3392_v25 = vrot.slane %v7106_v8, 5 }
 0x1a4   : > { %v6076_v23 = vpack.c.bf16 %v1594_v20, %v1594_v20  ;;  %v1595_v27 = vmax.f32 %v1483_v10, 0.0  ;;  %4302 = vrot.lane.b32.xlu1 %v5901_v32, %s6351_s30  ;;  %4304 = vrot.lane.b32.xlu0 %v5902_v50, %s6351_s30  ;;  %v3390_v28 = vsel %vm6884_vm15, %v5836_v14, %v3389_v5  ;;  %v3558_v33 = vshll.u32 %v7036_v6, 16  ;;  %v2190_v5 = vld [vmem:[#allocation2 + $0x38] sm:$0x1] }
 0x1a5   : > { %v1894_v34 = vshrl.u32 %v6078_v17, 16  ;;  %v6079_v36 = vpack.c.bf16 %v1597_v18, %v1597_v18  ;;  %v3393_v1 = vsel %vm6884_vm15, %v3391_v24, %v3392_v25  ;;  %v7121_v39 = vrot.slane %v3555_v19, 4  ;;  %v2183_v18 = vld [vmem:[#allocation2 + $0x2c] sm:$0x1] }
 0x1a6   : > { %v1897_v30 = vshll.u32 %v6078_v17, 16  ;;  %v1877_v37 = vshrl.u32 %v6076_v23, 16  ;;  %v6077_v40 = vpack.c.bf16 %v1595_v27, %v1595_v27  ;;  %v5948_v41 = vcombine.low %v3390_v28, %v3393_v1 }
 0x1a7   : > { %v1896_v22 = vrot.slane %v1894_v34, 7  ;;  %v1880_v42 = vshll.u32 %v6076_v23, 16  ;;  %v1902_v46 = vshrl.u32 %v6079_v36, 16  ;;  %v3560_v47 = vrot.slane %v3558_v33, 5 }
 0x1a8   : > { %v1879_v48 = vrot.slane %v1877_v37, 7  ;;  %v1905_v51 = vshll.u32 %v6079_v36, 16  ;;  %v1885_v54 = vshrl.u32 %v6077_v40, 16  ;;  %4556 = vrot.lane.b32.xlu0 %v5948_v41, %s6355_s9  ;;  %v3564_v55 = vrot.slane %v3562_v59, 4  ;;  %v2281_v37 = vld [vmem:[#allocation2 + $0x18] sm:$0xf] }
 0x1a9   : > { %v1899_v32 = vor.u32 %v1897_v30, %v1896_v22  ;;  %v1900_v19 = vrot.slane %v1896_v22, 4  ;;  %v1904_v60 = vrot.slane %v1902_v46, 7  ;;  %v1888_v0 = vshll.u32 %v6077_v40, 16 }
 0x1aa   : > { %v1882_v3 = vor.u32 %v1880_v42, %v1879_v48  ;;  %v1883_v4 = vrot.slane %v1879_v48, 4  ;;  %v1887_v20 = vrot.slane %v1885_v54, 7  ;;  %v3565_v10 = vor.u32 %v3564_v55, %v3560_v47 }
 0x1ab   : > { %v2187_v50 = vsel %vm7012_vm5, %v1899_v32, %v2186_v38  ;;  %v1907_v14 = vor.u32 %v1905_v51, %v1904_v60  ;;  %v1909_v17 = vrot.slane %v1904_v60, 4  ;;  %v3568_v24 = vshll.u32 %v7061_v45, 16 }
 0x1ac   : > { %2188 = vst [vmem:[#allocation2 + $0x30] sm:$0xf] %v2187_v50  ;;  %v2180_v6 = vsel %vm7012_vm5, %v1882_v3, %v2179_v52  ;;  %v1890_v59 = vor.u32 %v1888_v0, %v1887_v20  ;;  %v1892_v25 = vrot.slane %v1887_v20, 4  ;;  %v3566_v23 = vrot.slane %v3565_v10, 4 }
 0x1ad   : > { %v2953_v27 = vshrl.u32 %v7045_v56, 16  ;;  %2181 = vst [vmem:[#allocation2 + $0x24] sm:$0xf] %v2180_v6  ;;  %v1908_v28 = vsel %vm7018_vm6, %v1900_v19, %v1907_v14  ;;  %v2191_v33 = vsel %vm6787_vm12, %v1909_v17, %v2190_v5  ;;  %v3570_v34 = vrot.slane %v3568_v24, 5 }
 0x1ae   : > { %2189 = vst.msk [vmem:[#allocation2 + $0x34] sm:$0xf] %vm9119_vm13, %v1908_v28  ;;  %2192 = vst [vmem:[#allocation2 + $0x38] sm:$0x1] %v2191_v33  ;;  %v1891_v45 = vsel %vm7018_vm6, %v1883_v4, %v1890_v59  ;;  %v2184_v36 = vsel %vm6787_vm12, %v1892_v25, %v2183_v18  ;;  %v2973_v1 = vshll.u32 %v7038_v49, 16  ;;  %v2979_v30 = vrot.slane %v2977_v43, 4 }
 0x1af   : > { %2182 = vst.msk [vmem:[#allocation2 + $0x28] sm:$0xf] %vm9120_vm10, %v1891_v45  ;;  %2185 = vst [vmem:[#allocation2 + $0x2c] sm:$0x1] %v2184_v36  ;;  %v3561_v40 = vsel %vm6872_vm11, %v7121_v39, %v3560_v47  ;;  %v2971_v41 = vrot.slane %v2970_v13, 4  ;;  %v2983_v22 = vshll.u32 %v7052_v58, 16  ;;  %v3571_v49 = vsel %vm6872_vm11, %v3566_v23, %v3570_v34 }
 0x1b0   : > { %v2949_v42 = vshll.u32 %v7045_v56, 16  ;;  %v2975_v43 = vrot.slane %v2973_v1, 5  ;;  %v7158_v46 = vrot.slane %v2946_v31, 4  ;;  %v2959_v38 = vshll.u32 %v7106_v8, 16  ;;  %vm9122_vm13 = vmmov %vm9117_vm7 }
 0x1b1   : > { %v2955_v47 = vrot.slane %v2953_v27, 4  ;;  %v2377_v44 = vshrl.u32 %v2281_v37, 16  ;;  %v2380_v57 = vshll.u32 %v2281_v37, 16  ;;  %v2985_v58 = vrot.slane %v2983_v22, 5  ;;  %vm9123_vm10 = vmmov %vm9117_vm7 }
 0x1b2   : > { %v7161_v39 = vrot.slane %v2949_v42, 5  ;;  %v2980_v13 = vor.u32 %v2979_v30, %v2975_v43  ;;  %v2961_v48 = vrot.slane %v2959_v38, 5  ;;  %v2386_v56 = vshll.u32 %v7083_v15, 16 }
 0x1b3   : > { %v3504_v51 = vld [vmem:[#allocation2 + $0x30] sm:$0xf]  ;;  %v5980_v55 = vcombine.low %v3561_v40, %v3571_v49  ;;  %v2976_v62 = vsel %vm6872_vm11, %v2971_v41, %v2975_v43  ;;  %v2379_v29 = vrot.slane %v2377_v44, 4  ;;  %v2382_v31 = vrot.slane %v2380_v57, 5  ;;  %v2279_v41 = vld [vmem:[#allocation2 + $0xc] sm:$0xf] }
 0x1b4   : > { %v2897_v54 = vld [vmem:[#allocation2 + $0x30] sm:$0xf]  ;;  %v3597_v32 = vshrl.u32 %v3504_v51, 16  ;;  %v3600_v8 = vshll.u32 %v3504_v51, 16  ;;  %v2895_v60 = vld [vmem:[#allocation2 + $0x24] sm:$0xf]  ;;  %v2952_v20 = vsel %vm6872_vm11, %v7158_v46, %v7161_v39  ;;  %v2956_v10 = vor.u32 %v2955_v47, %v7161_v39 }
 0x1b5   : > { %v3012_v19 = vshrl.u32 %v2897_v54, 16  ;;  %v3015_v52 = vshll.u32 %v2897_v54, 16  ;;  %v7166_v0 = vld [vmem:[#allocation2 + $0x34] sm:$0xf]  ;;  %v2981_v4 = vrot.slane %v2980_v13, 4  ;;  %v2988_v5 = vshrl.u32 %v2895_v60, 16 }
 0x1b6   : > { %v7168_v3 = vld [vmem:[#allocation2 + $0x34] sm:$0xf]  ;;  %v7175_v50 = vrot.slane %v3597_v32, 4  ;;  %v5966_v14 = vcombine.low %v3504_v51, %v7166_v0  ;;  %v7178_v17 = vld [vmem:[#allocation2 + $0x28] sm:$0xf]  ;;  %v2383_v18 = vor.u32 %v2382_v31, %v2379_v29  ;;  %v5868_v24 = vcombine.low %v6839_v7, %v6844_v11 }
 0x1b7   : > { %v7182_v6 = vrot.slane %v3600_v8, 5  ;;  %v3610_v59 = vshrl.u32 %v7166_v0, 16  ;;  %v7185_v25 = vrot.slane %v3012_v19, 4  ;;  %v5919_v23 = vcombine.low %v2897_v54, %v7168_v3  ;;  %v7188_v27 = vld [vmem:[#allocation2 + $0x24] sm:$0xf] }
 0x1b8   : > { %4656 = vrot.lane.b32.xlu0 %v5966_v14, %s6356_s14  ;;  %v7191_v28 = vrot.slane %v3015_v52, 5  ;;  %v3025_v33 = vshrl.u32 %v7168_v3, 16  ;;  %v2986_v34 = vsel %vm6872_vm11, %v2981_v4, %v2985_v58  ;;  %v2991_v45 = vshll.u32 %v2895_v60, 16  ;;  %v7196_v36 = vld [vmem:[#allocation2 + $0x28] sm:$0xf] }
 0x1b9   : > { %4402 = vrot.lane.b32.xlu1 %v5919_v23, %s6353_s7  ;;  %v5933_v1 = vcombine.low %v2976_v62, %v2986_v34  ;;  %v7199_v30 = vrot.slane %v2988_v5, 4  ;;  %v3001_v37 = vshrl.u32 %v7178_v17, 16  ;;  %v3573_v40 = vshrl.u32 %v7188_v27, 16  ;;  %v3934_v46 = vld [vmem:[#allocation2 + $0x30] sm:$0xe] }
 0x1ba   : > { %v7203_v22 = vrot.slane %v2991_v45, 5  ;;  %v5918_v42 = vcombine.low %v2895_v60, %v7178_v17  ;;  %v3576_v49 = vshll.u32 %v7188_v27, 16  ;;  %v2957_v43 = vrot.slane %v2956_v10, 4  ;;  %v7210_v57 = vld [vmem:[#allocation2 + $0x38] sm:$0x1] }
 0x1bb   : > { %v3586_v38 = vshrl.u32 %v7196_v36, 16  ;;  %v5965_v39 = vcombine.low %v7188_v27, %v7196_v36  ;;  %v2384_v47 = vrot.slane %v2383_v18, 4  ;;  %v2388_v44 = vrot.slane %v2386_v56, 5 }
 0x1bc   : > { %4732 = vrot.lane.b32.xlu0 %v5980_v55, %s6357_s21  ;;  %v7213_v13 = vrot.slane %v3573_v40, 4  ;;  %v2962_v58 = vsel %vm6872_vm11, %v2957_v43, %v2961_v48  ;;  %v2390_v51 = vshrl.u32 %v7083_v15, 16  ;;  %v2396_v54 = vshll.u32 %v7085_v2, 16 }
 0x1bd   : > { %4478 = vrot.lane.b32.xlu1 %v5933_v1, %s6354_s8  ;;  %v5932_v62 = vcombine.low %v2952_v20, %v2962_v58  ;;  %v2389_v29 = vsel %vm6872_vm11, %v2384_v47, %v2388_v44  ;;  %v5854_v56 = vrot.slane %v3934_v46, 9  ;;  %v4012_v31 = vrot.slane %v7166_v0, 5 }
 0x1be   : > { %v6178_v32 = vpop.f32.mrb[8].mxu0  ;;  %v2392_v55 = vrot.slane %v2390_v51, 4  ;;  %v4015_v8 = vrot.slane %v7210_v57, 5  ;;  %v2353_v19 = vshrl.u32 %v2279_v41, 16  ;;  %v2356_v52 = vshll.u32 %v2279_v41, 16 }
 0x1bf   : > { %v1504_v48 = vadd.f32 %v6178_v32, %v6990_v26  ;;  %v1495_v15 = vpop.f32.mrb[9].mxu0  ;;  %v2398_v60 = vrot.slane %v2396_v54, 5  ;;  %v4014_v2 = vrot.slane %v4012_v31, 4  ;;  %v2362_v4 = vshll.u32 %v7068_v12, 16 }
 0x1c0   : > { %v1496_v5 = vadd.f32 %v6990_v26, %v1495_v15  ;;  %v6179_v20 = vpop.f32.mrb[10].mxu0  ;;  %4400 = vrot.lane.b32.xlu0 %v5918_v42, %s6353_s7  ;;  %v2393_v10 = vor.u32 %v2392_v55, %v2388_v44  ;;  %v2355_v14 = vrot.slane %v2353_v19, 4  ;;  %v2358_v18 = vrot.slane %v2356_v52, 5 }
 0x1c1   : > { %v1600_v23 = vmax.f32 %v1504_v48, 0.0  ;;  %v1507_v34 = vadd.f32 %v6179_v20, %v6990_v26  ;;  %4654 = vrot.lane.b32.xlu1 %v5965_v39, %s6356_s14  ;;  %v1498_v45 = vpop.f32.mrb[11].mxu0  ;;  %v4013_v1 = vsel %vm6884_vm15, %v5854_v56, %v4012_v31  ;;  %v4016_v40 = vsel %vm6884_vm15, %v4014_v2, %v4015_v8 }
 0x1c2   : > { %v1598_v41 = vmax.f32 %v1496_v5, 0.0  ;;  %v1499_v43 = vadd.f32 %v6990_v26, %v1498_v45  ;;  %v2394_v46 = vrot.slane %v2393_v10, 4  ;;  %v7235_v42 = vrot.slane %v2362_v4, 5 }
 0x1c3   : > { %v6082_v47 = vpack.c.bf16 %v1600_v23, %v1600_v23  ;;  %v1601_v44 = vmax.f32 %v1507_v34, 0.0  ;;  %v2359_v58 = vor.u32 %v2358_v18, %v2355_v14  ;;  %v2366_v51 = vshrl.u32 %v7068_v12, 16  ;;  %v2193_v23 = vld [vmem:[#allocation2 + $0x3c] sm:$0xf]  ;;  %v2204_v34 = vld [vmem:[#allocation2 + $0x50] sm:$0x1] }
 0x1c4   : > { %v6080_v54 = vpack.c.bf16 %v1598_v41, %v1598_v41  ;;  %v1599_v39 = vmax.f32 %v1499_v43, 0.0  ;;  %4476 = vrot.lane.b32.xlu0 %v5932_v62, %s6354_s8  ;;  %v2399_v56 = vsel %vm6872_vm11, %v2394_v46, %v2398_v60  ;;  %v5998_v31 = vcombine.low %v4013_v1, %v4016_v40  ;;  %v2200_v62 = vld [vmem:[#allocation2 + $0x48] sm:$0xf] }
 0x1c5   : > { %v1928_v32 = vshrl.u32 %v6082_v47, 16  ;;  %v6083_v55 = vpack.c.bf16 %v1601_v44, %v1601_v44  ;;  %v5886_v8 = vcombine.low %v2389_v29, %v2399_v56  ;;  %v2372_v19 = vshll.u32 %v7070_v16, 16  ;;  %v2716_v56 = vld [vmem:[#allocation2 + $0x30] sm:$0xe] }
 0x1c6   : > { %v1931_v52 = vshll.u32 %v6082_v47, 16  ;;  %v1911_v48 = vshrl.u32 %v6080_v54, 16  ;;  %v6081_v15 = vpack.c.bf16 %v1599_v39, %v1599_v39  ;;  %v2360_v2 = vrot.slane %v2359_v58, 4  ;;  %v7248_v47 = vld [vmem:[#allocation2 + $0x34] sm:$0xf] }
 0x1c7   : > { %v1930_v4 = vrot.slane %v1928_v32, 7  ;;  %v1914_v5 = vshll.u32 %v6080_v54, 16  ;;  %v1936_v12 = vshrl.u32 %v6083_v55, 16  ;;  %4224 = vrot.lane.b32.xlu1 %v5886_v8, %s6352_s6  ;;  %v2368_v20 = vrot.slane %v2366_v51, 4  ;;  %v2197_v54 = vld [vmem:[#allocation2 + $0x44] sm:$0x1] }
 0x1c8   : > { %v1913_v10 = vrot.slane %v1911_v48, 7  ;;  %v1939_v14 = vshll.u32 %v6083_v55, 16  ;;  %v1919_v60 = vshrl.u32 %v6081_v15, 16  ;;  %v1922_v18 = vshll.u32 %v6081_v15, 16  ;;  %4816 = vrot.lane.b32.xlu0 %v5998_v31, %s6358_s24  ;;  %v7254_v8 = vld [vmem:[#allocation2 + $0x38] sm:$0x1] }
 0x1c9   : > { %v1933_v29 = vor.u32 %v1931_v52, %v1930_v4  ;;  %v1938_v16 = vrot.slane %v1936_v12, 7  ;;  %v2365_v45 = vsel %vm6872_vm11, %v2360_v2, %v7235_v42  ;;  %v2369_v1 = vor.u32 %v2368_v20, %v7235_v42  ;;  %v7263_v2 = vld [vmem:[#allocation2 + $0x38] sm:$0x1] }
 0x1ca   : > { %v1934_v40 = vrot.slane %v1930_v4, 4  ;;  %v1916_v41 = vor.u32 %v1914_v5, %v1913_v10  ;;  %v1921_v43 = vrot.slane %v1919_v60, 7  ;;  %v2374_v46 = vrot.slane %v2372_v19, 5  ;;  %v3326_v4 = vld [vmem:[#allocation2 + $0x30] sm:$0xe] }
 0x1cb   : > { %v2201_v44 = vsel %vm7012_vm5, %v1933_v29, %v2200_v62  ;;  %v1941_v58 = vor.u32 %v1939_v14, %v1938_v16  ;;  %v1943_v51 = vrot.slane %v1938_v16, 4  ;;  %v2370_v39 = vrot.slane %v2369_v1, 4  ;;  %v3933_v14 = vld [vmem:[#allocation2 + $0x24] sm:$0xe]  ;;  %v7279_v16 = vld [vmem:[#allocation2 + $0x28] sm:$0xf] }
 0x1cc   : > { %2202 = vst [vmem:[#allocation2 + $0x48] sm:$0xf] %v2201_v44  ;;  %v1917_v31 = vrot.slane %v1913_v10, 4  ;;  %v2194_v32 = vsel %vm7012_vm5, %v1916_v41, %v2193_v23  ;;  %v1924_v42 = vor.u32 %v1922_v18, %v1921_v43  ;;  %v1926_v55 = vrot.slane %v1921_v43, 4  ;;  %v7270_v10 = vld [vmem:[#allocation2 + $0x2c] sm:$0x1] }
 0x1cd   : > { %2195 = vst [vmem:[#allocation2 + $0x3c] sm:$0xf] %v2194_v32  ;;  %v1942_v19 = vsel %vm7018_vm6, %v1934_v40, %v1941_v58  ;;  %v2205_v52 = vsel %vm6787_vm12, %v1943_v51, %v2204_v34  ;;  %v2375_v48 = vsel %vm6872_vm11, %v2370_v39, %v2374_v46  ;;  %v2809_v15 = vrot.slane %v7248_v47, 5  ;;  %v2715_v1 = vld [vmem:[#allocation2 + $0x24] sm:$0xe] }
 0x1ce   : > { %2203 = vst.msk [vmem:[#allocation2 + $0x4c] sm:$0xf] %vm9117_vm7, %v1942_v19  ;;  %2206 = vst [vmem:[#allocation2 + $0x50] sm:$0x1] %v2205_v52  ;;  %v1925_v5 = vsel %vm7018_vm6, %v1917_v31, %v1924_v42  ;;  %v2198_v12 = vsel %vm6787_vm12, %v1926_v55, %v2197_v54  ;;  %v5885_v20 = vcombine.low %v2365_v45, %v2375_v48  ;;  %v5824_v62 = vrot.slane %v2716_v56, 9 }
 0x1cf   : > { %v7274_v60 = vrot.slane %v3576_v49, 5  ;;  %2196 = vst.msk [vmem:[#allocation2 + $0x40] sm:$0xf] %vm9121_vm9, %v1925_v5  ;;  %2199 = vst [vmem:[#allocation2 + $0x44] sm:$0x1] %v2198_v12  ;;  %v2811_v18 = vrot.slane %v2809_v15, 4 }
 0x1d0   : > { %v2812_v29 = vrot.slane %v7254_v8, 5  ;;  %v3410_v23 = vrot.slane %v7168_v3, 5  ;;  %4222 = vrot.lane.b32.xlu1 %v5885_v20, %s6352_s6  ;;  %v2810_v34 = vsel %vm6884_vm15, %v5824_v62, %v2809_v15  ;;  %v5839_v45 = vrot.slane %v3326_v4, 9  ;;  %v7289_v44 = vld [vmem:[#allocation2 + $0x2c] sm:$0x1]  ;;  %vm9124_vm9 = vmmov %vm9117_vm7 }
 0x1d1   : > { %v3413_v27 = vrot.slane %v7263_v2, 5  ;;  %v4005_v49 = vrot.slane %v7196_v36, 5  ;;  %v5853_v43 = vrot.slane %v3933_v14, 9  ;;  %v4008_v46 = vrot.slane %v7270_v10, 5  ;;  %v7294_v56 = vld [vmem:[#allocation2 + $0x2c] sm:$0x1] }
 0x1d2   : > { %v2813_v40 = vsel %vm6884_vm15, %v2811_v18, %v2812_v29  ;;  %v3412_v41 = vrot.slane %v3410_v23, 4  ;;  %v3411_v51 = vsel %vm6884_vm15, %v5839_v45, %v3410_v23  ;;  %v2802_v39 = vrot.slane %v7279_v16, 5  ;;  %v3325_v31 = vld [vmem:[#allocation2 + $0x24] sm:$0xe] }
 0x1d3   : > { %v5904_v58 = vcombine.low %v2810_v34, %v2813_v40  ;;  %v4007_v54 = vrot.slane %v4005_v49, 4  ;;  %v4006_v42 = vsel %vm6884_vm15, %v5853_v43, %v4005_v49  ;;  %v5823_v55 = vrot.slane %v2715_v1, 9  ;;  %v7301_v52 = vld [vmem:[#allocation2 + $0x48] sm:$0xf] }
 0x1d4   : > { %v3414_v32 = vsel %vm6884_vm15, %v3412_v41, %v3413_v27  ;;  %v3403_v19 = vrot.slane %v7178_v17, 5  ;;  %v2804_v4 = vrot.slane %v2802_v39, 4  ;;  %v2805_v5 = vrot.slane %v7289_v44, 5  ;;  %v2901_v12 = vld [vmem:[#allocation2 + $0x48] sm:$0xf] }
 0x1d5   : > { %4308 = vrot.lane.b32.xlu0 %v5904_v58, %s6351_s30  ;;  %v5951_v48 = vcombine.low %v3411_v51, %v3414_v32  ;;  %v4009_v15 = vsel %vm6884_vm15, %v4007_v54, %v4008_v46  ;;  %v2803_v20 = vsel %vm6884_vm15, %v5823_v55, %v2802_v39  ;;  %v5838_v62 = vrot.slane %v3325_v31, 9  ;;  %v7310_v29 = vld [vmem:[#allocation2 + $0x4c] sm:$0xf]  ;;  %v7335_v55 = vld [vmem:[#allocation2 + $0x3c] sm:$0xf] }
 0x1d6   : > { %v3405_v14 = vrot.slane %v3403_v19, 4  ;;  %v3406_v18 = vrot.slane %v7294_v56, 5  ;;  %v5997_v23 = vcombine.low %v4006_v42, %v4009_v15  ;;  %v2806_v34 = vsel %vm6884_vm15, %v2804_v4, %v2805_v5  ;;  %v7322_v41 = vld [vmem:[#allocation2 + $0x4c] sm:$0xf] }
 0x1d7   : > { %4562 = vrot.lane.b32.xlu1 %v5951_v48, %s6355_s9  ;;  %v3645_v45 = vshrl.u32 %v7301_v52, 16  ;;  %v3648_v27 = vshll.u32 %v7301_v52, 16  ;;  %v3404_v49 = vsel %vm6884_vm15, %v5838_v62, %v3403_v19  ;;  %v3658_v40 = vshrl.u32 %v7310_v29, 16 }
 0x1d8   : > { %v3407_v1 = vsel %vm6884_vm15, %v3405_v14, %v3406_v18  ;;  %v3060_v43 = vshrl.u32 %v2901_v12, 16  ;;  %v5903_v46 = vcombine.low %v2803_v20, %v2806_v34  ;;  %v5968_v54 = vcombine.low %v7301_v52, %v7310_v29  ;;  %v7357_v18 = vld [vmem:[#allocation2 + $0x3c] sm:$0xf] }
 0x1d9   : > { %4814 = vrot.lane.b32.xlu0 %v5997_v23, %s6358_s24  ;;  %v5950_v58 = vcombine.low %v3404_v49, %v3407_v1  ;;  %v7325_v51 = vrot.slane %v3645_v45, 4  ;;  %v7329_v39 = vrot.slane %v3648_v27, 5  ;;  %v3063_v32 = vshll.u32 %v2901_v12, 16 }
 0x1da   : > { %v7331_v31 = vrot.slane %v3060_v43, 4  ;;  %v3603_v42 = vor.u32 %v7182_v6, %v7175_v50  ;;  %v5921_v19 = vcombine.low %v2901_v12, %v7322_v41  ;;  %v3606_v48 = vshll.u32 %v7166_v0, 16  ;;  %v7348_v6 = vld [vmem:[#allocation2 + $0x40] sm:$0xf] }
 0x1db   : > { %4306 = vrot.lane.b32.xlu1 %v5903_v46, %s6351_s30  ;;  %v3612_v15 = vrot.slane %v3610_v59, 4  ;;  %v3616_v52 = vshll.u32 %v7210_v57, 16  ;;  %v3018_v5 = vor.u32 %v7191_v28, %v7185_v25  ;;  %v3021_v20 = vshll.u32 %v7168_v3, 16 }
 0x1dc   : > { %v3604_v4 = vrot.slane %v3603_v42, 4  ;;  %v3027_v50 = vrot.slane %v3025_v33, 4  ;;  %v3073_v12 = vshrl.u32 %v7322_v41, 16  ;;  %v3608_v62 = vrot.slane %v3606_v48, 5 }
 0x1dd   : > { %4560 = vrot.lane.b32.xlu0 %v5950_v58, %s6355_s9  ;;  %v3031_v0 = vshll.u32 %v7263_v2, 16  ;;  %v3036_v59 = vshrl.u32 %v7335_v55, 16  ;;  %v7354_v57 = vrot.slane %v3063_v32, 5  ;;  %v3019_v14 = vrot.slane %v3018_v5, 4  ;;  %v7374_v5 = vld [vmem:[#allocation2 + $0x40] sm:$0xf] }
 0x1de   : > { %v3023_v25 = vrot.slane %v3021_v20, 5  ;;  %v3039_v28 = vshll.u32 %v7335_v55, 16  ;;  %v3609_v3 = vsel %vm6872_vm11, %v3604_v4, %v3608_v62  ;;  %v3613_v33 = vor.u32 %v3612_v15, %v3608_v62  ;;  %v6182_v34 = vpop.f32.mrb[12].mxu0 }
 0x1df   : > { %4406 = vrot.lane.b32.xlu1 %v5921_v19, %s6353_s7  ;;  %v3618_v23 = vrot.slane %v3616_v52, 5  ;;  %v3049_v2 = vshrl.u32 %v7348_v6, 16  ;;  %v3033_v27 = vrot.slane %v3031_v0, 5  ;;  %v1520_v49 = vadd.f32 %v6182_v34, %v6990_v26  ;;  %v1511_v1 = vpop.f32.mrb[13].mxu0 }
 0x1e0   : > { %v3028_v45 = vor.u32 %v3027_v50, %v3023_v25  ;;  %v7364_v43 = vrot.slane %v3036_v59, 4  ;;  %v3614_v46 = vrot.slane %v3613_v33, 4  ;;  %v3024_v58 = vsel %vm6872_vm11, %v3019_v14, %v3023_v25  ;;  %v6183_v42 = vpop.f32.mrb[14].mxu0 }
 0x1e1   : > { %4660 = vrot.lane.b32.xlu0 %v5968_v54, %s6356_s14  ;;  %v1512_v32 = vadd.f32 %v6990_v26, %v1511_v1  ;;  %v3621_v19 = vshrl.u32 %v7357_v18, 16  ;;  %v1604_v15 = vmax.f32 %v1520_v49, 0.0  ;;  %v1523_v52 = vadd.f32 %v6183_v42, %v6990_v26  ;;  %v1514_v20 = vpop.f32.mrb[15].mxu0 }
 0x1e2   : > { %v3029_v48 = vrot.slane %v3028_v45, 4  ;;  %v7372_v4 = vrot.slane %v3039_v28, 5  ;;  %v3619_v54 = vsel %vm6872_vm11, %v3614_v46, %v3618_v23  ;;  %v5920_v62 = vcombine.low %v7335_v55, %v7348_v6 }
 0x1e3   : > { %v1602_v50 = vmax.f32 %v1512_v32, 0.0  ;;  %v3624_v0 = vshll.u32 %v7357_v18, 16  ;;  %v5982_v59 = vcombine.low %v3609_v3, %v3619_v54  ;;  %v6086_v25 = vpack.c.bf16 %v1604_v15, %v1604_v15 }
 0x1e4   : > { %v3034_v14 = vsel %vm6872_vm11, %v3029_v48, %v3033_v27  ;;  %v1605_v33 = vmax.f32 %v1523_v52, 0.0  ;;  %v7383_v45 = vrot.slane %v3621_v19, 4  ;;  %v5967_v49 = vcombine.low %v7357_v18, %v7374_v5  ;;  %v2214_v52 = vld [vmem:[#allocation2 + $0x60] sm:$0xf] }
 0x1e5   : > { %v5935_v28 = vcombine.low %v3024_v58, %v3034_v14  ;;  %v6084_v34 = vpack.c.bf16 %v1602_v50, %v1602_v50  ;;  %4736 = vrot.lane.b32.xlu0 %v5982_v59, %s6357_s21  ;;  %v1962_v23 = vshrl.u32 %v6086_v25, 16  ;;  %v1965_v1 = vshll.u32 %v6086_v25, 16  ;;  %v2207_v25 = vld [vmem:[#allocation2 + $0x54] sm:$0xf] }
 0x1e6   : > { %v6087_v55 = vpack.c.bf16 %v1605_v33, %v1605_v33  ;;  %v1515_v46 = vadd.f32 %v6990_v26, %v1514_v20  ;;  %v2994_v58 = vor.u32 %v7203_v22, %v7199_v30  ;;  %v2997_v32 = vshll.u32 %v7178_v17, 16 }
 0x1e7   : > { %4482 = vrot.lane.b32.xlu1 %v5935_v28, %s6354_s8  ;;  %v1945_v3 = vshrl.u32 %v6084_v34, 16  ;;  %v1948_v27 = vshll.u32 %v6084_v34, 16  ;;  %v1964_v42 = vrot.slane %v1962_v23, 7  ;;  %v3003_v26 = vrot.slane %v3001_v37, 4  ;;  %v2218_v34 = vld [vmem:[#allocation2 + $0x68] sm:$0x1] }
 0x1e8   : > { %v1970_v19 = vshrl.u32 %v6087_v55, 16  ;;  %v1973_v48 = vshll.u32 %v6087_v55, 16  ;;  %v1603_v15 = vmax.f32 %v1515_v46, 0.0  ;;  %v2995_v50 = vrot.slane %v2994_v58, 4  ;;  %v2285_v46 = vld [vmem:[#allocation2 + $0x30] sm:$0xf] }
 0x1e9   : > { %v1947_v54 = vrot.slane %v1945_v3, 7  ;;  %v2999_v59 = vrot.slane %v2997_v32, 5  ;;  %v1967_v20 = vor.u32 %v1965_v1, %v1964_v42  ;;  %v1968_v14 = vrot.slane %v1964_v42, 4  ;;  %4404 = vrot.lane.b32.xlu0 %v5920_v62, %s6353_s7 }
 0x1ea   : > { %v1972_v33 = vrot.slane %v1970_v19, 7  ;;  %v6085_v30 = vpack.c.bf16 %v1603_v15, %v1603_v15  ;;  %v3007_v32 = vshll.u32 %v7294_v56, 16  ;;  %v2425_v15 = vshrl.u32 %v2285_v46, 16 }
 0x1eb   : > { %v1950_v22 = vor.u32 %v1948_v27, %v1947_v54  ;;  %v1951_v28 = vrot.slane %v1947_v54, 4  ;;  %4658 = vrot.lane.b32.xlu1 %v5967_v49, %s6356_s14  ;;  %v3000_v23 = vsel %vm6872_vm11, %v2995_v50, %v2999_v59  ;;  %v3004_v55 = vor.u32 %v3003_v26, %v2999_v59 }
 0x1ec   : > { %v2215_v17 = vsel %vm7012_vm5, %v1967_v20, %v2214_v52  ;;  %v1975_v37 = vor.u32 %v1973_v48, %v1972_v33  ;;  %v1977_v1 = vrot.slane %v1972_v33, 4  ;;  %v1953_v3 = vshrl.u32 %v6085_v30, 16  ;;  %v2211_v48 = vld [vmem:[#allocation2 + $0x5c] sm:$0x1] }
 0x1ed   : > { %2216 = vst [vmem:[#allocation2 + $0x60] sm:$0xf] %v2215_v17  ;;  %v2208_v62 = vsel %vm7012_vm5, %v1950_v22, %v2207_v25  ;;  %v1956_v27 = vshll.u32 %v6085_v30, 16  ;;  %v3005_v58 = vrot.slane %v3004_v55, 4  ;;  %v3009_v52 = vrot.slane %v3007_v32, 5 }
 0x1ee   : > { %2209 = vst [vmem:[#allocation2 + $0x54] sm:$0xf] %v2208_v62  ;;  %v1976_v49 = vsel %vm7018_vm6, %v1968_v14, %v1975_v37  ;;  %v2219_v42 = vsel %vm6787_vm12, %v1977_v1, %v2218_v34  ;;  %v1955_v19 = vrot.slane %v1953_v3, 7  ;;  %v2428_v54 = vshll.u32 %v2285_v46, 16  ;;  %v3936_v34 = vld [vmem:[#allocation2 + $0x48] sm:$0xe] }
 0x1ef   : > { %2217 = vst.msk [vmem:[#allocation2 + $0x64] sm:$0xf] %vm9122_vm13, %v1976_v49  ;;  %2220 = vst [vmem:[#allocation2 + $0x68] sm:$0x1] %v2219_v42  ;;  %v2434_v50 = vshll.u32 %v7248_v47, 16  ;;  %v2438_v59 = vshrl.u32 %v7248_v47, 16  ;;  %v3010_v25 = vsel %vm6872_vm11, %v3005_v58, %v3009_v52 }
 0x1f0   : > { %v1958_v56 = vor.u32 %v1956_v27, %v1955_v19  ;;  %v1960_v26 = vrot.slane %v1955_v19, 4  ;;  %v2427_v20 = vrot.slane %v2425_v15, 4  ;;  %v2444_v14 = vshll.u32 %v7254_v8, 16  ;;  %v7419_v37 = vld [vmem:[#allocation2 + $0x50] sm:$0x1]  ;;  %vm9136_vm13 = vmmov %vm9117_vm7 }
 0x1f1   : > { %v2430_v33 = vrot.slane %v2428_v54, 5  ;;  %v2436_v30 = vrot.slane %v2434_v50, 5  ;;  %v2440_v22 = vrot.slane %v2438_v59, 4  ;;  %v3634_v55 = vshrl.u32 %v7374_v5, 16  ;;  %v7429_v32 = vld [vmem:[#allocation2 + $0x4c] sm:$0xf] }
 0x1f2   : > { %v1959_v46 = vsel %vm7018_vm6, %v1951_v28, %v1958_v56  ;;  %v2212_v47 = vsel %vm6787_vm12, %v1960_v26, %v2211_v48  ;;  %v5934_v17 = vcombine.low %v3000_v23, %v3010_v25  ;;  %v2446_v3 = vrot.slane %v2444_v14, 5  ;;  %v2718_v48 = vld [vmem:[#allocation2 + $0x48] sm:$0xe]  ;;  %v2283_v26 = vld [vmem:[#allocation2 + $0x24] sm:$0xf] }
 0x1f3   : > { %2210 = vst.msk [vmem:[#allocation2 + $0x58] sm:$0xf] %vm9123_vm10, %v1959_v46  ;;  %2213 = vst [vmem:[#allocation2 + $0x5c] sm:$0x1] %v2212_v47  ;;  %v2431_v8 = vor.u32 %v2430_v33, %v2427_v20  ;;  %v2441_v1 = vor.u32 %v2440_v22, %v2436_v30  ;;  %v4026_v62 = vrot.slane %v7310_v29, 5  ;;  %v5856_v27 = vrot.slane %v3936_v34, 9 }
 0x1f4   : > { %4480 = vrot.lane.b32.xlu0 %v5934_v17, %s6354_s8  ;;  %v3579_v28 = vor.u32 %v7274_v60, %v7213_v13  ;;  %v3582_v58 = vshll.u32 %v7196_v36, 16  ;;  %v3588_v23 = vrot.slane %v3586_v38, 4  ;;  %v4029_v15 = vrot.slane %v7419_v37, 5  ;;  %v7435_v60 = vld [vmem:[#allocation2 + $0x50] sm:$0x1]  ;;  %vm9138_vm10 = vmmov %vm9117_vm7 }
 0x1f5   : > { %v2432_v49 = vrot.slane %v2431_v8, 4  ;;  %v2442_v42 = vrot.slane %v2441_v1, 4  ;;  %v4028_v19 = vrot.slane %v4026_v62, 4  ;;  %v4027_v52 = vsel %vm6884_vm15, %v5856_v27, %v4026_v62  ;;  %v7450_v1 = vld [vmem:[#allocation2 + $0x44] sm:$0x1] }
 0x1f6   : > { %v3580_v54 = vrot.slane %v3579_v28, 4  ;;  %v3584_v50 = vrot.slane %v3582_v58, 5  ;;  %v3592_v13 = vshll.u32 %v7270_v10, 16  ;;  %v2823_v56 = vrot.slane %v7429_v32, 5  ;;  %v3935_v58 = vld [vmem:[#allocation2 + $0x3c] sm:$0xe] }
 0x1f7   : > { %v2437_v36 = vsel %vm6872_vm11, %v2432_v49, %v2436_v30  ;;  %v2447_v38 = vsel %vm6872_vm11, %v2442_v42, %v2446_v3  ;;  %v4030_v59 = vsel %vm6884_vm15, %v4028_v19, %v4029_v15  ;;  %v5826_v33 = vrot.slane %v2718_v48, 9  ;;  %v7463_v48 = vld [vmem:[#allocation2 + $0x50] sm:$0x1] }
 0x1f8   : > { %v5888_v20 = vcombine.low %v2437_v36, %v2447_v38  ;;  %v6000_v14 = vcombine.low %v4027_v52, %v4030_v59  ;;  %v3589_v25 = vor.u32 %v3588_v23, %v3584_v50  ;;  %v3585_v10 = vsel %vm6872_vm11, %v3580_v54, %v3584_v50  ;;  %v6294_v23 = vld [vmem:[%s9083_s3] sm:$0xff]   ;;  %v3328_v52 = vld [vmem:[#allocation2 + $0x48] sm:$0xe] }
 0x1f9   : > { %v3594_v22 = vrot.slane %v3592_v13, 5  ;;  %v2825_v34 = vrot.slane %v2823_v56, 4  ;;  %v2826_v30 = vrot.slane %v7435_v60, 5  ;;  %v2401_v47 = vshrl.u32 %v2283_v26, 16  ;;  %v7469_v13 = vld [vmem:[#allocation2 + $0x44] sm:$0x1]  ;;  %6200 = vmatprep.subr.bf16.mxu1 %v6294_v23 }
 0x1fa   : > { %4228 = vrot.lane.b32.xlu1 %v5888_v20, %s6352_s6  ;;  %4820 = vrot.lane.b32.xlu0 %v6000_v14, %s6358_s24  ;;  %v3590_v46 = vrot.slane %v3589_v25, 4  ;;  %v2404_v17 = vshll.u32 %v2283_v26, 16  ;;  %v2410_v8 = vshll.u32 %v7279_v16, 16  ;;  %v2824_v3 = vsel %vm6884_vm15, %v5826_v33, %v2823_v56  ;;  %v3327_v26 = vld [vmem:[#allocation2 + $0x3c] sm:$0xe] }
 0x1fb   : > { %v2827_v62 = vsel %vm6884_vm15, %v2825_v34, %v2826_v30  ;;  %v2414_v27 = vshrl.u32 %v7279_v16, 16  ;;  %v2420_v28 = vshll.u32 %v7289_v44, 16  ;;  %v2403_v19 = vrot.slane %v2401_v47, 4  ;;  %6201 = vmatpush3.bf16.msra.mxu1 %v6294_v23  ;;  %v7476_v25 = vld [vmem:[#allocation2 + $0x40] sm:$0xf] }
 0x1fc   : > { %v3595_v49 = vsel %vm6872_vm11, %v3590_v46, %v3594_v22  ;;  %v5906_v42 = vcombine.low %v2824_v3, %v2827_v62  ;;  %v2406_v15 = vrot.slane %v2404_v17, 5  ;;  %v7467_v54 = vrot.slane %v3624_v0, 5  ;;  %v2717_v62 = vld [vmem:[#allocation2 + $0x3c] sm:$0xe] }
 0x1fd   : > { %v5981_v16 = vcombine.low %v3585_v10, %v3595_v49  ;;  %v2412_v44 = vrot.slane %v2410_v8, 5  ;;  %v2416_v50 = vrot.slane %v2414_v27, 4  ;;  %v2422_v38 = vrot.slane %v2420_v28, 5 }
 0x1fe   : > { %4312 = vrot.lane.b32.xlu0 %v5906_v42, %s6351_s30  ;;  %v2407_v36 = vor.u32 %v2406_v15, %v2403_v19  ;;  %v5855_v59 = vrot.slane %v3935_v58, 9  ;;  %v4019_v56 = vrot.slane %v7374_v5, 5  ;;  %v4022_v0 = vrot.slane %v7450_v1, 5  ;;  %v7478_v33 = vpop.f32.mrb[16].mxu0  ;;  %v3512_v42 = vld [vmem:[#allocation2 + $0x60] sm:$0xf] }
 0x1ff   : > { %4734 = vrot.lane.b32.xlu1 %v5981_v16, %s6357_s21  ;;  %v2417_v18 = vor.u32 %v2416_v50, %v2412_v44  ;;  %v5841_v20 = vrot.slane %v3328_v52, 9  ;;  %v3424_v14 = vrot.slane %v7322_v41, 5  ;;  %v3427_v34 = vrot.slane %v7463_v48, 5  ;;  %v7482_v46 = vpop.f32.mrb[17].mxu0 }
 0x200   : > { %v2408_v10 = vrot.slane %v2407_v36, 4  ;;  %v4021_v22 = vrot.slane %v4019_v56, 4  ;;  %v3417_v30 = vrot.slane %v7348_v6, 5  ;;  %v4020_v17 = vsel %vm6884_vm15, %v5855_v59, %v4019_v56  ;;  %v7486_v27 = vpop.f32.mrb[18].mxu0  ;;  %v7501_v36 = vld [vmem:[#allocation2 + $0x44] sm:$0x1] }
 0x201   : > { %v2418_v47 = vrot.slane %v2417_v18, 4  ;;  %v3426_v8 = vrot.slane %v3424_v14, 4  ;;  %v5840_v3 = vrot.slane %v3327_v26, 9  ;;  %v3425_v58 = vsel %vm6884_vm15, %v5841_v20, %v3424_v14  ;;  %v7493_v19 = vpop.f32.mrb[19].mxu0  ;;  %v7508_v20 = vld [vmem:[#allocation2 + $0x60] sm:$0xf] }
 0x202   : > { %v4023_v28 = vsel %vm6884_vm15, %v4021_v22, %v4022_v0  ;;  %v3419_v23 = vrot.slane %v3417_v30, 4  ;;  %v3420_v49 = vrot.slane %v7469_v13, 5  ;;  %v2413_v15 = vsel %vm6872_vm11, %v2408_v10, %v2412_v44  ;;  %v7506_v0 = vld [vmem:[#allocation2 + $0x64] sm:$0xf] }
 0x203   : > { %v2423_v52 = vsel %vm6872_vm11, %v2418_v47, %v2422_v38  ;;  %v5999_v16 = vcombine.low %v4020_v17, %v4023_v28  ;;  %v3428_v50 = vsel %vm6884_vm15, %v3426_v8, %v3427_v34  ;;  %v5825_v26 = vrot.slane %v2717_v62, 9  ;;  %v7517_v8 = vld [vmem:[#allocation2 + $0x64] sm:$0xf] }
 0x204   : > { %v5887_v59 = vcombine.low %v2413_v15, %v2423_v52  ;;  %v3421_v56 = vsel %vm6884_vm15, %v3419_v23, %v3420_v49  ;;  %v2816_v18 = vrot.slane %v7476_v25, 5  ;;  %v5953_v44 = vcombine.low %v3425_v58, %v3428_v50 }
 0x205   : > { %4818 = vrot.lane.b32.xlu0 %v5999_v16, %s6358_s24  ;;  %v3418_v38 = vsel %vm6884_vm15, %v5840_v3, %v3417_v30  ;;  %v3693_v14 = vshrl.u32 %v3512_v42, 16  ;;  %v3696_v10 = vshll.u32 %v3512_v42, 16  ;;  %v2819_v17 = vrot.slane %v7501_v36, 5 }
 0x206   : > { %4226 = vrot.lane.b32.xlu1 %v5887_v59, %s6352_s6  ;;  %v5952_v22 = vcombine.low %v3418_v38, %v3421_v56  ;;  %v2817_v34 = vsel %vm6884_vm15, %v5825_v26, %v2816_v18  ;;  %v2818_v47 = vrot.slane %v2816_v18, 4  ;;  %v5970_v58 = vcombine.low %v3512_v42, %v7506_v0  ;;  %v1680_v59 = vld [vmem:[#allocation2 + $0x78] sm:$0x1]  ;;  %v6295_v56 = vld [vmem:[%s9083_s3 + $0x8] sm:$0xff]  }
 0x207   : > { %v7519_v62 = vrot.slane %v3693_v14, 4  ;;  %v3108_v30 = vshrl.u32 %v7508_v20, 16  ;;  %v7526_v23 = vrot.slane %v3696_v10, 5  ;;  %v3111_v49 = vshll.u32 %v7508_v20, 16  ;;  %6202 = vmatprep.subr.bf16.mxu1 %v6295_v56 }
 0x208   : > { %v2820_v3 = vsel %vm6884_vm15, %v2818_v47, %v2819_v17  ;;  %v3651_v15 = vor.u32 %v7329_v39, %v7325_v51  ;;  %v5923_v42 = vcombine.low %v7508_v20, %v7517_v8  ;;  %v3654_v50 = vshll.u32 %v7310_v29, 16  ;;  %v7547_v20 = vpop.permute.xlu0 %4220  ;;  %6203 = vmatpush3.bf16.msra.mxu1 %v6295_v56 }
 0x209   : > { %4564 = vrot.lane.b32.xlu0 %v5952_v22, %s6355_s9  ;;  %v5905_v52 = vcombine.low %v2817_v34, %v2820_v3  ;;  %v7540_v26 = vrot.slane %v3108_v30, 4  ;;  %v3660_v51 = vrot.slane %v3658_v40, 4  ;;  %v3664_v39 = vshll.u32 %v7419_v37, 16  ;;  %v7558_v40 = vld [vmem:[%s9082_s2] ss:$0 sm:$0xff] }
 0x20a   : > { %4566 = vrot.lane.b32.xlu1 %v5953_v44, %s6355_s9  ;;  %v3066_v18 = vor.u32 %v7354_v57, %v7331_v31  ;;  %v3652_v38 = vrot.slane %v3651_v15, 4  ;;  %v3656_v14 = vrot.slane %v3654_v50, 5  ;;  %v3069_v10 = vshll.u32 %v7322_v41, 16  ;;  %v1677_v44 = vld [vmem:[#allocation2 + $0x6c] sm:$0x1]  ;;  %v6296_v41 = vld [vmem:[%s9083_s3 + $0x10] sm:$0xff]  }
 0x20b   : > { %v3075_v22 = vrot.slane %v3073_v12, 4  ;;  %v7552_v34 = vrot.slane %v3111_v49, 5  ;;  %v3079_v29 = vshll.u32 %v7463_v48, 16  ;;  %v1536_v31 = vadd.f32 %v7558_v40, %v7478_v33  ;;  %v1736_v37 = vld [vmem:[#allocation2 + $0x80] sm:$0x1]  ;;  %6204 = vmatprep.subr.bf16.mxu1 %v6296_v41 }
 0x20c   : > { %v1681_v57 = vsel %vm6787_vm12, 0, %v1680_v59  ;;  %v3661_v12 = vor.u32 %v3660_v51, %v3656_v14  ;;  %v3666_v48 = vrot.slane %v3664_v39, 5  ;;  %v3067_v47 = vrot.slane %v3066_v18, 4  ;;  %v7568_v30 = vld [vmem:[#allocation2 + $0x54] sm:$0xf]  ;;  %6205 = vmatpush3.bf16.msra.mxu1 %v6296_v41 }
 0x20d   : > { %4664 = vrot.lane.b32.xlu0 %v5970_v58, %s6356_s14  ;;  %v3071_v17 = vrot.slane %v3069_v10, 5  ;;  %1682 = vst [vmem:[#allocation2 + $0x78] sm:$0x1] %v1681_v57  ;;  %v1608_v33 = vmax.f32 %v1536_v31, 0.0  ;;  %v1528_v3 = vadd.f32 %v7558_v40, %v7482_v46  ;;  %v1678_v49 = vsel %vm6787_vm12, 0, %v1677_v44  ;;  %v7584_v10 = vpop.permute.xlu0 %4300 }
 0x20e   : > { %4310 = vrot.lane.b32.xlu1 %v5905_v52, %s6351_s30  ;;  %v1539_v15 = vadd.f32 %v7558_v40, %v7486_v27  ;;  %v3657_v58 = vsel %vm6872_vm11, %v3652_v38, %v3656_v14  ;;  %v3662_v50 = vrot.slane %v3661_v12, 4  ;;  %1679 = vst [vmem:[#allocation2 + $0x6c] sm:$0x1] %v1678_v49  ;;  %v1737_v52 = vsel %vm6809_vm14, 0, %v1736_v37  ;;  %v7581_v46 = vld [vmem:[#allocation2 + $0x58] sm:$0xf] }
 0x20f   : > { %v3076_v59 = vor.u32 %v3075_v22, %v3071_v17  ;;  %v6090_v56 = vpack.c.bf16 %v1608_v33, %v1608_v33  ;;  %v1606_v51 = vmax.f32 %v1528_v3, 0.0  ;;  %1738 = vst [vmem:[#allocation2 + $0x80] sm:$0x1] %v1737_v52  ;;  %v3084_v18 = vshrl.u32 %v7568_v30, 16  ;;  %v7592_v12 = vld [vmem:[#allocation2 + $0x54] sm:$0xf] }
 0x210   : > { %v1609_v39 = vmax.f32 %v1539_v15, 0.0  ;;  %v3667_v27 = vsel %vm6872_vm11, %v3662_v50, %v3666_v48  ;;  %v3081_v14 = vrot.slane %v3079_v29, 5  ;;  %v3087_v22 = vshll.u32 %v7568_v30, 16 }
 0x211   : > { %v3077_v38 = vrot.slane %v3076_v59, 4  ;;  %v5984_v44 = vcombine.low %v3657_v58, %v3667_v27  ;;  %v3072_v31 = vsel %vm6872_vm11, %v3067_v47, %v3071_v17  ;;  %v1996_v57 = vshrl.u32 %v6090_v56, 16  ;;  %v7600_v58 = vld [vmem:[#allocation2 + $0x58] sm:$0xf] }
 0x212   : > { %4410 = vrot.lane.b32.xlu1 %v5923_v42, %s6353_s7  ;;  %v6088_v37 = vpack.c.bf16 %v1606_v51, %v1606_v51  ;;  %v1999_v33 = vshll.u32 %v6090_v56, 16  ;;  %v6091_v3 = vpack.c.bf16 %v1609_v39, %v1609_v39  ;;  %v7598_v15 = vrot.slane %v3084_v18, 4  ;;  %v6298_v47 = vld [vmem:[%s9083_s3 + $0x18] sm:$0xff]  }
 0x213   : > { %v3082_v41 = vsel %vm6872_vm11, %v3077_v38, %v3081_v14  ;;  %4740 = vrot.lane.b32.xlu0 %v5984_v44, %s6357_s21  ;;  %v1998_v49 = vrot.slane %v1996_v57, 7  ;;  %v7605_v52 = vrot.slane %v3087_v22, 5  ;;  %v3669_v56 = vshrl.u32 %v7592_v12, 16  ;;  %v1733_v38 = vld [vmem:[#allocation2 + $0x74] sm:$0x1]  ;;  %v7613_v14 = vpop.permute.xlu0 %4652  ;;  %6206 = vmatprep.subr.bf16.mxu1 %v6298_v47 }
 0x214   : > { %v5937_v29 = vcombine.low %v3072_v31, %v3082_v41  ;;  %v1979_v42 = vshrl.u32 %v6088_v37, 16  ;;  %v2228_v17 = vld [vmem:[#allocation2 + $0x78] sm:$0xf]  ;;  %v1982_v50 = vshll.u32 %v6088_v37, 16  ;;  %v2004_v59 = vshrl.u32 %v6091_v3, 16  ;;  %6207 = vmatpush3.bf16.msra.mxu1 %v6298_v47 }
 0x215   : > { %v2001_v51 = vor.u32 %v1999_v33, %v1998_v49  ;;  %v2007_v18 = vshll.u32 %v6091_v3, 16  ;;  %v5922_v27 = vcombine.low %v7568_v30, %v7581_v46  ;;  %v2002_v44 = vrot.slane %v1998_v49, 4  ;;  %v2221_v31 = vld [vmem:[#allocation2 + $0x6c] sm:$0xf]  ;;  %v6299_v49 = vld [vmem:[%s9083_s3 + $0x20] sm:$0xff]  }
 0x216   : > { %4486 = vrot.lane.b32.xlu1 %v5937_v29, %s6354_s8  ;;  %v7609_v39 = vrot.slane %v1979_v42, 7  ;;  %v2006_v57 = vrot.slane %v2004_v59, 7  ;;  %v7615_v22 = vrot.slane %v3669_v56, 4  ;;  %v3672_v37 = vshll.u32 %v7592_v12, 16  ;;  %v2232_v3 = vld [vmem:[#allocation2 + $0x80] sm:$0x1]  ;;  %6208 = vmatprep.subr.bf16.mxu1 %v6299_v49 }
 0x217   : > { %v2229_v41 = vsel %vm7012_vm5, %v2001_v51, %v2228_v17  ;;  %4408 = vrot.lane.b32.xlu0 %v5922_v27, %s6353_s7  ;;  %v5969_v29 = vcombine.low %v7592_v12, %v7600_v58  ;;  %v1531_v17 = vadd.f32 %v7558_v40, %v7493_v19  ;;  %v2289_v59 = vld [vmem:[#allocation2 + $0x48] sm:$0xf]  ;;  %v3042_v12 = vor.u32 %v7372_v4, %v7364_v43 }
 0x218   : > { %v1984_v33 = vor.u32 %v1982_v50, %v7609_v39  ;;  %2230 = vst [vmem:[#allocation2 + $0x78] sm:$0xf] %v2229_v41  ;;  %v2009_v42 = vor.u32 %v2007_v18, %v2006_v57  ;;  %v2011_v47 = vrot.slane %v2006_v57, 4  ;;  %v1734_v50 = vsel %vm6809_vm14, 0, %v1733_v38  ;;  %6209 = vmatpush3.bf16.msra.mxu1 %v6299_v49 }
 0x219   : > { %v1985_v56 = vrot.slane %v7609_v39, 4  ;;  %1735 = vst [vmem:[#allocation2 + $0x74] sm:$0x1] %v1734_v50  ;;  %v3045_v18 = vshll.u32 %v7348_v6, 16  ;;  %v1607_v38 = vmax.f32 %v1531_v17, 0.0  ;;  %v3043_v57 = vrot.slane %v3042_v12, 4 }
 0x21a   : > { %v2222_v51 = vsel %vm7012_vm5, %v1984_v33, %v2221_v31  ;;  %4662 = vrot.lane.b32.xlu1 %v5969_v29, %s6356_s14  ;;  %v2010_v19 = vsel %vm7018_vm6, %v2002_v44, %v2009_v42  ;;  %v2233_v27 = vsel %vm6787_vm12, %v2011_v47, %v2232_v3  ;;  %v3051_v31 = vrot.slane %v3049_v2, 4  ;;  %v7647_v33 = vpop.permute.xlu0 %4396  ;;  %v6300_v6 = vld [vmem:[%s9083_s3 + $0x28] sm:$0xff]  }
 0x21b   : > { %2223 = vst [vmem:[#allocation2 + $0x6c] sm:$0xf] %v2222_v51  ;;  %2231 = vst.msk [vmem:[#allocation2 + $0x7c] sm:$0xf] %vm9117_vm7, %v2010_v19  ;;  %v3047_v43 = vrot.slane %v3045_v18, 5  ;;  %v3055_v4 = vshll.u32 %v7469_v13, 16  ;;  %v6089_v29 = vpack.c.bf16 %v1607_v38, %v1607_v38  ;;  %v4846_v13 = vsel %vm1044_vm0, %v5868_v24, %v7547_v20  ;;  %6210 = vmatprep.subr.bf16.mxu1 %v6300_v6 }
 0x21c   : > { %2234 = vst [vmem:[#allocation2 + $0x80] sm:$0x1] %v2233_v27  ;;  %v2473_v41 = vshrl.u32 %v2289_v59, 16  ;;  %v2476_v44 = vshll.u32 %v2289_v59, 16  ;;  %v2482_v42 = vshll.u32 %v7429_v32, 16  ;;  %v2486_v3 = vshrl.u32 %v7429_v32, 16  ;;  %6211 = vmatpush3.bf16.msra.mxu1 %v6300_v6 }
 0x21d   : > { %v7654_v2 = vrot.slane %v3672_v37, 5  ;;  %v3052_v49 = vor.u32 %v3051_v31, %v3047_v43  ;;  %v1987_v17 = vshrl.u32 %v6089_v29, 16  ;;  %v3048_v50 = vsel %vm6872_vm11, %v3043_v57, %v3047_v43  ;;  %v3938_v51 = vld [vmem:[#allocation2 + $0x60] sm:$0xe]  ;;  %v7668_v38 = vld [vmem:[#allocation2 + $0x68] sm:$0x1] }
 0x21e   : > { %v2475_v47 = vrot.slane %v2473_v41, 4  ;;  %v2478_v59 = vrot.slane %v2476_v44, 5  ;;  %v2484_v32 = vrot.slane %v2482_v42, 5  ;;  %v7663_v12 = vpop.f32.mrb[20].mxu0  ;;  %v3057_v18 = vrot.slane %v3055_v4, 5 }
 0x21f   : > { %v3053_v37 = vrot.slane %v3052_v49, 4  ;;  %v2488_v19 = vrot.slane %v2486_v3, 4  ;;  %v2492_v27 = vshll.u32 %v7435_v60, 16  ;;  %v7666_v7 = vpop.f32.mrb[21].mxu0  ;;  %v1989_v11 = vrot.slane %v1987_v17, 7  ;;  %v7675_v60 = vpop.permute.xlu0 %4812 }
 0x220   : > { %v1990_v24 = vshll.u32 %v6089_v29, 16  ;;  %v2479_v20 = vor.u32 %v2478_v59, %v2475_v47  ;;  %v4040_v31 = vrot.slane %v7506_v0, 5  ;;  %v7671_v57 = vpop.f32.mrb[22].mxu0  ;;  %v2225_v43 = vld [vmem:[#allocation2 + $0x74] sm:$0x1]  ;;  %v5858_v42 = vrot.slane %v3938_v51, 9 }
 0x221   : > { %v3058_v41 = vsel %vm6872_vm11, %v3053_v37, %v3057_v18  ;;  %v2489_v4 = vor.u32 %v2488_v19, %v2484_v32  ;;  %v2494_v44 = vrot.slane %v2492_v27, 5  ;;  %v1994_v6 = vrot.slane %v1989_v11, 4  ;;  %v7680_v48 = vpop.f32.mrb[23].mxu0  ;;  %v6302_v37 = vld [vmem:[%s9083_s3 + $0x30] sm:$0xff]   ;;  %v2287_v19 = vld [vmem:[#allocation2 + $0x3c] sm:$0xf] }
 0x222   : > { %v1992_v3 = vor.u32 %v1990_v24, %v1989_v11  ;;  %v5936_v49 = vcombine.low %v3048_v50, %v3058_v41  ;;  %v2480_v29 = vrot.slane %v2479_v20, 4  ;;  %v4042_v17 = vrot.slane %v4040_v31, 4  ;;  %v7706_v24 = vld [vmem:[#allocation2 + $0x68] sm:$0x1]  ;;  %v2720_v20 = vld [vmem:[#allocation2 + $0x60] sm:$0xe]  ;;  %6212 = vmatprep.subr.bf16.mxu1 %v6302_v37 }
 0x223   : > { %v2490_v47 = vrot.slane %v2489_v4, 4  ;;  %v4043_v59 = vrot.slane %v7668_v38, 5  ;;  %v3627_v30 = vor.u32 %v7467_v54, %v7383_v45  ;;  %v2226_v50 = vsel %vm6787_vm12, %v1994_v6, %v2225_v43  ;;  %v7695_v54 = vld [vmem:[#allocation2 + $0x64] sm:$0xf]  ;;  %6213 = vmatpush3.bf16.msra.mxu1 %v6302_v37  ;;  %v7712_v6 = vpop.permute.xlu0 %4304 }
 0x224   : > { %v1993_v51 = vsel %vm7018_vm6, %v1985_v56, %v1992_v3  ;;  %4484 = vrot.lane.b32.xlu0 %v5936_v49, %s6354_s8  ;;  %v4041_v18 = vsel %vm6884_vm15, %v5858_v42, %v4040_v31  ;;  %v3630_v45 = vshll.u32 %v7374_v5, 16  ;;  %2227 = vst [vmem:[#allocation2 + $0x74] sm:$0x1] %v2226_v50  ;;  %v2485_v39 = vsel %vm6872_vm11, %v2480_v29, %v2484_v32 }
 0x225   : > { %2224 = vst.msk [vmem:[#allocation2 + $0x70] sm:$0xf] %vm9124_vm9, %v1993_v51  ;;  %v2495_v56 = vsel %vm6872_vm11, %v2490_v47, %v2494_v44  ;;  %v4044_v27 = vsel %vm6884_vm15, %v4042_v17, %v4043_v59  ;;  %v3636_v11 = vrot.slane %v3634_v55, 4  ;;  %v3640_v4 = vshll.u32 %v7450_v1, 16  ;;  %v7716_v55 = vpop.permute.xlu1 %4398 }
 0x226   : > { %v5890_v31 = vcombine.low %v2485_v39, %v2495_v56  ;;  %v6002_v43 = vcombine.low %v4041_v18, %v4044_v27  ;;  %v3632_v41 = vrot.slane %v3630_v45, 5  ;;  %v4893_v32 = vsel %vm1093_vm1, %v4846_v13, %v7584_v10  ;;  %v6304_v13 = vld [vmem:[%s9083_s3 + $0x38] sm:$0xff]   ;;  %v3937_v18 = vld [vmem:[#allocation2 + $0x54] sm:$0xe] }
 0x227   : > { %v3628_v44 = vrot.slane %v3627_v30, 4  ;;  %v2837_v42 = vrot.slane %v7695_v54, 5  ;;  %v2449_v3 = vshrl.u32 %v2287_v19, 16  ;;  %v5828_v49 = vrot.slane %v2720_v20, 9  ;;  %6214 = vmatprep.subr.bf16.mxu1 %v6304_v13 }
 0x228   : > { %4232 = vrot.lane.b32.xlu1 %v5890_v31, %s6352_s6  ;;  %4824 = vrot.lane.b32.xlu0 %v6002_v43, %s6358_s24  ;;  %v3637_v5 = vor.u32 %v3636_v11, %v3632_v41  ;;  %v2840_v1 = vrot.slane %v7706_v24, 5  ;;  %v2452_v29 = vshll.u32 %v2287_v19, 16  ;;  %v3642_v47 = vrot.slane %v3640_v4, 5  ;;  %v7733_v31 = vld [vmem:[#allocation2 + $0x5c] sm:$0x1] }
 0x229   : > { %v2839_v17 = vrot.slane %v2837_v42, 4  ;;  %v2451_v10 = vrot.slane %v2449_v3, 4  ;;  %v2458_v30 = vshll.u32 %v7476_v25, 16  ;;  %v2462_v51 = vshrl.u32 %v7476_v25, 16  ;;  %6215 = vmatpush3.bf16.msra.mxu1 %v6304_v13  ;;  %v3329_v3 = vld [vmem:[#allocation2 + $0x54] sm:$0xe] }
 0x22a   : > { %v3638_v59 = vrot.slane %v3637_v5, 4  ;;  %v2454_v37 = vrot.slane %v2452_v29, 5  ;;  %v2468_v50 = vshll.u32 %v7501_v36, 16  ;;  %v3633_v45 = vsel %vm6872_vm11, %v3628_v44, %v3632_v41  ;;  %v3330_v36 = vld [vmem:[#allocation2 + $0x60] sm:$0xe]  ;;  %v7742_v5 = vpop.permute.xlu0 %4556 }
 0x22b   : > { %v2838_v19 = vsel %vm6884_vm15, %v5828_v49, %v2837_v42  ;;  %v2841_v39 = vsel %vm6884_vm15, %v2839_v17, %v2840_v1  ;;  %v2460_v56 = vrot.slane %v2458_v30, 5  ;;  %v2464_v25 = vrot.slane %v2462_v51, 4  ;;  %v7740_v42 = vld [vmem:[#allocation2 + $0x68] sm:$0x1] }
 0x22c   : > { %v3643_v27 = vsel %vm6872_vm11, %v3638_v59, %v3642_v47  ;;  %v5908_v11 = vcombine.low %v2838_v19, %v2841_v39  ;;  %v2455_v20 = vor.u32 %v2454_v37, %v2451_v10  ;;  %v7737_v41 = vsel %vm1126_vm2, %v4893_v32, %v7647_v33  ;;  %v7745_v47 = vpop.permute.xlu1 %4558  ;;  %v7748_v10 = vld [vmem:[#allocation2 + $0x5c] sm:$0x1]  ;;  %v7754_v59 = vld [vmem:[#allocation2 + $0x58] sm:$0xf] }
 0x22d   : > { %v5983_v43 = vcombine.low %v3633_v45, %v3643_v27  ;;  %v5857_v4 = vrot.slane %v3937_v18, 9  ;;  %v4033_v44 = vrot.slane %v7600_v58, 5  ;;  %v2465_v1 = vor.u32 %v2464_v25, %v2460_v56  ;;  %9125 = vst [vmem:[#allocation4_spill] sm:$0xff] %v7745_v47  ;;  %v2719_v45 = vld [vmem:[#allocation2 + $0x54] sm:$0xe] }
 0x22e   : > { %4316 = vrot.lane.b32.xlu0 %v5908_v11, %s6351_s30  ;;  %v2456_v49 = vrot.slane %v2455_v20, 4  ;;  %v2470_v29 = vrot.slane %v2468_v50, 5  ;;  %v3438_v17 = vrot.slane %v7517_v8, 5  ;;  %v4036_v30 = vrot.slane %v7733_v31, 5  ;;  %v7764_v20 = vld [vmem:[#allocation2 + $0x5c] sm:$0x1] }
 0x22f   : > { %4738 = vrot.lane.b32.xlu1 %v5983_v43, %s6357_s21  ;;  %v4034_v33 = vsel %vm6884_vm15, %v5857_v4, %v4033_v44  ;;  %v4035_v32 = vrot.slane %v4033_v44, 4  ;;  %v5843_v13 = vrot.slane %v3330_v36, 9  ;;  %v2466_v37 = vrot.slane %v2465_v1, 4  ;;  %v3516_v25 = vld [vmem:[#allocation2 + $0x78] sm:$0xf]  ;;  %v7766_v36 = vpop.permute.xlu0 %4656 }
 0x230   : > { %v3440_v51 = vrot.slane %v3438_v17, 4  ;;  %v3441_v50 = vrot.slane %v7740_v42, 5  ;;  %v5842_v18 = vrot.slane %v3329_v3, 9  ;;  %v2461_v19 = vsel %vm6872_vm11, %v2456_v49, %v2460_v56  ;;  %9126 = vst [vmem:[#allocation5_spill] sm:$0xff] %v7766_v36  ;;  %v7773_v3 = vld [vmem:[#allocation2 + $0x78] sm:$0xf]  ;;  %v7779_v16 = vpop.permute.xlu1 %4302 }
 0x231   : > { %v4037_v39 = vsel %vm6884_vm15, %v4035_v32, %v4036_v30  ;;  %v3439_v27 = vsel %vm6884_vm15, %v5843_v13, %v3438_v17  ;;  %v3431_v11 = vrot.slane %v7581_v46, 5  ;;  %v2471_v43 = vsel %vm6872_vm11, %v2466_v37, %v2470_v29  ;;  %v7776_v30 = vld [vmem:[#allocation2 + $0x7c] sm:$0xf] }
 0x232   : > { %v6001_v4 = vcombine.low %v4034_v33, %v4037_v39  ;;  %v3442_v56 = vsel %vm6884_vm15, %v3440_v51, %v3441_v50  ;;  %v2830_v44 = vrot.slane %v7754_v59, 5  ;;  %v5889_v49 = vcombine.low %v2461_v19, %v2471_v43  ;;  %v7789_v39 = vld [vmem:[#allocation2 + $0x7c] sm:$0xf] }
 0x233   : > { %v3433_v1 = vrot.slane %v3431_v11, 4  ;;  %v3434_v17 = vrot.slane %v7748_v10, 5  ;;  %v5827_v32 = vrot.slane %v2719_v45, 9  ;;  %v5955_v13 = vcombine.low %v3439_v27, %v3442_v56 }
 0x234   : > { %4822 = vrot.lane.b32.xlu0 %v6001_v4, %s6358_s24  ;;  %v2832_v29 = vrot.slane %v2830_v44, 4  ;;  %v2833_v33 = vrot.slane %v7764_v20, 5  ;;  %v3741_v37 = vshrl.u32 %v3516_v25, 16  ;;  %4230 = vrot.lane.b32.xlu1 %v5889_v49, %s6352_s6  ;;  %v3432_v51 = vsel %vm6884_vm15, %v5842_v18, %v3431_v11  ;;  %v1683_v4 = vld [vmem:[#allocation2 + $0x84] sm:$0x1] }
 0x235   : > { %v3435_v50 = vsel %vm6884_vm15, %v3433_v1, %v3434_v17  ;;  %v2831_v45 = vsel %vm6884_vm15, %v5827_v32, %v2830_v44  ;;  %v3744_v19 = vshll.u32 %v3516_v25, 16  ;;  %v3156_v56 = vshrl.u32 %v7773_v3, 16  ;;  %v7800_v1 = vpop.permute.xlu0 %4732 }
 0x236   : > { %v5954_v27 = vcombine.low %v3432_v51, %v3435_v50  ;;  %v2834_v43 = vsel %vm6884_vm15, %v2832_v29, %v2833_v33  ;;  %v7795_v28 = vrot.slane %v3741_v37, 4  ;;  %v5972_v11 = vcombine.low %v3516_v25, %v7776_v30  ;;  %v7808_v33 = vpop.permute.xlu1 %4402 }
 0x237   : > { %v5907_v49 = vcombine.low %v2831_v45, %v2834_v43  ;;  %v7797_v18 = vrot.slane %v3744_v19, 5  ;;  %v3159_v44 = vshll.u32 %v7773_v3, 16  ;;  %v3699_v32 = vor.u32 %v7526_v23, %v7519_v62  ;;  %9127 = vst [vmem:[#allocation6_spill] sm:$0xff] %v7808_v33  ;;  %v1686_v19 = vld [vmem:[#allocation2 + $0x90] sm:$0x1] }
 0x238   : > { %4568 = vrot.lane.b32.xlu0 %v5954_v27, %s6355_s9  ;;  %v3702_v29 = vshll.u32 %v7506_v0, 16  ;;  %4570 = vrot.lane.b32.xlu1 %v5955_v13, %s6355_s9  ;;  %v7811_v37 = vrot.slane %v3156_v56, 4  ;;  %v9128_v25 = vshrl.u32 %v7506_v0, 16  ;;  %v3712_v50 = vshll.u32 %v7668_v38, 16 }
 0x239   : > { %v3114_v45 = vor.u32 %v7552_v34, %v7540_v26  ;;  %v3700_v27 = vrot.slane %v3699_v32, 4  ;;  %v3117_v62 = vshll.u32 %v7517_v8, 16  ;;  %v9129_v23 = vshrl.u32 %v7517_v8, 16 }
 0x23a   : > { %v3708_v51 = vrot.slane %v9128_v25, 4  ;;  %v3704_v43 = vrot.slane %v3702_v29, 5  ;;  %v5925_v13 = vcombine.low %v7773_v3, %v7789_v39  ;;  %v3714_v56 = vrot.slane %v3712_v50, 5  ;;  %v1742_v25 = vld [vmem:[#allocation2 + $0x98] sm:$0x1] }
 0x23b   : > { %v3123_v17 = vrot.slane %v9129_v23, 4  ;;  %v3127_v0 = vshll.u32 %v7740_v42, 16  ;;  %v1552_v38 = vadd.f32 %v7558_v40, %v7663_v12  ;;  %v3115_v34 = vrot.slane %v3114_v45, 4  ;;  %v7829_v29 = vld [vmem:[#allocation2 + $0x6c] sm:$0xf] }
 0x23c   : > { %4668 = vrot.lane.b32.xlu0 %v5972_v11, %s6356_s14  ;;  %v3709_v26 = vor.u32 %v3708_v51, %v3704_v43  ;;  %v3119_v32 = vrot.slane %v3117_v62, 5  ;;  %v1687_v8 = vsel %vm6787_vm12, 0, %v1686_v19  ;;  %4314 = vrot.lane.b32.xlu1 %v5907_v49, %s6351_s30  ;;  %v3705_v3 = vsel %vm6872_vm11, %v3700_v27, %v3704_v43  ;;  %v7838_v51 = vpop.permute.xlu0 %4400  ;;  %v7842_v62 = vpop.permute.xlu1 %4478 }
 0x23d   : > { %v1612_v42 = vmax.f32 %v1552_v38, 0.0  ;;  %1688 = vst [vmem:[#allocation2 + $0x90] sm:$0x1] %v1687_v8  ;;  %v1544_v12 = vadd.f32 %v7558_v40, %v7666_v7  ;;  %v1684_v11 = vsel %vm6787_vm12, 0, %v1683_v4  ;;  %9130 = vst [vmem:[#allocation7_spill] sm:$0xff] %v7838_v51  ;;  %v3129_v19 = vrot.slane %v3127_v0, 5 }
 0x23e   : > { %v3710_v50 = vrot.slane %v3709_v26, 4  ;;  %v3124_v45 = vor.u32 %v3123_v17, %v3119_v32  ;;  %1685 = vst [vmem:[#allocation2 + $0x84] sm:$0x1] %v1684_v11  ;;  %v1555_v49 = vadd.f32 %v7558_v40, %v7671_v57  ;;  %9131 = vst [vmem:[#allocation8_spill] sm:$0xff] %v7842_v62  ;;  %v7844_v27 = vpop.f32.mrb[24].mxu0  ;;  %v1743_v7 = vsel %vm6809_vm14, 0, %v1742_v25 }
 0x23f   : > { %v6094_v43 = vpack.c.bf16 %v1612_v42, %v1612_v42  ;;  %v1610_v23 = vmax.f32 %v1544_v12, 0.0  ;;  %v3132_v4 = vshrl.u32 %v7829_v29, 16  ;;  %v7849_v38 = vpop.f32.mrb[25].mxu0  ;;  %1744 = vst [vmem:[#allocation2 + $0x98] sm:$0x1] %v1743_v7  ;;  %v3135_v57 = vshll.u32 %v7829_v29, 16 }
 0x240   : > { %v3715_v17 = vsel %vm6872_vm11, %v3710_v50, %v3714_v56  ;;  %v3125_v0 = vrot.slane %v3124_v45, 4  ;;  %v1613_v26 = vmax.f32 %v1555_v49, 0.0  ;;  %v7854_v8 = vpop.f32.mrb[26].mxu0  ;;  %v7856_v11 = vrot.slane %v3159_v44, 5  ;;  %4414 = vrot.lane.b32.xlu1 %v5925_v13, %s6353_s7  ;;  %v7865_v49 = vld [vmem:[#allocation2 + $0x70] sm:$0xf]  ;;  %v7874_v47 = vpop.permute.xlu0 %4476 }
 0x241   : > { %v5986_v42 = vcombine.low %v3705_v3, %v3715_v17  ;;  %v2030_v25 = vshrl.u32 %v6094_v43, 16  ;;  %v6092_v12 = vpack.c.bf16 %v1610_v23, %v1610_v23  ;;  %v7859_v33 = vpop.f32.mrb[27].mxu0  ;;  %v3120_v36 = vsel %vm6872_vm11, %v3115_v34, %v3119_v32  ;;  %v7867_v7 = vld [vmem:[#allocation2 + $0x6c] sm:$0xf]  ;;  %v7872_v17 = vld [vmem:[#allocation2 + $0x70] sm:$0xf] }
 0x242   : > { %9132 = vst [vmem:[#allocation9_spill] sm:$0xff] %v7859_v33  ;;  %v3130_v56 = vsel %vm6872_vm11, %v3125_v0, %v3129_v19  ;;  %v2033_v50 = vshll.u32 %v6094_v43, 16  ;;  %v6095_v45 = vpack.c.bf16 %v1613_v26, %v1613_v26  ;;  %v7870_v23 = vrot.slane %v3132_v4, 4  ;;  %v7878_v26 = vpop.permute.xlu1 %4654 }
 0x243   : > { %4744 = vrot.lane.b32.xlu0 %v5986_v42, %s6357_s21  ;;  %v5939_v44 = vcombine.low %v3120_v36, %v3130_v56  ;;  %v2032_v13 = vrot.slane %v2030_v25, 7  ;;  %v2013_v3 = vshrl.u32 %v6092_v12, 16  ;;  %v2016_v32 = vshll.u32 %v6092_v12, 16  ;;  %9133 = vst [vmem:[#allocation10_spill] sm:$0xff] %v7878_v26  ;;  %v1739_v56 = vld [vmem:[#allocation2 + $0x8c] sm:$0x1] }
 0x244   : > { %v2242_v34 = vld [vmem:[#allocation2 + $0x90] sm:$0xf]  ;;  %v2038_v19 = vshrl.u32 %v6095_v45, 16  ;;  %v2041_v43 = vshll.u32 %v6095_v45, 16  ;;  %v7876_v0 = vrot.slane %v3135_v57, 5  ;;  %v5924_v25 = vcombine.low %v7829_v29, %v7865_v49 }
 0x245   : > { %4490 = vrot.lane.b32.xlu1 %v5939_v44, %s6354_s8  ;;  %v2035_v42 = vor.u32 %v2033_v50, %v2032_v13  ;;  %v7881_v36 = vrot.slane %v2013_v3, 7  ;;  %v2036_v62 = vrot.slane %v2032_v13, 4  ;;  %v2235_v51 = vld [vmem:[#allocation2 + $0x84] sm:$0xf]  ;;  %v5971_v29 = vcombine.low %v7867_v7, %v7872_v17  ;;  %v2293_v45 = vld [vmem:[#allocation2 + $0x60] sm:$0xf] }
 0x246   : > { %v2040_v12 = vrot.slane %v2038_v19, 7  ;;  %v2246_v44 = vld [vmem:[#allocation2 + $0x98] sm:$0x1]  ;;  %v1547_v57 = vadd.f32 %v7558_v40, %v7680_v48  ;;  %vm9149_vm7 = vcmask 195584   ;;  %vm9150_vm9 = vcmask 228352  }
 0x247   : > { %v2243_v26 = vsel %vm7012_vm5, %v2035_v42, %v2242_v34  ;;  %v2018_v50 = vor.u32 %v2016_v32, %v7881_v36  ;;  %4412 = vrot.lane.b32.xlu0 %v5924_v25, %s6353_s7  ;;  %v2019_v13 = vrot.slane %v7881_v36, 4  ;;  %v1740_v32 = vsel %vm6809_vm14, 0, %v1739_v56  ;;  %v7906_v36 = vpop.permute.xlu0 %4816  ;;  %v7914_v56 = vpop.permute.xlu1 %4224 }
 0x248   : > { %2244 = vst [vmem:[#allocation2 + $0x90] sm:$0xf] %v2243_v26  ;;  %v2043_v19 = vor.u32 %v2041_v43, %v2040_v12  ;;  %v2045_v4 = vrot.slane %v2040_v12, 4  ;;  %v3090_v42 = vor.u32 %v7605_v52, %v7598_v15  ;;  %v3093_v26 = vshll.u32 %v7581_v46, 16  ;;  %9134 = vst [vmem:[#allocation11_spill] sm:$0xff] %v7906_v36 }
 0x249   : > { %v2236_v34 = vsel %vm7012_vm5, %v2018_v50, %v2235_v51  ;;  %4666 = vrot.lane.b32.xlu1 %v5971_v29, %s6356_s14  ;;  %v1611_v51 = vmax.f32 %v1547_v57, 0.0  ;;  %1741 = vst [vmem:[#allocation2 + $0x8c] sm:$0x1] %v1740_v32  ;;  %v9135_v43 = vshrl.u32 %v7581_v46, 16  ;;  %v3103_v12 = vshll.u32 %v7748_v10, 16 }
 0x24a   : > { %2237 = vst [vmem:[#allocation2 + $0x84] sm:$0xf] %v2236_v34  ;;  %v2044_v40 = vsel %vm7018_vm6, %v2036_v62, %v2043_v19  ;;  %v2247_v48 = vsel %vm6787_vm12, %v2045_v4, %v2246_v44  ;;  %v3091_v15 = vrot.slane %v3090_v42, 4  ;;  %v3095_v52 = vrot.slane %v3093_v26, 5  ;;  %v3940_v57 = vld [vmem:[#allocation2 + $0x78] sm:$0xe] }
 0x24b   : > { %v3099_v25 = vrot.slane %v9135_v43, 4  ;;  %2245 = vst.msk [vmem:[#allocation2 + $0x94] sm:$0xf] %vm9136_vm13, %v2044_v40  ;;  %2248 = vst [vmem:[#allocation2 + $0x98] sm:$0x1] %v2247_v48  ;;  %v2521_v50 = vshrl.u32 %v2293_v45, 16  ;;  %v6093_v29 = vpack.c.bf16 %v1611_v51, %v1611_v51  ;;  %v7925_v36 = vpop.permute.xlu0 %4308 }
 0x24c   : > { %v2524_v62 = vshll.u32 %v2293_v45, 16  ;;  %v2530_v19 = vshll.u32 %v7695_v54, 16  ;;  %v2534_v4 = vshrl.u32 %v7695_v54, 16  ;;  %v3096_v46 = vsel %vm6872_vm11, %v3091_v15, %v3095_v52  ;;  %v7922_v40 = vld [vmem:[#allocation2 + $0x80] sm:$0x1]  ;;  %9137 = vst [vmem:[#allocation12_spill] sm:$0xff] %v7925_v36 }
 0x24d   : > { %v3100_v44 = vor.u32 %v3099_v25, %v3095_v52  ;;  %v3105_v34 = vrot.slane %v3103_v12, 5  ;;  %v2523_v32 = vrot.slane %v2521_v50, 4  ;;  %v2021_v42 = vshrl.u32 %v6093_v29, 16  ;;  %v7929_v52 = vpop.permute.xlu1 %4222 }
 0x24e   : > { %v2024_v26 = vshll.u32 %v6093_v29, 16  ;;  %v2526_v48 = vrot.slane %v2524_v62, 5  ;;  %v2532_v10 = vrot.slane %v2530_v19, 5  ;;  %v2536_v51 = vrot.slane %v2534_v4, 4 }
 0x24f   : > { %v3101_v43 = vrot.slane %v3100_v44, 4  ;;  %v2540_v45 = vshll.u32 %v7706_v24, 16  ;;  %v5860_v3 = vrot.slane %v3940_v57, 9  ;;  %v2023_v54 = vrot.slane %v2021_v42, 7 }
 0x250   : > { %v2527_v33 = vor.u32 %v2526_v48, %v2523_v32  ;;  %v4054_v15 = vrot.slane %v7776_v30, 5  ;;  %v4057_v25 = vrot.slane %v7922_v40, 5  ;;  %v2239_v12 = vld [vmem:[#allocation2 + $0x8c] sm:$0x1]  ;;  %v2537_v29 = vor.u32 %v2536_v51, %v2532_v10 }
 0x251   : > { %v3106_v50 = vsel %vm6872_vm11, %v3101_v43, %v3105_v34  ;;  %v2542_v62 = vrot.slane %v2540_v45, 5  ;;  %v3675_v24 = vor.u32 %v7654_v2, %v7615_v22  ;;  %v2026_v19 = vor.u32 %v2024_v26, %v2023_v54  ;;  %v7953_v45 = vld [vmem:[#allocation2 + $0x74] sm:$0x1] }
 0x252   : > { %v2028_v4 = vrot.slane %v2023_v54, 4  ;;  %v5938_v57 = vcombine.low %v3096_v46, %v3106_v50  ;;  %v2528_v44 = vrot.slane %v2527_v33, 4  ;;  %v2538_v32 = vrot.slane %v2537_v29, 4  ;;  %v3939_v33 = vld [vmem:[#allocation2 + $0x6c] sm:$0xe]  ;;  %v7961_v29 = vpop.permute.xlu1 %4562 }
 0x253   : > { %v4055_v42 = vsel %vm6884_vm15, %v5860_v3, %v4054_v15  ;;  %v4056_v48 = vrot.slane %v4054_v15, 4  ;;  %v3676_v36 = vrot.slane %v3675_v24, 4  ;;  %v2027_v9 = vsel %vm7018_vm6, %v2019_v13, %v2026_v19  ;;  %v2291_v46 = vld [vmem:[#allocation2 + $0x54] sm:$0xf]  ;;  %9141 = vst [vmem:[#allocation13_spill] sm:$0xff] %v7961_v29 }
 0x254   : > { %v2240_v34 = vsel %vm6787_vm12, %v2028_v4, %v2239_v12  ;;  %4488 = vrot.lane.b32.xlu0 %v5938_v57, %s6354_s8  ;;  %v2533_v22 = vsel %vm6872_vm11, %v2528_v44, %v2532_v10  ;;  %v3678_v2 = vshll.u32 %v7600_v58, 16  ;;  %2238 = vst.msk [vmem:[#allocation2 + $0x88] sm:$0xf] %vm9138_vm10, %v2027_v9  ;;  %v2543_v3 = vsel %vm6872_vm11, %v2538_v32, %v2542_v62  ;;  %v7955_v10 = vpop.permute.xlu0 %4814 }
 0x255   : > { %2241 = vst [vmem:[#allocation2 + $0x8c] sm:$0x1] %v2240_v34  ;;  %v4058_v13 = vsel %vm6884_vm15, %v4056_v48, %v4057_v25  ;;  %v9139_v26 = vshrl.u32 %v7600_v58, 16  ;;  %v3688_v51 = vshll.u32 %v7733_v31, 16  ;;  %v9140_v54 = vshrl.u32 %v7867_v7, 16 }
 0x256   : > { %v5892_v9 = vcombine.low %v2533_v22, %v2543_v3  ;;  %v6004_v12 = vcombine.low %v4055_v42, %v4058_v13  ;;  %v3680_v50 = vrot.slane %v3678_v2, 5  ;;  %v5859_v25 = vrot.slane %v3939_v33, 9  ;;  %v3331_v34 = vld [vmem:[#allocation2 + $0x6c] sm:$0xe] }
 0x257   : > { %v3684_v43 = vrot.slane %v9139_v26, 4  ;;  %v7959_v15 = vrot.slane %v9140_v54, 4  ;;  %v3690_v62 = vrot.slane %v3688_v51, 5  ;;  %v4047_v58 = vrot.slane %v7872_v17, 5 }
 0x258   : > { %v2497_v24 = vshrl.u32 %v2291_v46, 16  ;;  %4236 = vrot.lane.b32.xlu1 %v5892_v9, %s6352_s6  ;;  %4828 = vrot.lane.b32.xlu0 %v6004_v12, %s6358_s24  ;;  %v4050_v19 = vrot.slane %v7953_v45, 5  ;;  %v2500_v4 = vshll.u32 %v2291_v46, 16  ;;  %v2506_v57 = vshll.u32 %v7754_v59, 16  ;;  %v7979_v51 = vpop.permute.xlu0 %4560 }
 0x259   : > { %v3685_v31 = vor.u32 %v3684_v43, %v3680_v50  ;;  %v3681_v44 = vsel %vm6872_vm11, %v3676_v36, %v3680_v50  ;;  %v4049_v32 = vrot.slane %v4047_v58, 4  ;;  %v2510_v48 = vshrl.u32 %v7754_v59, 16  ;;  %v7976_v43 = vld [vmem:[#allocation2 + $0x74] sm:$0x1]  ;;  %v3332_v50 = vld [vmem:[#allocation2 + $0x78] sm:$0xe] }
 0x25a   : > { %v2499_v42 = vrot.slane %v2497_v24, 4  ;;  %v2502_v2 = vrot.slane %v2500_v4, 5  ;;  %v2508_v33 = vrot.slane %v2506_v57, 5  ;;  %v2516_v3 = vshll.u32 %v7764_v20, 16  ;;  %v7989_v57 = vld [vmem:[#allocation2 + $0x80] sm:$0x1] }
 0x25b   : > { %v3686_v22 = vrot.slane %v3685_v31, 4  ;;  %v4048_v13 = vsel %vm6884_vm15, %v5859_v25, %v4047_v58  ;;  %v4051_v46 = vsel %vm6884_vm15, %v4049_v32, %v4050_v19  ;;  %v2512_v26 = vrot.slane %v2510_v48, 4  ;;  %v7981_v59 = vpop.f32.mrb[28].mxu0  ;;  %v7985_v25 = vpop.permute.xlu1 %4306 }
 0x25c   : > { %v3445_v36 = vrot.slane %v7865_v49, 5  ;;  %v6003_v9 = vcombine.low %v4048_v13, %v4051_v46  ;;  %v2503_v20 = vor.u32 %v2502_v2, %v2499_v42  ;;  %v5844_v12 = vrot.slane %v3331_v34, 9  ;;  %9142 = vst [vmem:[#allocation14_spill] sm:$0xff] %v7985_v25  ;;  %v7987_v58 = vpop.f32.mrb[29].mxu0  ;;  %v8022_v25 = vld [vmem:[#allocation2 + $0x74] sm:$0x1] }
 0x25d   : > { %v3691_v54 = vsel %vm6872_vm11, %v3686_v22, %v3690_v62  ;;  %v2513_v31 = vor.u32 %v2512_v26, %v2508_v33  ;;  %v2518_v19 = vrot.slane %v2516_v3, 5  ;;  %v7991_v32 = vpop.f32.mrb[30].mxu0  ;;  %v3448_v42 = vrot.slane %v7976_v43, 5 }
 0x25e   : > { %v5985_v24 = vcombine.low %v3681_v44, %v3691_v54  ;;  %v3447_v4 = vrot.slane %v3445_v36, 4  ;;  %4826 = vrot.lane.b32.xlu0 %v6003_v9, %s6358_s24  ;;  %v2504_v48 = vrot.slane %v2503_v20, 4  ;;  %v3446_v62 = vsel %vm6884_vm15, %v5844_v12, %v3445_v36  ;;  %v8002_v13 = vpop.f32.mrb[31].mxu0  ;;  %v8009_v9 = vld [vmem:[#allocation2 + $0x70] sm:$0xf] }
 0x25f   : > { %v3452_v34 = vrot.slane %v7789_v39, 5  ;;  %v2514_v44 = vrot.slane %v2513_v31, 4  ;;  %v5845_v22 = vrot.slane %v3332_v50, 9  ;;  %v3747_v2 = vor.u32 %v7797_v18, %v7795_v28  ;;  %9143 = vst [vmem:[#allocation15_spill] sm:$0xff] %v8002_v13  ;;  %v2721_v20 = vld [vmem:[#allocation2 + $0x6c] sm:$0xe]  ;;  %v8011_v12 = vpop.permute.xlu1 %4406  ;;  %v8015_v31 = vpop.permute.xlu0 %4660 }
 0x260   : > { %4742 = vrot.lane.b32.xlu1 %v5985_v24, %s6357_s21  ;;  %v3750_v3 = vshll.u32 %v7776_v30, 16  ;;  %v2509_v46 = vsel %vm6872_vm11, %v2504_v48, %v2508_v33  ;;  %v3449_v26 = vsel %vm6884_vm15, %v3447_v4, %v3448_v42  ;;  %v3455_v54 = vrot.slane %v7989_v57, 5  ;;  %9144 = vst [vmem:[#allocation16_spill] sm:$0xff] %v8011_v12 }
 0x261   : > { %v3454_v36 = vrot.slane %v3452_v34, 4  ;;  %v2519_v28 = vsel %vm6872_vm11, %v2514_v44, %v2518_v19  ;;  %v5956_v18 = vcombine.low %v3446_v62, %v3449_v26  ;;  %v3748_v50 = vrot.slane %v3747_v2, 4 }
 0x262   : > { %v3752_v24 = vrot.slane %v3750_v3, 5  ;;  %v5891_v33 = vcombine.low %v2509_v46, %v2519_v28  ;;  %v9145_v48 = vshrl.u32 %v7776_v30, 16  ;;  %v3760_v29 = vshll.u32 %v7922_v40, 16 }
 0x263   : > { %v3456_v4 = vsel %vm6884_vm15, %v3454_v36, %v3455_v54  ;;  %v9146_v12 = vshll.u32 %v7867_v7, 16  ;;  %4572 = vrot.lane.b32.xlu0 %v5956_v18, %s6355_s9  ;;  %v3453_v19 = vsel %vm6884_vm15, %v5845_v22, %v3452_v34  ;;  %v5829_v62 = vrot.slane %v2721_v20, 9  ;;  %v6319_v36 = vld [vmem:[#allocation2 + $0x1c] sm:$0xf]  ;;  %v6320_v54 = vld [vmem:[#allocation2 + $0x18] sm:$0xf]  ;;  %v8044_v18 = vpop.permute.xlu1 %4482 }
 0x264   : > { %v3756_v42 = vrot.slane %v9145_v48, 4  ;;  %v2844_v44 = vrot.slane %v8009_v9, 5  ;;  %4234 = vrot.lane.b32.xlu1 %v5891_v33, %s6352_s6  ;;  %v5957_v30 = vcombine.low %v3453_v19, %v3456_v4  ;;  %v3753_v40 = vsel %vm6872_vm11, %v3748_v50, %v3752_v24  ;;  %v8054_v33 = vpop.permute.xlu0 %4736 }
 0x265   : > { %v8026_v13 = vrot.slane %v9146_v12, 5  ;;  %v4957_v7 = vsel %vm1159_vm3, %v7737_v41, %v7874_v47  ;;  %v3762_v3 = vrot.slane %v3760_v29, 5  ;;  %v2847_v34 = vrot.slane %v8022_v25, 5 }
 0x266   : > { %v3757_v2 = vor.u32 %v3756_v42, %v3752_v24  ;;  %v2845_v46 = vsel %vm6884_vm15, %v5829_v62, %v2844_v44  ;;  %v2846_v26 = vrot.slane %v2844_v44, 4  ;;  %v5870_v20 = vcombine.low %v6320_v54, %v6319_v36 }
 0x267   : > { %v3138_v12 = vor.u32 %v7876_v0, %v7870_v23  ;;  %v3141_v28 = vshll.u32 %v7865_v49, 16  ;;  %v4989_v47 = vsel %vm1192_vm4, %v4957_v7, %v7742_v5  ;;  %v9147_v29 = vshrl.u32 %v7865_v49, 16  ;;  %v8062_v5 = vld [vmem:[#allocation2 + $0x84] sm:$0xf]  ;;  %v6322_v7 = vld [vmem:[#allocation2 + $0xc] sm:$0xf] }
 0x268   : > { %v3758_v22 = vrot.slane %v3757_v2, 4  ;;  %v2848_v41 = vsel %vm6884_vm15, %v2846_v26, %v2847_v34  ;;  %v3162_v24 = vor.u32 %v7856_v11, %v7811_v37  ;;  %4574 = vrot.lane.b32.xlu1 %v5957_v30, %s6355_s9  ;;  %v4852_v4 = vsel %vm1044_vm0, %v5870_v20, %v7914_v56  ;;  %v6321_v2 = vld [vmem:[#allocation2 + $0x10] sm:$0xf]  ;;  %v8089_v20 = vld [vmem:[#allocation2 + $0x88] sm:$0xf] }
 0x269   : > { %v3147_v50 = vrot.slane %v9147_v29, 4  ;;  %v5909_v0 = vcombine.low %v2845_v46, %v2848_v41  ;;  %v3151_v48 = vshll.u32 %v7976_v43, 16  ;;  %v3139_v42 = vrot.slane %v3138_v12, 4  ;;  %v1692_v12 = vld [vmem:[#allocation2 + $0xa8] sm:$0x1] }
 0x26a   : > { %v3763_v23 = vsel %vm6872_vm11, %v3758_v22, %v3762_v3  ;;  %v3143_v19 = vrot.slane %v3141_v28, 5  ;;  %v3163_v62 = vrot.slane %v3162_v24, 4  ;;  %v3165_v37 = vshll.u32 %v7789_v39, 16  ;;  %v8081_v22 = vpop.permute.xlu1 %4658  ;;  %v8091_v28 = vpop.permute.xlu0 %4404  ;;  %v8098_v29 = vld [vmem:[#allocation2 + $0x8c] sm:$0x1] }
 0x26b   : > { %v5988_v49 = vcombine.low %v3753_v40, %v3763_v23  ;;  %v9148_v11 = vshrl.u32 %v7789_v39, 16  ;;  %v3175_v30 = vshll.u32 %v7989_v57, 16  ;;  %v5869_v3 = vcombine.low %v6322_v7, %v6321_v2  ;;  %v8110_v23 = vld [vmem:[%s9082_s2] ss:$0 sm:$0xff] }
 0x26c   : > { %v8071_v56 = vsel %vm1093_vm1, %v4852_v4, %v7712_v6  ;;  %v3148_v43 = vor.u32 %v3147_v50, %v3143_v19  ;;  %v5021_v40 = vsel %vm9149_vm7, %v4989_v47, %v7613_v14  ;;  %v3765_v46 = vshrl.u32 %v8062_v5, 16  ;;  %4318 = vrot.lane.b32.xlu1 %v5909_v0, %s6351_s30  ;;  %v1689_v4 = vld [vmem:[#allocation2 + $0x9c] sm:$0x1]  ;;  %vm9155_vm7 = vmmov %vm9138_vm10 }
 0x26d   : > { %v3171_v44 = vrot.slane %v9148_v11, 4  ;;  %4748 = vrot.lane.b32.xlu0 %v5988_v49, %s6357_s21  ;;  %v3153_v39 = vrot.slane %v3151_v48, 5  ;;  %v3167_v26 = vrot.slane %v3165_v37, 5  ;;  %v4849_v57 = vsel %vm1044_vm0, %v5869_v3, %v7929_v52 }
 0x26e   : > { %v5053_v34 = vsel %vm9150_vm9, %v5021_v40, %v7800_v1  ;;  %v3144_v6 = vsel %vm6872_vm11, %v3139_v42, %v3143_v19  ;;  %v3149_v36 = vrot.slane %v3148_v43, 4  ;;  %v4895_v14 = vsel %vm1093_vm1, %v4849_v57, %v7779_v16  ;;  %v3941_v16 = vld [vmem:[#allocation2 + $0x84] sm:$0xe]  ;;  %v1748_v19 = vld [vmem:[#allocation2 + $0xb0] sm:$0x1]  ;;  %v8129_v43 = vpop.permute.xlu1 %4228  ;;  %v8133_v57 = vpop.permute.xlu0 %4480 }
 0x26f   : > { %vm9151_vm13 = vcmask 261120   ;;  %v3168_v1 = vsel %vm6872_vm11, %v3163_v62, %v3167_v26  ;;  %v3172_v52 = vor.u32 %v3171_v44, %v3167_v26  ;;  %v3177_v41 = vrot.slane %v3175_v30, 5  ;;  %v2297_v30 = vld [vmem:[#allocation2 + $0x78] sm:$0xf] }
 0x270   : > { %v5085_v54 = vsel %vm9151_vm13, %v5053_v34, %v7675_v60  ;;  %v8096_v47 = vrot.slane %v3765_v46, 4  ;;  %v3154_v60 = vsel %vm6872_vm11, %v3149_v36, %v3153_v39  ;;  %v8104_v50 = vsel %vm1126_vm2, %v4895_v14, %v7716_v55  ;;  %v8137_v36 = vld [vmem:[#allocation2 + $0x7c] sm:$0xf] }
 0x271   : > { %6216 = vmatprep.mubr.msk.bf16.mxu1 %vm1324_vm8, %v5085_v54  ;;  %v3768_v24 = vshll.u32 %v8062_v5, 16  ;;  %v1568_v0 = vadd.f32 %v8110_v23, %v7844_v27  ;;  %v5940_v48 = vcombine.low %v3144_v6, %v3154_v60  ;;  %v3173_v49 = vrot.slane %v3172_v52, 4 }
 0x272   : > { %v5973_v42 = vcombine.low %v8062_v5, %v8089_v20  ;;  %v1693_v55 = vsel %vm6787_vm12, 0, %v1692_v12  ;;  %v5861_v37 = vrot.slane %v3941_v16, 9  ;;  %v4061_v11 = vrot.slane %v8089_v20, 5 }
 0x273   : > { %v1616_v62 = vmax.f32 %v1568_v0, 0.0  ;;  %1694 = vst [vmem:[#allocation2 + $0xa8] sm:$0x1] %v1693_v55  ;;  %v4064_v44 = vrot.slane %v8098_v29, 5  ;;  %4492 = vrot.lane.b32.xlu0 %v5940_v48, %s6354_s8  ;;  %v3178_v27 = vsel %vm6872_vm11, %v3173_v49, %v3177_v41  ;;  %v1560_v2 = vadd.f32 %v8110_v23, %v7849_v38  ;;  %v1745_v0 = vld [vmem:[#allocation2 + $0xa4] sm:$0x1] }
 0x274   : > { %v1690_v7 = vsel %vm6787_vm12, 0, %v1689_v4  ;;  %v1571_v3 = vadd.f32 %v8110_v23, %v7854_v8  ;;  %v5941_v40 = vcombine.low %v3168_v1, %v3178_v27  ;;  %v4062_v39 = vsel %vm6884_vm15, %v5861_v37, %v4061_v11  ;;  %v8142_v48 = vld [vmem:[#allocation2 + $0x80] sm:$0x1]  ;;  %v8147_v27 = vpop.permute.xlu1 %4734 }
 0x275   : > { %v6098_v46 = vpack.c.bf16 %v1616_v62, %v1616_v62  ;;  %v4063_v26 = vrot.slane %v4061_v11, 4  ;;  %1691 = vst [vmem:[#allocation2 + $0x9c] sm:$0x1] %v1690_v7  ;;  %v1614_v34 = vmax.f32 %v1560_v2, 0.0  ;;  %v1749_v38 = vsel %vm6809_vm14, 0, %v1748_v19 }
 0x276   : > { %v1617_v6 = vmax.f32 %v1571_v3, 0.0  ;;  %v2569_v14 = vshrl.u32 %v2297_v30, 16  ;;  %4494 = vrot.lane.b32.xlu1 %v5941_v40, %s6354_s8  ;;  %1750 = vst [vmem:[#allocation2 + $0xb0] sm:$0x1] %v1749_v38  ;;  %v2572_v1 = vshll.u32 %v2297_v30, 16  ;;  %v2578_v55 = vshll.u32 %v8137_v36, 16 }
 0x277   : > { %v2064_v8 = vshrl.u32 %v6098_v46, 16  ;;  %v2067_v54 = vshll.u32 %v6098_v46, 16  ;;  %v4065_v12 = vsel %vm6884_vm15, %v4063_v26, %v4064_v44  ;;  %v6096_v41 = vpack.c.bf16 %v1614_v34, %v1614_v34  ;;  %v8150_v46 = vpop.permute.xlu0 %4820 }
 0x278   : > { %v6005_v52 = vcombine.low %v4062_v39, %v4065_v12  ;;  %v6099_v16 = vpack.c.bf16 %v1617_v6, %v1617_v6  ;;  %v2571_v60 = vrot.slane %v2569_v14, 4  ;;  %v2574_v49 = vrot.slane %v2572_v1, 5  ;;  %v9153_v1 = vld [vmem:[#allocation9_spill] sm:$0xff] }
 0x279   : > { %v2066_v4 = vrot.slane %v2064_v8, 7  ;;  %v2582_v19 = vshrl.u32 %v8137_v36, 16  ;;  %v2047_v37 = vshrl.u32 %v6096_v41, 16  ;;  %v2050_v11 = vshll.u32 %v6096_v41, 16 }
 0x27a   : > { %v2256_v62 = vld [vmem:[#allocation2 + $0xa8] sm:$0xf]  ;;  %4830 = vrot.lane.b32.xlu0 %v6005_v52, %s6358_s24  ;;  %v2072_v44 = vshrl.u32 %v6099_v16, 16  ;;  %v2075_v30 = vshll.u32 %v6099_v16, 16  ;;  %4670 = vrot.lane.b32.xlu1 %v5973_v42, %s6356_s14  ;;  %v2575_v3 = vor.u32 %v2574_v49, %v2571_v60  ;;  %v2580_v40 = vrot.slane %v2578_v55, 5 }
 0x27b   : > { %v2069_v2 = vor.u32 %v2067_v54, %v2066_v4  ;;  %v2070_v7 = vrot.slane %v2066_v4, 4  ;;  %v8152_v39 = vrot.slane %v2047_v37, 7  ;;  %v2584_v34 = vrot.slane %v2582_v19, 4  ;;  %v2722_v52 = vld [vmem:[#allocation2 + $0x78] sm:$0xe] }
 0x27c   : > { %v2074_v26 = vrot.slane %v2072_v44, 7  ;;  %v2588_v6 = vshll.u32 %v8142_v48, 16  ;;  %v2249_v8 = vld [vmem:[#allocation2 + $0x9c] sm:$0xf]  ;;  %v2576_v12 = vrot.slane %v2575_v3, 4  ;;  %v1563_v42 = vadd.f32 %v8110_v23, %v9153_v1 }
 0x27d   : > { %v2257_v14 = vsel %vm7012_vm5, %v2069_v2, %v2256_v62  ;;  %v1746_v54 = vsel %vm6809_vm14, 0, %v1745_v0  ;;  %v2052_v41 = vor.u32 %v2050_v11, %v8152_v39  ;;  %v2053_v16 = vrot.slane %v8152_v39, 4  ;;  %v2260_v49 = vld [vmem:[#allocation2 + $0xb0] sm:$0x1]  ;;  %v2911_v1 = vld [vmem:[#allocation2 + $0x84] sm:$0xf] }
 0x27e   : > { %2258 = vst [vmem:[#allocation2 + $0xa8] sm:$0xf] %v2257_v14  ;;  %v2077_v60 = vor.u32 %v2075_v30, %v2074_v26  ;;  %v2079_v4 = vrot.slane %v2074_v26, 4  ;;  %1747 = vst [vmem:[#allocation2 + $0xa4] sm:$0x1] %v1746_v54  ;;  %v2581_v55 = vsel %vm6872_vm11, %v2576_v12, %v2580_v40  ;;  %v2585_v19 = vor.u32 %v2584_v34, %v2580_v40  ;;  %v8171_v30 = vpop.permute.xlu1 %4226  ;;  %v8176_v34 = vpop.permute.xlu0 %4312 }
 0x27f   : > { %v2590_v62 = vrot.slane %v2588_v6, 5  ;;  %v1615_v37 = vmax.f32 %v1563_v42, 0.0  ;;  %v2250_v44 = vsel %vm7012_vm5, %v2052_v41, %v2249_v8  ;;  %v5830_v2 = vrot.slane %v2722_v52, 9  ;;  %v8188_v52 = vld [vmem:[#allocation2 + $0x88] sm:$0xf] }
 0x280   : > { %v2078_v0 = vsel %vm7018_vm6, %v2070_v7, %v2077_v60  ;;  %v2261_v11 = vsel %vm6787_vm12, %v2079_v4, %v2260_v49  ;;  %2251 = vst [vmem:[#allocation2 + $0x9c] sm:$0xf] %v2250_v44  ;;  %v2586_v3 = vrot.slane %v2585_v19, 4  ;;  %v2851_v39 = vrot.slane %v8137_v36, 5 }
 0x281   : > { %2259 = vst.msk [vmem:[#allocation2 + $0xac] sm:$0xf] %vm9138_vm10, %v2078_v0  ;;  %2262 = vst [vmem:[#allocation2 + $0xb0] sm:$0x1] %v2261_v11  ;;  %v6097_v40 = vpack.c.bf16 %v1615_v37, %v1615_v37  ;;  %v2854_v26 = vrot.slane %v8142_v48, 5  ;;  %v3723_v7 = vor.u32 %v8026_v13, %v7959_v15  ;;  %v3726_v6 = vshll.u32 %v7872_v17, 16 }
 0x282   : > { %v9154_v14 = vshrl.u32 %v7872_v17, 16  ;;  %v3736_v12 = vshll.u32 %v7953_v45, 16  ;;  %v2591_v42 = vsel %vm6872_vm11, %v2586_v3, %v2590_v62  ;;  %v2852_v48 = vsel %vm6884_vm15, %v5830_v2, %v2851_v39  ;;  %v2295_v45 = vld [vmem:[#allocation2 + $0x6c] sm:$0xf]  ;;  %v8196_v11 = vpop.permute.xlu1 %4566 }
 0x283   : > { %v2055_v54 = vshrl.u32 %v6097_v40, 16  ;;  %v2058_v36 = vshll.u32 %v6097_v40, 16  ;;  %v5894_v41 = vcombine.low %v2581_v55, %v2591_v42  ;;  %v2853_v15 = vrot.slane %v2851_v39, 4 }
 0x284   : > { %v3732_v8 = vrot.slane %v9154_v14, 4  ;;  %v3724_v13 = vrot.slane %v3723_v7, 4  ;;  %v3728_v60 = vrot.slane %v3726_v6, 5  ;;  %v3738_v17 = vrot.slane %v3736_v12, 5  ;;  %v8198_v7 = vpop.permute.xlu0 %4818 }
 0x285   : > { %v2057_v4 = vrot.slane %v2055_v54, 7  ;;  %v3180_v49 = vshrl.u32 %v2911_v1, 16  ;;  %v3183_v19 = vshll.u32 %v2911_v1, 16  ;;  %4240 = vrot.lane.b32.xlu1 %v5894_v41, %s6352_s6  ;;  %v2253_v37 = vld [vmem:[#allocation2 + $0xa4] sm:$0x1]  ;;  %v2855_v62 = vsel %vm6884_vm15, %v2853_v15, %v2854_v26 }
 0x286   : > { %v3729_v44 = vsel %vm6872_vm11, %v3724_v13, %v3728_v60  ;;  %v3733_v0 = vor.u32 %v3732_v8, %v3728_v60  ;;  %v3193_v55 = vshrl.u32 %v8188_v52, 16  ;;  %v5910_v40 = vcombine.low %v2852_v48, %v2855_v62 }
 0x287   : > { %v2060_v2 = vor.u32 %v2058_v36, %v2057_v4  ;;  %v2062_v3 = vrot.slane %v2057_v4, 4  ;;  %v3182_v39 = vrot.slane %v3180_v49, 4  ;;  %v3185_v14 = vrot.slane %v3183_v19, 5  ;;  %v8212_v19 = vld [vmem:[#allocation2 + $0x88] sm:$0xf] }
 0x288   : > { %v3734_v6 = vrot.slane %v3733_v0, 4  ;;  %v5926_v12 = vcombine.low %v2911_v1, %v8188_v52  ;;  %v2545_v42 = vshrl.u32 %v2295_v45, 16  ;;  %4320 = vrot.lane.b32.xlu0 %v5910_v40, %s6351_s30  ;;  %v2548_v54 = vshll.u32 %v2295_v45, 16  ;;  %v2723_v45 = vld [vmem:[#allocation2 + $0x84] sm:$0xe] }
 0x289   : > { %v2061_v26 = vsel %vm7018_vm6, %v2053_v16, %v2060_v2  ;;  %v2254_v8 = vsel %vm6787_vm12, %v2062_v3, %v2253_v37  ;;  %v2554_v36 = vshll.u32 %v8009_v9, 16  ;;  %v2558_v1 = vshrl.u32 %v8009_v9, 16  ;;  %v2933_v16 = vld [vmem:[#allocation2 + $0x8c] sm:$0x1]  ;;  %v8218_v3 = vpop.permute.xlu1 %4310 }
 0x28a   : > { %2252 = vst.msk [vmem:[#allocation2 + $0xa0] sm:$0xf] %vm9155_vm7, %v2061_v26  ;;  %2255 = vst [vmem:[#allocation2 + $0xa4] sm:$0x1] %v2254_v8  ;;  %v3739_v48 = vsel %vm6872_vm11, %v3734_v6, %v3738_v17  ;;  %v2547_v41 = vrot.slane %v2545_v42, 4  ;;  %v2564_v15 = vshll.u32 %v8022_v25, 16  ;;  %v3186_v49 = vor.u32 %v3185_v14, %v3182_v39  ;;  %v8224_v6 = vpop.permute.xlu0 %4564 }
 0x28b   : > { %v5987_v13 = vcombine.low %v3729_v44, %v3739_v48  ;;  %v2550_v60 = vrot.slane %v2548_v54, 5  ;;  %v2556_v4 = vrot.slane %v2554_v36, 5  ;;  %v3778_v37 = vshrl.u32 %v8089_v20, 16  ;;  %v8216_v17 = vld [vmem:[#allocation2 + $0x8c] sm:$0x1] }
 0x28c   : > { %v2560_v62 = vrot.slane %v2558_v1, 4  ;;  %v3189_v0 = vshll.u32 %v8188_v52, 16  ;;  %v3195_v2 = vrot.slane %v3193_v55, 4  ;;  %v3770_v25 = vrot.slane %v3768_v24, 5  ;;  %4416 = vrot.lane.b32.xlu0 %v5926_v12, %s6353_s7  ;;  %v3333_v39 = vld [vmem:[#allocation2 + $0x84] sm:$0xe] }
 0x28d   : > { %4746 = vrot.lane.b32.xlu1 %v5987_v13, %s6357_s21  ;;  %v2551_v9 = vor.u32 %v2550_v60, %v2547_v41  ;;  %v3187_v44 = vrot.slane %v3186_v49, 4  ;;  %v3199_v40 = vshll.u32 %v2933_v16, 16  ;;  %v2566_v42 = vrot.slane %v2564_v15, 5 }
 0x28e   : > { %v2561_v14 = vor.u32 %v2560_v62, %v2556_v4  ;;  %v3191_v55 = vrot.slane %v3189_v0, 5  ;;  %v2858_v26 = vrot.slane %v8212_v19, 5  ;;  %v5831_v54 = vrot.slane %v2723_v45, 9 }
 0x28f   : > { %v2552_v8 = vrot.slane %v2551_v9, 4  ;;  %v2861_v5 = vrot.slane %v8216_v17, 5  ;;  %v3459_v24 = vrot.slane %v8188_v52, 5  ;;  %v3201_v12 = vrot.slane %v3199_v40, 5  ;;  %v8236_v52 = vpop.permute.xlu1 %4410 }
 0x290   : > { %v2562_v36 = vrot.slane %v2561_v14, 4  ;;  %v3196_v48 = vor.u32 %v3195_v2, %v3191_v55  ;;  %v5846_v41 = vrot.slane %v3333_v39, 9  ;;  %v3192_v13 = vsel %vm6872_vm11, %v3187_v44, %v3191_v55  ;;  %v3520_v39 = vld [vmem:[#allocation2 + $0x90] sm:$0xf]  ;;  %v8241_v44 = vpop.permute.xlu0 %4664  ;;  %v2299_v55 = vld [vmem:[#allocation2 + $0x84] sm:$0xf] }
 0x291   : > { %v2557_v1 = vsel %vm6872_vm11, %v2552_v8, %v2556_v4  ;;  %v2860_v15 = vrot.slane %v2858_v26, 4  ;;  %v3461_v60 = vrot.slane %v3459_v24, 4  ;;  %v3462_v62 = vrot.slane %v2933_v16, 5 }
 0x292   : > { %v2567_v49 = vsel %vm6872_vm11, %v2562_v36, %v2566_v42  ;;  %v3197_v45 = vrot.slane %v3196_v48, 4  ;;  %v3771_v0 = vor.u32 %v3770_v25, %v8096_v47  ;;  %v3774_v4 = vshll.u32 %v8089_v20, 16  ;;  %v8249_v42 = vld [vmem:[#allocation2 + $0x94] sm:$0xf] }
 0x293   : > { %v5893_v2 = vcombine.low %v2557_v1, %v2567_v49  ;;  %v2862_v9 = vsel %vm6884_vm15, %v2860_v15, %v2861_v5  ;;  %v3780_v40 = vrot.slane %v3778_v37, 4  ;;  %v2859_v16 = vsel %vm6884_vm15, %v5831_v54, %v2858_v26 }
 0x294   : > { %v3202_v14 = vsel %vm6872_vm11, %v3197_v45, %v3201_v12  ;;  %v3463_v47 = vsel %vm6884_vm15, %v3461_v60, %v3462_v62  ;;  %v3772_v25 = vrot.slane %v3771_v0, 4  ;;  %v3460_v37 = vsel %vm6884_vm15, %v5846_v41, %v3459_v24  ;;  %v8260_v41 = vpop.permute.xlu1 %4486 }
 0x295   : > { %4238 = vrot.lane.b32.xlu1 %v5893_v2, %s6352_s6  ;;  %v5942_v20 = vcombine.low %v3192_v13, %v3202_v14  ;;  %v3776_v8 = vrot.slane %v3774_v4, 5  ;;  %v3784_v5 = vshll.u32 %v8098_v29, 16  ;;  %v5911_v36 = vcombine.low %v2859_v16, %v2862_v9  ;;  %v8264_v9 = vpop.permute.xlu0 %4740  ;;  %v8266_v14 = vld [vmem:[#allocation2 + $0x98] sm:$0x1] }
 0x296   : > { %v5958_v48 = vcombine.low %v3460_v37, %v3463_v47  ;;  %v3789_v12 = vshrl.u32 %v3520_v39, 16  ;;  %v3792_v26 = vshll.u32 %v3520_v39, 16  ;;  %v3802_v15 = vshrl.u32 %v8249_v42, 16 }
 0x297   : > { %4496 = vrot.lane.b32.xlu0 %v5942_v20, %s6354_s8  ;;  %v3777_v54 = vsel %vm6872_vm11, %v3772_v25, %v3776_v8  ;;  %v3781_v1 = vor.u32 %v3780_v40, %v3776_v8  ;;  %v2593_v60 = vshrl.u32 %v2299_v55, 16  ;;  %v2596_v45 = vshll.u32 %v2299_v55, 16 }
 0x298   : > { %v3791_v13 = vrot.slane %v3789_v12, 4  ;;  %v3794_v49 = vrot.slane %v3792_v26, 5  ;;  %v2602_v24 = vshll.u32 %v8212_v19, 16  ;;  %v3786_v62 = vrot.slane %v3784_v5, 5 }
 0x299   : > { %4322 = vrot.lane.b32.xlu1 %v5911_v36, %s6351_s30  ;;  %v3782_v29 = vrot.slane %v3781_v1, 4  ;;  %v2595_v0 = vrot.slane %v2593_v60, 4  ;;  %v2606_v2 = vshrl.u32 %v8212_v19, 16  ;;  %v2598_v4 = vrot.slane %v2596_v45, 5  ;;  %v9156_v60 = vld [vmem:[#allocation7_spill] sm:$0xff] }
 0x29a   : > { %v2604_v40 = vrot.slane %v2602_v24, 5  ;;  %v3795_v16 = vor.u32 %v3794_v49, %v3791_v13  ;;  %v3798_v47 = vshll.u32 %v8249_v42, 16  ;;  %v2612_v20 = vshll.u32 %v8216_v17, 16  ;;  %v2913_v24 = vld [vmem:[#allocation2 + $0x90] sm:$0xf] }
 0x29b   : > { %4576 = vrot.lane.b32.xlu0 %v5958_v48, %s6355_s9  ;;  %v3787_v25 = vsel %vm6872_vm11, %v3782_v29, %v3786_v62  ;;  %v2608_v55 = vrot.slane %v2606_v2, 4  ;;  %v3804_v37 = vrot.slane %v3802_v15, 4  ;;  %v2599_v19 = vor.u32 %v2598_v4, %v2595_v0  ;;  %v6325_v15 = vld [vmem:[#allocation2 + $0x30] sm:$0xf]  ;;  %v8281_v29 = vld [vmem:[#allocation2 + $0x94] sm:$0xf] }
 0x29c   : > { %v5989_v8 = vcombine.low %v3777_v54, %v3787_v25  ;;  %v3796_v5 = vrot.slane %v3795_v16, 4  ;;  %v3800_v36 = vrot.slane %v3798_v47, 5  ;;  %v5974_v12 = vcombine.low %v3520_v39, %v8249_v42  ;;  %v6324_v54 = vld [vmem:[#allocation2 + $0x34] sm:$0xf]  ;;  %v8283_v39 = vpop.permute.xlu1 %4662  ;;  %v3942_v4 = vld [vmem:[#allocation2 + $0x90] sm:$0xe]  ;;  %v8288_v16 = vpop.permute.xlu0 %4408 }
 0x29d   : > { %v2609_v26 = vor.u32 %v2608_v55, %v2604_v40  ;;  %v3808_v1 = vshll.u32 %v8266_v14, 16  ;;  %v4929_v48 = vsel %vm1126_vm2, %v8071_v56, %v9156_v60  ;;  %v2600_v13 = vrot.slane %v2599_v19, 4 }
 0x29e   : > { %4750 = vrot.lane.b32.xlu1 %v5989_v8, %s6357_s21  ;;  %v3805_v49 = vor.u32 %v3804_v37, %v3800_v36  ;;  %v4961_v17 = vsel %vm1159_vm3, %v4929_v48, %v8133_v57  ;;  %v5872_v45 = vcombine.low %v6325_v15, %v6324_v54  ;;  %v2614_v0 = vrot.slane %v2612_v20, 5  ;;  %v1695_v48 = vld [vmem:[#allocation2 + $0xb4] sm:$0x1] }
 0x29f   : > { %4672 = vrot.lane.b32.xlu0 %v5974_v12, %s6356_s14  ;;  %v2610_v62 = vrot.slane %v2609_v26, 4  ;;  %v3801_v56 = vsel %vm6872_vm11, %v3796_v5, %v3800_v36  ;;  %v3810_v2 = vrot.slane %v3808_v1, 5  ;;  %v2605_v57 = vsel %vm6872_vm11, %v2600_v13, %v2604_v40  ;;  %v1698_v5 = vld [vmem:[#allocation2 + $0xc0] sm:$0x1] }
 0x2a0   : > { %v3806_v47 = vrot.slane %v3805_v49, 4  ;;  %v4993_v25 = vsel %vm1192_vm4, %v4961_v17, %v7979_v51  ;;  %v4858_v55 = vsel %vm1044_vm0, %v5872_v45, %v8129_v43  ;;  %v3204_v37 = vshrl.u32 %v2913_v24, 16  ;;  %v9157_v49 = vld [vmem:[#allocation8_spill] sm:$0xff]  ;;  %v8312_v45 = vpop.permute.xlu1 %4232 }
 0x2a1   : > { %v2615_v20 = vsel %vm6872_vm11, %v2610_v62, %v2614_v0  ;;  %v3207_v8 = vshll.u32 %v2913_v24, 16  ;;  %v3217_v19 = vshrl.u32 %v8281_v29, 16  ;;  %v5927_v40 = vcombine.low %v2913_v24, %v8281_v29  ;;  %v9158_v62 = vld [vmem:[#allocation4_spill] sm:$0xff]  ;;  %v8321_v0 = vpop.permute.xlu0 %4484 }
 0x2a2   : > { %v5895_v36 = vcombine.low %v2605_v57, %v2615_v20  ;;  %v3811_v12 = vsel %vm6872_vm11, %v3806_v47, %v3810_v2  ;;  %v5862_v26 = vrot.slane %v3942_v4, 9  ;;  %v3206_v51 = vrot.slane %v3204_v37, 4  ;;  %v8327_v57 = vld [vmem:[#allocation2 + $0x98] sm:$0x1] }
 0x2a3   : > { %v5990_v1 = vcombine.low %v3801_v56, %v3811_v12  ;;  %v3209_v60 = vrot.slane %v3207_v8, 5  ;;  %v4068_v43 = vrot.slane %v8249_v42, 5  ;;  %v4071_v13 = vrot.slane %v8266_v14, 5 }
 0x2a4   : > { %4242 = vrot.lane.b32.xlu1 %v5895_v36, %s6352_s6  ;;  %v4959_v17 = vsel %vm1159_vm3, %v8104_v50, %v9157_v49  ;;  %v1584_v54 = vadd.f32 %v8110_v23, %v7981_v59  ;;  %v1699_v15 = vsel %vm6787_vm12, 0, %v1698_v5  ;;  %v1576_v50 = vadd.f32 %v8110_v23, %v7987_v58  ;;  %v9159_v59 = vld [vmem:[#allocation10_spill] sm:$0xff]  ;;  %v1754_v5 = vld [vmem:[#allocation2 + $0xc8] sm:$0x1] }
 0x2a5   : > { %4752 = vrot.lane.b32.xlu0 %v5990_v1, %s6357_s21  ;;  %v4069_v42 = vsel %vm6884_vm15, %v5862_v26, %v4068_v43  ;;  %v4070_v24 = vrot.slane %v4068_v43, 4  ;;  %v4991_v14 = vsel %vm1192_vm4, %v4959_v17, %v9158_v62  ;;  %1700 = vst [vmem:[#allocation2 + $0xc0] sm:$0x1] %v1699_v15  ;;  %vm9160_vm9 = vcmask 195584   ;;  %v9162_v36 = vld [vmem:[#allocation5_spill] sm:$0xff] }
 0x2a6   : > { %v5023_v56 = vsel %vm9160_vm9, %v4991_v14, %v9159_v59  ;;  %v1620_v2 = vmax.f32 %v1584_v54, 0.0  ;;  %v1696_v4 = vsel %vm6787_vm12, 0, %v1695_v48  ;;  %v3210_v47 = vor.u32 %v3209_v60, %v3206_v51  ;;  %vm9163_vm10 = vmmov %vm9160_vm9  ;;  %v8345_v54 = vpop.permute.xlu1 %4738  ;;  %v3943_v62 = vld [vmem:[#allocation2 + $0x9c] sm:$0xe]  ;;  %v8352_v14 = vpop.permute.xlu0 %4824 }
 0x2a7   : > { %v4072_v20 = vsel %vm6884_vm15, %v4070_v24, %v4071_v13  ;;  %vm9161_vm13 = vcmask 228352   ;;  %v1618_v8 = vmax.f32 %v1576_v50, 0.0  ;;  %1697 = vst [vmem:[#allocation2 + $0xb4] sm:$0x1] %v1696_v4  ;;  %v3213_v58 = vshll.u32 %v8281_v29, 16 }
 0x2a8   : > { %v5055_v37 = vsel %vm9161_vm13, %v5023_v56, %v8147_v27  ;;  %v5025_v12 = vsel %vm9163_vm10, %v4993_v25, %v9162_v36  ;;  %4418 = vrot.lane.b32.xlu1 %v5927_v40, %s6353_s7  ;;  %v6006_v26 = vcombine.low %v4069_v42, %v4072_v20  ;;  %v6102_v1 = vpack.c.bf16 %v1620_v2, %v1620_v2  ;;  %v1751_v40 = vld [vmem:[#allocation2 + $0xbc] sm:$0x1]  ;;  %v8356_v4 = vld [vmem:[#allocation2 + $0xa0] sm:$0xf]  ;;  %vm9167_vm9 = vmmov %vm9161_vm13 }
 0x2a9   : > { %v3219_v43 = vrot.slane %v3217_v19, 4  ;;  %v6100_v51 = vpack.c.bf16 %v1618_v8, %v1618_v8  ;;  %v3215_v60 = vrot.slane %v3213_v58, 5  ;;  %v3223_v48 = vshll.u32 %v8327_v57, 16  ;;  %v9165_v19 = vld [vmem:[#allocation12_spill] sm:$0xff] }
 0x2aa   : > { %v1587_v27 = vadd.f32 %v8110_v23, %v7991_v32  ;;  %4832 = vrot.lane.b32.xlu0 %v6006_v26, %s6358_s24  ;;  %v2098_v13 = vshrl.u32 %v6102_v1, 16  ;;  %v3211_v49 = vrot.slane %v3210_v47, 4  ;;  %v1755_v17 = vsel %vm6809_vm14, 0, %v1754_v5 }
 0x2ab   : > { %vm9164_vm7 = vcmask 261120   ;;  %v8349_v15 = vsel %vm1093_vm1, %v4858_v55, %v9165_v19  ;;  %v2101_v42 = vshll.u32 %v6102_v1, 16  ;;  %v2081_v24 = vshrl.u32 %v6100_v51, 16  ;;  %1756 = vst [vmem:[#allocation2 + $0xc8] sm:$0x1] %v1755_v17 }
 0x2ac   : > { %v5087_v25 = vsel %vm9164_vm7, %v5055_v37, %v7955_v10  ;;  %v3220_v32 = vor.u32 %v3219_v43, %v3215_v60  ;;  %v2100_v50 = vrot.slane %v2098_v13, 7  ;;  %v2084_v59 = vshll.u32 %v6100_v51, 16  ;;  %v9166_v10 = vld [vmem:[#allocation15_spill] sm:$0xff]  ;;  %v2270_v47 = vld [vmem:[#allocation2 + $0xc0] sm:$0xf] }
 0x2ad   : > { %6217 = vmatmul.mubr.msk.bf16.vlgmr.msra.gmra.mrb[0].mxu1 %vm1324_vm8, %v5087_v25  ;;  %v1621_v56 = vmax.f32 %v1587_v27, 0.0  ;;  %v1579_v2 = vadd.f32 %v8110_v23, %v9166_v10  ;;  %v8358_v55 = vrot.slane %v2081_v24, 7  ;;  %v3225_v37 = vrot.slane %v3223_v48, 5  ;;  %v8367_v51 = vld [vmem:[#allocation2 + $0xa4] sm:$0x1] }
 0x2ae   : > { %v3221_v20 = vrot.slane %v3220_v32, 4  ;;  %v1752_v8 = vsel %vm6809_vm14, 0, %v1751_v40  ;;  %v2103_v58 = vor.u32 %v2101_v42, %v2100_v50  ;;  %v2263_v5 = vld [vmem:[#allocation2 + $0xb4] sm:$0xf]  ;;  %v3216_v36 = vsel %vm6872_vm11, %v3211_v49, %v3215_v60  ;;  %v8372_v60 = vpop.permute.xlu1 %4230  ;;  %v8377_v32 = vpop.permute.xlu0 %4316  ;;  %v3334_v10 = vld [vmem:[#allocation2 + $0x90] sm:$0xe] }
 0x2af   : > { %v6103_v26 = vpack.c.bf16 %v1621_v56, %v1621_v56  ;;  %v1619_v1 = vmax.f32 %v1579_v2, 0.0  ;;  %1753 = vst [vmem:[#allocation2 + $0xbc] sm:$0x1] %v1752_v8  ;;  %v2086_v23 = vor.u32 %v2084_v59, %v8358_v55  ;;  %v5863_v27 = vrot.slane %v3943_v62, 9  ;;  %v6327_v8 = vld [vmem:[#allocation2 + $0x24] sm:$0xf] }
 0x2b0   : > { %v3226_v43 = vsel %vm6872_vm11, %v3221_v20, %v3225_v37  ;;  %v4075_v48 = vrot.slane %v8356_v4, 5  ;;  %v2104_v13 = vrot.slane %v2100_v50, 4  ;;  %v2271_v17 = vsel %vm7012_vm5, %v2103_v58, %v2270_v47  ;;  %v6326_v37 = vld [vmem:[#allocation2 + $0x28] sm:$0xf] }
 0x2b1   : > { %v5943_v25 = vcombine.low %v3216_v36, %v3226_v43  ;;  %v2106_v40 = vshrl.u32 %v6103_v26, 16  ;;  %2272 = vst [vmem:[#allocation2 + $0xc0] sm:$0xf] %v2271_v17  ;;  %v2087_v49 = vrot.slane %v8358_v55, 4  ;;  %v2264_v19 = vsel %vm7012_vm5, %v2086_v23, %v2263_v5  ;;  %v9168_v55 = vld [vmem:[#allocation11_spill] sm:$0xff]  ;;  %vm9169_vm5 = vmmov %vm9164_vm7 }
 0x2b2   : > { %v6101_v42 = vpack.c.bf16 %v1619_v1, %v1619_v1  ;;  %v4077_v24 = vrot.slane %v4075_v48, 4  ;;  %2265 = vst [vmem:[#allocation2 + $0xb4] sm:$0xf] %v2264_v19  ;;  %v2109_v50 = vshll.u32 %v6103_v26, 16  ;;  %v4078_v59 = vrot.slane %v8367_v51, 5 }
 0x2b3   : > { %4498 = vrot.lane.b32.xlu1 %v5943_v25, %s6354_s8  ;;  %v2108_v62 = vrot.slane %v2106_v40, 7  ;;  %v5057_v56 = vsel %vm9167_vm9, %v5025_v12, %v8054_v33  ;;  %v2274_v2 = vld [vmem:[#allocation2 + $0xc8] sm:$0x1]  ;;  %v4076_v38 = vsel %vm6884_vm15, %v5863_v27, %v4075_v48  ;;  %v5871_v58 = vcombine.low %v6327_v8, %v6326_v37  ;;  %v8387_v5 = vld [vmem:[#allocation2 + $0x94] sm:$0xf] }
 0x2b4   : > { %v2089_v47 = vshrl.u32 %v6101_v42, 16  ;;  %v5089_v20 = vsel %vm9169_vm5, %v5057_v56, %v9168_v55  ;;  %v2092_v1 = vshll.u32 %v6101_v42, 16  ;;  %v4079_v33 = vsel %vm6884_vm15, %v4077_v24, %v4078_v59  ;;  %v8392_v12 = vld [vmem:[#allocation2 + $0x98] sm:$0x1]  ;;  %v2724_v23 = vld [vmem:[#allocation2 + $0x90] sm:$0xe] }
 0x2b5   : > { %v2111_v36 = vor.u32 %v2109_v50, %v2108_v62  ;;  %v2113_v26 = vrot.slane %v2108_v62, 4  ;;  %6220 = vmatprep.mubr.msk.bf16.mxu1 %vm1324_vm8, %v5089_v20  ;;  %v6007_v27 = vcombine.low %v4076_v38, %v4079_v33  ;;  %v5847_v48 = vrot.slane %v3334_v10, 9  ;;  %v3522_v25 = vld [vmem:[#allocation2 + $0x9c] sm:$0xf]  ;;  %v8404_v50 = vpop.permute.xlu1 %4570  ;;  %v8410_v10 = vpop.permute.xlu0 %4822 }
 0x2b6   : > { %v2091_v43 = vrot.slane %v2089_v47, 7  ;;  %v3466_v17 = vrot.slane %v8281_v29, 5  ;;  %v2267_v42 = vld [vmem:[#allocation2 + $0xbc] sm:$0x1]  ;;  %v8401_v24 = vsel %vm1044_vm0, %v5871_v58, %v8171_v30  ;;  %v3469_v62 = vrot.slane %v8327_v57, 5  ;;  %9170 = vst [vmem:[#allocation3_spill] sm:$0xff] %v8404_v50 }
 0x2b7   : > { %v2112_v40 = vsel %vm7018_vm6, %v2104_v13, %v2111_v36  ;;  %v2275_v19 = vsel %vm6787_vm12, %v2113_v26, %v2274_v2  ;;  %vm9171_vm13 = vcmask 27648   ;;  %4834 = vrot.lane.b32.xlu0 %v6007_v27, %s6358_s24  ;;  %v5832_v2 = vrot.slane %v2724_v23, 9  ;;  %v2915_v38 = vld [vmem:[#allocation2 + $0x9c] sm:$0xf]  ;;  %v8420_v58 = vld [vmem:[#allocation2 + $0xa0] sm:$0xf] }
 0x2b8   : > { %2273 = vst.msk [vmem:[#allocation2 + $0xc4] sm:$0xf] %vm9171_vm13, %v2112_v40  ;;  %2276 = vst [vmem:[#allocation2 + $0xc8] sm:$0x1] %v2275_v19  ;;  %v2094_v29 = vor.u32 %v2092_v1, %v2091_v43  ;;  %v2096_v59 = vrot.slane %v2091_v43, 4  ;;  %v3467_v13 = vsel %vm6884_vm15, %v5847_v48, %v3466_v17  ;;  %v3468_v56 = vrot.slane %v3466_v17, 4 }
 0x2b9   : > { %v2865_v30 = vrot.slane %v8387_v5, 5  ;;  %v2868_v57 = vrot.slane %v8392_v12, 5  ;;  %v3813_v47 = vshrl.u32 %v3522_v25, 16  ;;  %v3816_v8 = vshll.u32 %v3522_v25, 16  ;;  %vm9172_vm10 = vmmov %vm9171_vm13  ;;  %v8432_v19 = vld [vmem:[#allocation2 + $0xa4] sm:$0x1] }
 0x2ba   : > { %v2095_v55 = vsel %vm7018_vm6, %v2087_v49, %v2094_v29  ;;  %v2268_v20 = vsel %vm6787_vm12, %v2096_v59, %v2267_v42  ;;  %v3470_v37 = vsel %vm6884_vm15, %v3468_v56, %v3469_v62  ;;  %v5975_v49 = vcombine.low %v3522_v25, %v8356_v4  ;;  %v8434_v42 = vpop.permute.xlu1 %4314  ;;  %v8438_v56 = vpop.permute.xlu0 %4568  ;;  %v8495_v50 = vld [vmem:[#allocation2 + $0xb0] sm:$0x1]  ;;  %vm9182_vm13 = vmmov %vm9167_vm9 }
 0x2bb   : > { %2266 = vst.msk [vmem:[#allocation2 + $0xb8] sm:$0xf] %vm9172_vm10, %v2095_v55  ;;  %2269 = vst [vmem:[#allocation2 + $0xbc] sm:$0x1] %v2268_v20  ;;  %v5959_v36 = vcombine.low %v3467_v13, %v3470_v37  ;;  %v2866_v26 = vsel %vm6884_vm15, %v5832_v2, %v2865_v30  ;;  %v2867_v1 = vrot.slane %v2865_v30, 4  ;;  %v3815_v33 = vrot.slane %v3813_v47, 4 }
 0x2bc   : > { %v3818_v21 = vrot.slane %v3816_v8, 5  ;;  %v3228_v23 = vshrl.u32 %v2915_v38, 16  ;;  %v3231_v43 = vshll.u32 %v2915_v38, 16  ;;  %v3241_v48 = vshrl.u32 %v8420_v58, 16  ;;  %v8436_v13 = vld [vmem:[#allocation2 + $0x90] sm:$0xf]  ;;  %vm9183_vm10 = vmmov %vm9169_vm5 }
 0x2bd   : > { %4578 = vrot.lane.b32.xlu1 %v5959_v36, %s6355_s9  ;;  %v2869_v27 = vsel %vm6884_vm15, %v2867_v1, %v2868_v57  ;;  %v5928_v17 = vcombine.low %v2915_v38, %v8420_v58  ;;  %v3822_v40 = vshll.u32 %v8356_v4, 16  ;;  %9173 = vst [vmem:[#allocation9_spill] sm:$0xff] %v8436_v13  ;;  %v3826_v30 = vshrl.u32 %v8356_v4, 16 }
 0x2be   : > { %v5912_v62 = vcombine.low %v2866_v26, %v2869_v27  ;;  %v3230_v29 = vrot.slane %v3228_v23, 4  ;;  %v3233_v25 = vrot.slane %v3231_v43, 5  ;;  %v3819_v59 = vor.u32 %v3818_v21, %v3815_v33  ;;  %v3335_v23 = vld [vmem:[#allocation2 + $0x9c] sm:$0xe] }
 0x2bf   : > { %v3824_v2 = vrot.slane %v3822_v40, 5  ;;  %v3832_v57 = vshll.u32 %v8367_v51, 16  ;;  %v3237_v47 = vshll.u32 %v8420_v58, 16  ;;  %v3243_v20 = vrot.slane %v3241_v48, 4 }
 0x2c0   : > { %4324 = vrot.lane.b32.xlu0 %v5912_v62, %s6351_s30  ;;  %v3820_v38 = vrot.slane %v3819_v59, 4  ;;  %v3234_v55 = vor.u32 %v3233_v25, %v3230_v29  ;;  %v3247_v37 = vshll.u32 %v8432_v19, 16  ;;  %v3828_v8 = vrot.slane %v3826_v30, 4  ;;  %v8451_v62 = vpop.permute.xlu1 %4414  ;;  %v8458_v30 = vld [vmem:[#allocation2 + $0x9c] sm:$0xf] }
 0x2c1   : > { %4674 = vrot.lane.b32.xlu1 %v5975_v49, %s6356_s14  ;;  %v3834_v36 = vrot.slane %v3832_v57, 5  ;;  %v3239_v26 = vrot.slane %v3237_v47, 5  ;;  %v2617_v1 = vshrl.u32 %v8436_v13, 16  ;;  %v2620_v21 = vshll.u32 %v8436_v13, 16  ;;  %9174 = vst [vmem:[#allocation7_spill] sm:$0xff] %v8451_v62  ;;  %9175 = vst [vmem:[#allocation8_spill] sm:$0xff] %v8458_v30  ;;  %v8460_v57 = vpop.permute.xlu0 %4668 }
 0x2c2   : > { %v3825_v4 = vsel %vm6872_vm11, %v3820_v38, %v3824_v2  ;;  %v3235_v51 = vrot.slane %v3234_v55, 4  ;;  %v3249_v33 = vrot.slane %v3247_v37, 5  ;;  %v3829_v43 = vor.u32 %v3828_v8, %v3824_v2 }
 0x2c3   : > { %v3244_v27 = vor.u32 %v3243_v20, %v3239_v26  ;;  %v2619_v48 = vrot.slane %v2617_v1, 4  ;;  %v2626_v40 = vshll.u32 %v8387_v5, 16  ;;  %v2622_v29 = vrot.slane %v2620_v21, 5  ;;  %v8468_v1 = vld [vmem:[#allocation2 + $0xa0] sm:$0xf] }
 0x2c4   : > { %4420 = vrot.lane.b32.xlu0 %v5928_v17, %s6353_s7  ;;  %v3240_v49 = vsel %vm6872_vm11, %v3235_v51, %v3239_v26  ;;  %v2630_v25 = vshrl.u32 %v8387_v5, 16  ;;  %v2636_v59 = vshll.u32 %v8392_v12, 16  ;;  %v3830_v2 = vrot.slane %v3829_v43, 4  ;;  %9176 = vst [vmem:[#allocation4_spill] sm:$0xff] %v8468_v1 }
 0x2c5   : > { %v3245_v47 = vrot.slane %v3244_v27, 4  ;;  %v2628_v38 = vrot.slane %v2626_v40, 5  ;;  %v5848_v55 = vrot.slane %v3335_v23, 9  ;;  %v2623_v20 = vor.u32 %v2622_v29, %v2619_v48  ;;  %v2322_v48 = vld [vmem:[#allocation2 + $0xa4] sm:$0x1] }
 0x2c6   : > { %v2632_v37 = vrot.slane %v2630_v25, 4  ;;  %v2638_v8 = vrot.slane %v2636_v59, 5  ;;  %v3473_v17 = vrot.slane %v8420_v58, 5  ;;  %v3835_v26 = vsel %vm6872_vm11, %v3830_v2, %v3834_v36  ;;  %v3524_v40 = vld [vmem:[#allocation2 + $0xa8] sm:$0xf]  ;;  %v8482_v2 = vpop.permute.xlu0 %4744 }
 0x2c7   : > { %v3250_v5 = vsel %vm6872_vm11, %v3245_v47, %v3249_v33  ;;  %v3476_v12 = vrot.slane %v8432_v19, 5  ;;  %v2641_v51 = vshrl.u32 %v8458_v30, 16  ;;  %v5991_v21 = vcombine.low %v3825_v4, %v3835_v26  ;;  %v8474_v33 = vpop.permute.xlu1 %4490 }
 0x2c8   : > { %v5944_v43 = vcombine.low %v3240_v49, %v3250_v5  ;;  %v2624_v23 = vrot.slane %v2623_v20, 4  ;;  %v2633_v27 = vor.u32 %v2632_v37, %v2628_v38  ;;  %v3474_v58 = vsel %vm6884_vm15, %v5848_v55, %v3473_v17  ;;  %v8486_v37 = vld [vmem:[#allocation2 + $0xac] sm:$0xf] }
 0x2c9   : > { %v3475_v29 = vrot.slane %v3473_v17, 4  ;;  %v2643_v36 = vrot.slane %v2641_v51, 4  ;;  %v2644_v25 = vshll.u32 %v8458_v30, 16  ;;  %4754 = vrot.lane.b32.xlu1 %v5991_v21, %s6357_s21  ;;  %v2650_v49 = vshll.u32 %v8468_v1, 16  ;;  %v2725_v21 = vld [vmem:[#allocation2 + $0x9c] sm:$0xe] }
 0x2ca   : > { %4500 = vrot.lane.b32.xlu0 %v5944_v43, %s6354_s8  ;;  %v2629_v19 = vsel %vm6872_vm11, %v2624_v23, %v2628_v38  ;;  %v2634_v4 = vrot.slane %v2633_v27, 4  ;;  %v2654_v59 = vshrl.u32 %v8468_v1, 16  ;;  %v2660_v20 = vshll.u32 %v2322_v48, 16  ;;  %v9177_v43 = vld [vmem:[#allocation14_spill] sm:$0xff] }
 0x2cb   : > { %v3477_v47 = vsel %vm6884_vm15, %v3475_v29, %v3476_v12  ;;  %v2646_v55 = vrot.slane %v2644_v25, 5  ;;  %v3837_v17 = vshrl.u32 %v3524_v40, 16  ;;  %v2652_v38 = vrot.slane %v2650_v49, 5 }
 0x2cc   : > { %v2639_v26 = vsel %vm6872_vm11, %v2634_v4, %v2638_v8  ;;  %v5960_v5 = vcombine.low %v3474_v58, %v3477_v47  ;;  %v2656_v51 = vrot.slane %v2654_v59, 4  ;;  %v4899_v23 = vsel %vm1093_vm1, %v8401_v24, %v9177_v43  ;;  %v9178_v43 = vld [vmem:[#allocation6_spill] sm:$0xff] }
 0x2cd   : > { %v5896_v27 = vcombine.low %v2629_v19, %v2639_v26  ;;  %v2647_v30 = vor.u32 %v2646_v55, %v2643_v36  ;;  %v2662_v13 = vrot.slane %v2660_v20, 5  ;;  %v3839_v29 = vrot.slane %v3837_v17, 4  ;;  %v8500_v19 = vpop.permute.xlu1 %4666  ;;  %v8503_v55 = vpop.permute.xlu0 %4412 }
 0x2ce   : > { %4580 = vrot.lane.b32.xlu0 %v5960_v5, %s6355_s9  ;;  %v2657_v12 = vor.u32 %v2656_v51, %v2652_v38  ;;  %v3840_v25 = vshll.u32 %v3524_v40, 16  ;;  %v3850_v62 = vshrl.u32 %v8486_v37, 16  ;;  %v5976_v58 = vcombine.low %v3524_v40, %v8486_v37 }
 0x2cf   : > { %4244 = vrot.lane.b32.xlu1 %v5896_v27, %s6352_s6  ;;  %v2648_v8 = vrot.slane %v2647_v30, 4  ;;  %v5833_v4 = vrot.slane %v2725_v21, 9  ;;  %v2872_v24 = vrot.slane %v8468_v1, 5  ;;  %v3846_v59 = vshll.u32 %v8486_v37, 16  ;;  %v2917_v21 = vld [vmem:[#allocation2 + $0xa8] sm:$0xf] }
 0x2d0   : > { %v2658_v36 = vrot.slane %v2657_v12, 4  ;;  %v3842_v49 = vrot.slane %v3840_v25, 5  ;;  %v3852_v47 = vrot.slane %v3850_v62, 4  ;;  %v2875_v26 = vrot.slane %v2322_v48, 5 }
 0x2d1   : > { %v2653_v20 = vsel %vm6872_vm11, %v2648_v8, %v2652_v38  ;;  %v2874_v17 = vrot.slane %v2872_v24, 4  ;;  %v3856_v30 = vshll.u32 %v8495_v50, 16  ;;  %v3848_v51 = vrot.slane %v3846_v59, 5  ;;  %v8527_v59 = vpop.permute.xlu1 %4236 }
 0x2d2   : > { %v2663_v40 = vsel %vm6872_vm11, %v2658_v36, %v2662_v13  ;;  %4676 = vrot.lane.b32.xlu0 %v5976_v58, %s6356_s14  ;;  %v3843_v5 = vor.u32 %v3842_v49, %v3839_v29  ;;  %v4933_v62 = vsel %vm1126_vm2, %v8349_v15, %v8091_v28  ;;  %v4931_v27 = vsel %vm1126_vm2, %v4899_v23, %v9178_v43  ;;  %v8520_v13 = vld [vmem:[#allocation2 + $0xac] sm:$0xf]  ;;  %v3944_v49 = vld [vmem:[#allocation2 + $0xa8] sm:$0xe] }
 0x2d3   : > { %v5897_v38 = vcombine.low %v2653_v20, %v2663_v40  ;;  %v2876_v48 = vsel %vm6884_vm15, %v2874_v17, %v2875_v26  ;;  %v4965_v12 = vsel %vm1159_vm3, %v4933_v62, %v8321_v0  ;;  %v2873_v29 = vsel %vm6884_vm15, %v5833_v4, %v2872_v24  ;;  %v6328_v17 = vld [vmem:[#allocation2 + $0x4c] sm:$0xf]  ;;  %v6329_v4 = vld [vmem:[#allocation2 + $0x48] sm:$0xf]  ;;  %v8532_v26 = vpop.permute.xlu0 %4488 }
 0x2d4   : > { %v3844_v25 = vrot.slane %v3843_v5, 4  ;;  %v3853_v8 = vor.u32 %v3852_v47, %v3848_v51  ;;  %v4997_v28 = vsel %vm1192_vm4, %v4965_v12, %v8224_v6  ;;  %v5913_v15 = vcombine.low %v2873_v29, %v2876_v48  ;;  %v8542_v48 = vld [vmem:[#allocation2 + $0xb0] sm:$0x1] }
 0x2d5   : > { %4246 = vrot.lane.b32.xlu1 %v5897_v38, %s6352_s6  ;;  %v3858_v23 = vrot.slane %v3856_v30, 5  ;;  %v3252_v58 = vshrl.u32 %v2917_v21, 16  ;;  %v3255_v36 = vshll.u32 %v2917_v21, 16  ;;  %vm9179_vm6 = vcmask 195584  }
 0x2d6   : > { %v3854_v0 = vrot.slane %v3853_v8, 4  ;;  %v5029_v20 = vsel %vm9179_vm6, %v4997_v28, %v8015_v31  ;;  %v5874_v24 = vcombine.low %v6329_v4, %v6328_v17  ;;  %v3265_v47 = vshrl.u32 %v8520_v13, 16  ;;  %vm9181_vm7 = vmmov %vm9179_vm6 }
 0x2d7   : > { %v3849_v6 = vsel %vm6872_vm11, %v3844_v25, %v3848_v51  ;;  %v3254_v30 = vrot.slane %v3252_v58, 4  ;;  %v3257_v40 = vrot.slane %v3255_v36, 5  ;;  %v5929_v5 = vcombine.low %v2917_v21, %v8520_v13  ;;  %v8548_v25 = vld [vmem:[#allocation2 + $0xb8] sm:$0xf]  ;;  %v3945_v58 = vld [vmem:[#allocation2 + $0xb4] sm:$0xe] }
 0x2d8   : > { %v3859_v62 = vsel %vm6872_vm11, %v3854_v0, %v3858_v23  ;;  %v4864_v31 = vsel %vm1044_vm0, %v5874_v24, %v8312_v45  ;;  %v5864_v43 = vrot.slane %v3944_v49, 9  ;;  %v4082_v38 = vrot.slane %v8486_v37, 5  ;;  %v9180_v45 = vld [vmem:[#allocation13_spill] sm:$0xff]  ;;  %v8557_v49 = vld [vmem:[#allocation2 + $0xbc] sm:$0x1]  ;;  %v8559_v0 = vpop.permute.xlu1 %4742 }
 0x2d9   : > { %4326 = vrot.lane.b32.xlu1 %v5913_v15, %s6351_s30  ;;  %v5992_v12 = vcombine.low %v3849_v6, %v3859_v62  ;;  %v4963_v51 = vsel %vm1159_vm3, %v4931_v27, %v8044_v18  ;;  %v3258_v29 = vor.u32 %v3257_v40, %v3254_v30  ;;  %v3261_v21 = vshll.u32 %v8520_v13, 16 }
 0x2da   : > { %v4084_v8 = vrot.slane %v4082_v38, 4  ;;  %v4085_v28 = vrot.slane %v8495_v50, 5  ;;  %v4995_v23 = vsel %vm1192_vm4, %v4963_v51, %v9180_v45  ;;  %v3267_v37 = vrot.slane %v3265_v47, 4 }
 0x2db   : > { %4756 = vrot.lane.b32.xlu0 %v5992_v12, %s6357_s21  ;;  %v5027_v15 = vsel %vm9181_vm7, %v4995_v23, %v8081_v22  ;;  %v3259_v36 = vrot.slane %v3258_v29, 4  ;;  %v3263_v18 = vrot.slane %v3261_v21, 5  ;;  %v3271_v27 = vshll.u32 %v8542_v48, 16  ;;  %v8568_v22 = vpop.permute.xlu0 %4828  ;;  %v3336_v12 = vld [vmem:[#allocation2 + $0xa8] sm:$0xe]  ;;  %vm9187_vm7 = vmmov %vm9179_vm6 }
 0x2dc   : > { %v4083_v50 = vsel %vm6884_vm15, %v5864_v43, %v4082_v38  ;;  %v4086_v17 = vsel %vm6884_vm15, %v4084_v8, %v4085_v28  ;;  %v5059_v4 = vsel %vm9167_vm9, %v5027_v15, %v8345_v54  ;;  %v4089_v24 = vrot.slane %v8548_v25, 5  ;;  %v6331_v29 = vld [vmem:[#allocation2 + $0x3c] sm:$0xf]  ;;  %v2726_v8 = vld [vmem:[#allocation2 + $0xa8] sm:$0xe] }
 0x2dd   : > { %v8572_v47 = vsel %vm1093_vm1, %v4864_v31, %v8176_v34  ;;  %4422 = vrot.lane.b32.xlu1 %v5929_v5, %s6353_s7  ;;  %v6008_v6 = vcombine.low %v4083_v50, %v4086_v17  ;;  %v3268_v30 = vor.u32 %v3267_v37, %v3263_v18  ;;  %v5865_v40 = vrot.slane %v3945_v58, 9  ;;  %v6330_v31 = vld [vmem:[#allocation2 + $0x40] sm:$0xf]  ;;  %v8591_v37 = vld [vmem:[#allocation2 + $0xac] sm:$0xf] }
 0x2de   : > { %v3264_v62 = vsel %vm6872_vm11, %v3259_v36, %v3263_v18  ;;  %v5091_v43 = vsel %vm9169_vm5, %v5059_v4, %v8198_v7  ;;  %v4091_v54 = vrot.slane %v4089_v24, 4  ;;  %v4092_v38 = vrot.slane %v8557_v49, 5  ;;  %v3526_v58 = vld [vmem:[#allocation2 + $0xb4] sm:$0xf]  ;;  %v8598_v18 = vld [vmem:[#allocation2 + $0xb0] sm:$0x1]  ;;  %vm9188_vm5 = vmmov %vm9167_vm9 }
 0x2df   : > { %4836 = vrot.lane.b32.xlu0 %v6008_v6, %s6358_s24  ;;  %v3269_v51 = vrot.slane %v3268_v30, 4  ;;  %v3273_v34 = vrot.slane %v3271_v27, 5  ;;  %6221 = vmatmul.mubr.msk.bf16.gmra.mrb[4].mxu1 %vm1324_vm8, %v5091_v43  ;;  %v5061_v5 = vsel %vm9182_vm13, %v5029_v20, %v8264_v9  ;;  %v5873_v21 = vcombine.low %v6331_v29, %v6330_v31  ;;  %v8600_v27 = vld [vmem:[#allocation2 + $0xb4] sm:$0xf]  ;;  %v8615_v43 = vld [vmem:[#allocation2 + $0xb8] sm:$0xf]  ;;  %vm9189_vm13 = vmmov %vm9183_vm10 }
 0x2e0   : > { %v4090_v7 = vsel %vm6884_vm15, %v5865_v40, %v4089_v24  ;;  %v4093_v28 = vsel %vm6884_vm15, %v4091_v54, %v4092_v38  ;;  %v5093_v45 = vsel %vm9183_vm10, %v5061_v5, %v8150_v46  ;;  %v3480_v23 = vrot.slane %v8520_v13, 5  ;;  %v8602_v46 = vpop.permute.xlu1 %4234  ;;  %v8605_v24 = vpop.permute.xlu0 %4826 }
 0x2e1   : > { %v3274_v9 = vsel %vm6872_vm11, %v3269_v51, %v3273_v34  ;;  %v6009_v20 = vcombine.low %v4090_v7, %v4093_v28  ;;  %6224 = vmatprep.mubr.msk.bf16.mxu1 %vm1324_vm8, %v5093_v45  ;;  %v4861_v15 = vsel %vm1044_vm0, %v5873_v21, %v8372_v60  ;;  %v5849_v36 = vrot.slane %v3336_v12, 9 }
 0x2e2   : > { %v5945_v13 = vcombine.low %v3264_v62, %v3274_v9  ;;  %v3482_v50 = vrot.slane %v3480_v23, 4  ;;  %v3483_v17 = vrot.slane %v8542_v48, 5  ;;  %v5834_v4 = vrot.slane %v2726_v8, 9 }
 0x2e3   : > { %4838 = vrot.lane.b32.xlu0 %v6009_v20, %s6358_s24  ;;  %v8610_v6 = vsel %vm1093_vm1, %v4861_v15, %v8218_v3  ;;  %v3481_v60 = vsel %vm6884_vm15, %v5849_v36, %v3480_v23  ;;  %v2879_v30 = vrot.slane %v8591_v37, 5  ;;  %v3861_v40 = vshrl.u32 %v3526_v58, 16  ;;  %v8631_v23 = vld [vmem:[#allocation2 + $0xbc] sm:$0x1] }
 0x2e4   : > { %4502 = vrot.lane.b32.xlu1 %v5945_v13, %s6354_s8  ;;  %v3484_v48 = vsel %vm6884_vm15, %v3482_v50, %v3483_v17  ;;  %v2882_v62 = vrot.slane %v8598_v18, 5  ;;  %v3864_v54 = vshll.u32 %v3526_v58, 16  ;;  %v3276_v38 = vshrl.u32 %v8600_v27, 16  ;;  %v8633_v9 = vpop.permute.xlu1 %4574  ;;  %v8637_v13 = vld [vmem:[#allocation2 + $0xa8] sm:$0xf]  ;;  %v8639_v50 = vpop.permute.xlu0 %4572 }
 0x2e5   : > { %v5961_v3 = vcombine.low %v3481_v60, %v3484_v48  ;;  %v2881_v12 = vrot.slane %v2879_v30, 4  ;;  %v3863_v51 = vrot.slane %v3861_v40, 4  ;;  %v5977_v34 = vcombine.low %v3526_v58, %v8548_v25  ;;  %9184 = vst [vmem:[#allocation10_spill] sm:$0xff] %v8637_v13 }
 0x2e6   : > { %v3866_v5 = vrot.slane %v3864_v54, 5  ;;  %v3278_v31 = vrot.slane %v3276_v38, 4  ;;  %v3279_v29 = vshll.u32 %v8600_v27, 16  ;;  %v3289_v21 = vshrl.u32 %v8615_v43, 16 }
 0x2e7   : > { %v2880_v8 = vsel %vm6884_vm15, %v5834_v4, %v2879_v30  ;;  %v2883_v7 = vsel %vm6884_vm15, %v2881_v12, %v2882_v62  ;;  %v3870_v28 = vshll.u32 %v8548_v25, 16  ;;  %v3874_v45 = vshrl.u32 %v8548_v25, 16 }
 0x2e8   : > { %4582 = vrot.lane.b32.xlu1 %v5961_v3, %s6355_s9  ;;  %v5914_v58 = vcombine.low %v2880_v8, %v2883_v7  ;;  %v3281_v20 = vrot.slane %v3279_v29, 5  ;;  %v3867_v15 = vor.u32 %v3866_v5, %v3863_v51  ;;  %v3880_v36 = vshll.u32 %v8557_v49, 16  ;;  %v3337_v7 = vld [vmem:[#allocation2 + $0xb4] sm:$0xe] }
 0x2e9   : > { %v3872_v17 = vrot.slane %v3870_v28, 5  ;;  %v3876_v4 = vrot.slane %v3874_v45, 4  ;;  %v3285_v60 = vshll.u32 %v8615_v43, 16  ;;  %v3291_v25 = vrot.slane %v3289_v21, 4  ;;  %v8652_v28 = vpop.permute.xlu1 %4318 }
 0x2ea   : > { %4328 = vrot.lane.b32.xlu0 %v5914_v58, %s6351_s30  ;;  %v5930_v30 = vcombine.low %v8600_v27, %v8615_v43  ;;  %v3868_v40 = vrot.slane %v3867_v15, 4  ;;  %v3282_v48 = vor.u32 %v3281_v20, %v3278_v31  ;;  %v3295_v62 = vshll.u32 %v8631_v23, 16  ;;  %v8657_v15 = vld [vmem:[#allocation2 + $0xb4] sm:$0xf] }
 0x2eb   : > { %v3877_v54 = vor.u32 %v3876_v4, %v3872_v17  ;;  %v3287_v49 = vrot.slane %v3285_v60, 5  ;;  %v2665_v38 = vshrl.u32 %v8637_v13, 16  ;;  %v2668_v3 = vshll.u32 %v8637_v13, 16  ;;  %9185 = vst [vmem:[#allocation5_spill] sm:$0xff] %v8657_v15  ;;  %v9186_v13 = vld [vmem:[#allocation16_spill] sm:$0xff] }
 0x2ec   : > { %4678 = vrot.lane.b32.xlu1 %v5977_v34, %s6356_s14  ;;  %v3873_v12 = vsel %vm6872_vm11, %v3868_v40, %v3872_v17  ;;  %v3882_v51 = vrot.slane %v3880_v36, 5  ;;  %v3283_v5 = vrot.slane %v3282_v48, 4  ;;  %v2674_v29 = vshll.u32 %v8591_v37, 16  ;;  %v8659_v36 = vpop.permute.xlu0 %4748 }
 0x2ed   : > { %v3878_v27 = vrot.slane %v3877_v54, 4  ;;  %v3292_v21 = vor.u32 %v3291_v25, %v3287_v49  ;;  %v2667_v31 = vrot.slane %v2665_v38, 4  ;;  %v2670_v8 = vrot.slane %v2668_v3, 5  ;;  %v8666_v54 = vld [vmem:[#allocation2 + $0xb8] sm:$0xf] }
 0x2ee   : > { %4424 = vrot.lane.b32.xlu0 %v5930_v30, %s6353_s7  ;;  %v3297_v45 = vrot.slane %v3295_v62, 5  ;;  %v2676_v58 = vrot.slane %v2674_v29, 5  ;;  %v2678_v34 = vshrl.u32 %v8591_v37, 16  ;;  %v2684_v20 = vshll.u32 %v8598_v18, 16  ;;  %v8670_v29 = vld [vmem:[#allocation2 + $0xbc] sm:$0x1] }
 0x2ef   : > { %v3883_v17 = vsel %vm6872_vm11, %v3878_v27, %v3882_v51  ;;  %v3288_v4 = vsel %vm6872_vm11, %v3283_v5, %v3287_v49  ;;  %v3293_v60 = vrot.slane %v3292_v21, 4  ;;  %v2671_v25 = vor.u32 %v2670_v8, %v2667_v31  ;;  %v3528_v21 = vld [vmem:[#allocation2 + $0xc0] sm:$0xf] }
 0x2f0   : > { %v5993_v40 = vcombine.low %v3873_v12, %v3883_v17  ;;  %v2680_v30 = vrot.slane %v2678_v34, 4  ;;  %v5850_v48 = vrot.slane %v3337_v7, 9  ;;  %v3487_v62 = vrot.slane %v8615_v43, 5 }
 0x2f1   : > { %v3298_v18 = vsel %vm6872_vm11, %v3293_v60, %v3297_v45  ;;  %v2672_v38 = vrot.slane %v2671_v25, 4  ;;  %v2686_v3 = vrot.slane %v2684_v20, 5  ;;  %v2689_v51 = vshrl.u32 %v8657_v15, 16  ;;  %v8679_v45 = vpop.permute.xlu1 %4494  ;;  %v8688_v60 = vpop.permute.xlu0 %4492 }
 0x2f2   : > { %4758 = vrot.lane.b32.xlu1 %v5993_v40, %s6357_s21  ;;  %v5946_v49 = vcombine.low %v3288_v4, %v3298_v18  ;;  %v2681_v5 = vor.u32 %v2680_v30, %v2676_v58  ;;  %v3489_v12 = vrot.slane %v3487_v62, 4  ;;  %v3490_v27 = vrot.slane %v8631_v23, 5  ;;  %v8686_v4 = vld [vmem:[#allocation2 + $0xc4] sm:$0xf] }
 0x2f3   : > { %v3488_v43 = vsel %vm6884_vm15, %v5850_v48, %v3487_v62  ;;  %v2691_v31 = vrot.slane %v2689_v51, 4  ;;  %v2692_v8 = vshll.u32 %v8657_v15, 16  ;;  %v2698_v7 = vshll.u32 %v8666_v54, 16  ;;  %v8695_v15 = vld [vmem:[#allocation2 + $0xc8] sm:$0x1] }
 0x2f4   : > { %4504 = vrot.lane.b32.xlu0 %v5946_v49, %s6354_s8  ;;  %v2682_v34 = vrot.slane %v2681_v5, 4  ;;  %v3491_v20 = vsel %vm6884_vm15, %v3489_v12, %v3490_v27  ;;  %v2702_v17 = vshrl.u32 %v8666_v54, 16  ;;  %v2708_v23 = vshll.u32 %v8670_v29, 16 }
 0x2f5   : > { %v2677_v25 = vsel %vm6872_vm11, %v2672_v38, %v2676_v58  ;;  %v2694_v40 = vrot.slane %v2692_v8, 5  ;;  %v2700_v30 = vrot.slane %v2698_v7, 5  ;;  %v3885_v48 = vshrl.u32 %v3528_v21, 16 }
 0x2f6   : > { %v2687_v62 = vsel %vm6872_vm11, %v2682_v34, %v2686_v3  ;;  %v5962_v18 = vcombine.low %v3488_v43, %v3491_v20  ;;  %v2704_v51 = vrot.slane %v2702_v17, 4  ;;  %v3888_v49 = vshll.u32 %v3528_v21, 16  ;;  %v2727_v3 = vld [vmem:[#allocation2 + $0xb4] sm:$0xe]  ;;  %v8701_v43 = vpop.permute.xlu0 %4830 }
 0x2f7   : > { %v5898_v5 = vcombine.low %v2677_v25, %v2687_v62  ;;  %v2695_v12 = vor.u32 %v2694_v40, %v2691_v31  ;;  %v3887_v27 = vrot.slane %v3885_v48, 4  ;;  %v3898_v1 = vshrl.u32 %v8686_v4, 16  ;;  %v8707_v25 = vpop.permute.xlu1 %4670 }
 0x2f8   : > { %v4935_v58 = vsel %vm1126_vm2, %v8610_v6, %v9186_v13  ;;  %4584 = vrot.lane.b32.xlu0 %v5962_v18, %s6355_s9  ;;  %v2705_v38 = vor.u32 %v2704_v51, %v2700_v30  ;;  %v2710_v8 = vrot.slane %v2708_v23, 5  ;;  %v3890_v7 = vrot.slane %v3888_v49, 5 }
 0x2f9   : > { %4248 = vrot.lane.b32.xlu1 %v5898_v5, %s6352_s6  ;;  %v2696_v31 = vrot.slane %v2695_v12, 4  ;;  %v5978_v34 = vcombine.low %v3528_v21, %v8686_v4  ;;  %v2886_v20 = vrot.slane %v8666_v54, 5  ;;  %v3894_v17 = vshll.u32 %v8686_v4, 16  ;;  %v2921_v12 = vld [vmem:[#allocation2 + $0xc0] sm:$0xf] }
 0x2fa   : > { %v2706_v6 = vrot.slane %v2705_v38, 4  ;;  %v3891_v13 = vor.u32 %v3890_v7, %v3887_v27  ;;  %v3900_v40 = vrot.slane %v3898_v1, 4  ;;  %v3904_v23 = vshll.u32 %v8695_v15, 16 }
 0x2fb   : > { %v5835_v48 = vrot.slane %v2727_v3, 9  ;;  %v2888_v62 = vrot.slane %v2886_v20, 4  ;;  %v2889_v18 = vrot.slane %v8670_v29, 5  ;;  %v3896_v51 = vrot.slane %v3894_v17, 5  ;;  %v8729_v17 = vpop.permute.xlu0 %4320 }
 0x2fc   : > { %v2701_v49 = vsel %vm6872_vm11, %v2696_v31, %v2700_v30  ;;  %v2711_v21 = vsel %vm6872_vm11, %v2706_v6, %v2710_v8  ;;  %4680 = vrot.lane.b32.xlu0 %v5978_v34, %s6356_s14  ;;  %v3892_v5 = vrot.slane %v3891_v13, 4  ;;  %v4937_v1 = vsel %vm1126_vm2, %v8572_v47, %v8288_v16  ;;  %v8723_v30 = vld [vmem:[#allocation2 + $0xc4] sm:$0xf]  ;;  %v6333_v16 = vld [vmem:[#allocation2 + $0x60] sm:$0xf] }
 0x2fd   : > { %v5899_v27 = vcombine.low %v2701_v49, %v2711_v21  ;;  %v2890_v38 = vsel %vm6884_vm15, %v2888_v62, %v2889_v18  ;;  %v3901_v29 = vor.u32 %v3900_v40, %v3896_v51  ;;  %v4969_v7 = vsel %vm1159_vm3, %v4937_v1, %v8532_v26  ;;  %v6332_v34 = vld [vmem:[#allocation2 + $0x64] sm:$0xf]  ;;  %v3946_v62 = vld [vmem:[#allocation2 + $0xc0] sm:$0xe]  ;;  %v8732_v18 = vpop.permute.xlu1 %4240 }
 0x2fe   : > { %v2887_v8 = vsel %vm6884_vm15, %v5835_v48, %v2886_v20  ;;  %v3906_v3 = vrot.slane %v3904_v23, 5  ;;  %v5001_v31 = vsel %vm1192_vm4, %v4969_v7, %v8438_v56  ;;  %v5876_v47 = vcombine.low %v6333_v16, %v6332_v34 }
 0x2ff   : > { %4250 = vrot.lane.b32.xlu1 %v5899_v27, %s6352_s6  ;;  %v5915_v6 = vcombine.low %v2887_v8, %v2890_v38  ;;  %v3902_v13 = vrot.slane %v3901_v29, 4  ;;  %v3300_v40 = vshrl.u32 %v2921_v12, 16  ;;  %v3303_v26 = vshll.u32 %v2921_v12, 16  ;;  %v8744_v38 = vld [vmem:[#allocation2 + $0xc8] sm:$0x1] }
 0x300   : > { %v3897_v20 = vsel %vm6872_vm11, %v3892_v5, %v3896_v51  ;;  %v5033_v56 = vsel %vm9179_vm6, %v5001_v31, %v8241_v44  ;;  %v4870_v23 = vsel %vm1044_vm0, %v5876_v47, %v8527_v59  ;;  %v3313_v48 = vshrl.u32 %v8723_v30, 16 }
 0x301   : > { %v3907_v49 = vsel %vm6872_vm11, %v3902_v13, %v3906_v3  ;;  %v3302_v21 = vrot.slane %v3300_v40, 4  ;;  %v3305_v1 = vrot.slane %v3303_v26, 5  ;;  %v5931_v27 = vcombine.low %v2921_v12, %v8723_v30  ;;  %v8764_v13 = vpop.permute.xlu1 %4746  ;;  %v8774_v26 = vld [vmem:[#allocation2 + $0xd0] sm:$0xf] }
 0x302   : > { %v5994_v29 = vcombine.low %v3897_v20, %v3907_v49  ;;  %v5866_v7 = vrot.slane %v3946_v62, 9  ;;  %v4096_v51 = vrot.slane %v8686_v4, 5  ;;  %v4967_v44 = vsel %vm1159_vm3, %v4935_v58, %v8260_v41  ;;  %v8758_v41 = vpop.permute.xlu0 %4416  ;;  %v1757_v62 = vld [vmem:[#allocation2 + $0xd4] sm:$0x1] }
 0x303   : > { %4330 = vrot.lane.b32.xlu1 %v5915_v6, %s6351_s30  ;;  %v4999_v59 = vsel %vm1192_vm4, %v4967_v44, %v8196_v11  ;;  %v3306_v5 = vor.u32 %v3305_v1, %v3302_v21  ;;  %v3309_v8 = vshll.u32 %v8723_v30, 16  ;;  %v3315_v3 = vrot.slane %v3313_v48, 4  ;;  %v1701_v6 = vld [vmem:[#allocation2 + $0xcc] sm:$0x1]  ;;  %v6334_v48 = vld [vmem:[#allocation2 + $0x58] sm:$0xf] }
 0x304   : > { %4760 = vrot.lane.b32.xlu0 %v5994_v29, %s6357_s21  ;;  %v4098_v12 = vrot.slane %v4096_v51, 4  ;;  %v4099_v31 = vrot.slane %v8695_v15, 5  ;;  %v5031_v4 = vsel %vm9187_vm7, %v4999_v59, %v8283_v39  ;;  %v3319_v34 = vshll.u32 %v8744_v38, 16  ;;  %v3338_v44 = vld [vmem:[#allocation2 + $0xc0] sm:$0xe]  ;;  %vm9194_vm7 = vmmov %vm9188_vm5 }
 0x305   : > { %v5063_v58 = vsel %vm9167_vm9, %v5031_v4, %v8559_v0  ;;  %v3307_v11 = vrot.slane %v3306_v5, 4  ;;  %v3311_v16 = vrot.slane %v3309_v8, 5  ;;  %v5065_v47 = vsel %vm9188_vm5, %v5033_v56, %v8482_v2  ;;  %vm9195_vm9 = vmmov %vm9183_vm10 }
 0x306   : > { %v4909_v15 = vsel %vm1093_vm1, %v4870_v23, %v8377_v32  ;;  %v4097_v39 = vsel %vm6884_vm15, %v5866_v7, %v4096_v51  ;;  %v4100_v40 = vsel %vm6884_vm15, %v4098_v12, %v4099_v31  ;;  %v5095_v0 = vsel %vm9189_vm13, %v5063_v58, %v8410_v10  ;;  %v6335_v10 = vld [vmem:[#allocation2 + $0x54] sm:$0xf] }
 0x307   : > { %4426 = vrot.lane.b32.xlu1 %v5931_v27, %s6353_s7  ;;  %v6010_v2 = vcombine.low %v4097_v39, %v4100_v40  ;;  %v3316_v20 = vor.u32 %v3315_v3, %v3311_v16  ;;  %v3321_v56 = vrot.slane %v3319_v34, 5  ;;  %6225 = vmatmul.mubr.msk.bf16.gmra.mrb[8].mxu1 %vm1324_vm8, %v5095_v0  ;;  %v5097_v32 = vsel %vm9183_vm10, %v5065_v47, %v8352_v14  ;;  %s6071_s7 = sshll.u32 %s9224_s19, 8 }
 0x308   : > { %v3312_v23 = vsel %vm6872_vm11, %v3307_v11, %v3311_v16  ;;  %6228 = vmatprep.mubr.msk.bf16.mxu1 %vm1324_vm8, %v5097_v32  ;;  %v5875_v49 = vcombine.low %v6335_v10, %v6334_v48  ;;  %v3494_v21 = vrot.slane %v8723_v30, 5  ;;  %v1702_v1 = vsel %vm6787_vm12, 0, %v1701_v6  ;;  %v3947_v11 = vld [vmem:[#allocation2 + $0xcc] sm:$0xe]  ;;  %vm9190_vm12 = vmmov %vm9179_vm6  ;;  %v9191_v6 = vld [vmem:[#allocation3_spill] sm:$0xff] }
 0x309   : > { %4840 = vrot.lane.b32.xlu0 %v6010_v2, %s6358_s24  ;;  %v3317_v27 = vrot.slane %v3316_v20, 4  ;;  %1703 = vst [vmem:[#allocation2 + $0xcc] sm:$0x1] %v1702_v1  ;;  %v3922_v29 = vshrl.u32 %v8774_v26, 16  ;;  %v1758_v14 = vsel %vm6809_vm14, 0, %v1757_v62  ;;  %v3918_v7 = vshll.u32 %v8774_v26, 16  ;;  %v8796_v5 = vpop.permute.xlu0 %4496  ;;  %vm9192_vm14 = vmmov %vm9179_vm6 }
 0x30a   : > { %v4867_v51 = vsel %vm1044_vm0, %v5875_v49, %v8602_v46  ;;  %v3496_v59 = vrot.slane %v3494_v21, 4  ;;  %v3497_v30 = vrot.slane %v8744_v38, 5  ;;  %1759 = vst [vmem:[#allocation2 + $0xd4] sm:$0x1] %v1758_v14  ;;  %v4941_v35 = vsel %vm1126_vm2, %v4909_v15, %v8503_v55  ;;  %v4239_v46 = vpop.permute.xlu1 %4238  ;;  %v6336_v62 = vld [vmem:[#allocation2 + $0x78] sm:$0xf]  ;;  %vm9193_vm6 = vmmov %vm9188_vm5 }
 0x30b   : > { %v3322_v8 = vsel %vm6872_vm11, %v3317_v27, %v3321_v56  ;;  %v4907_v61 = vsel %vm1093_vm1, %v4867_v51, %v8434_v42  ;;  %v8802_v3 = vrot.slane %v3918_v7, 5  ;;  %v3924_v12 = vrot.slane %v3922_v29, 4  ;;  %v6337_v2 = vld [vmem:[#allocation2 + $0x7c] sm:$0xf]  ;;  %v6338_v1 = vld [vmem:[#allocation2 + $0x70] sm:$0xf]  ;;  %vm9196_vm5 = vmmov %vm9195_vm9 }
 0x30c   : > { %v5947_v31 = vcombine.low %v3312_v23, %v3322_v8  ;;  %v4939_v38 = vsel %vm1126_vm2, %v4907_v61, %v8236_v52  ;;  %v4973_v4 = vsel %vm1159_vm3, %v4941_v35, %v8688_v60  ;;  %v5851_v55 = vrot.slane %v3338_v44, 9  ;;  %v6339_v27 = vld [vmem:[#allocation2 + $0x6c] sm:$0xf]  ;;  %vm9200_vm13 = vmmov %vm9190_vm12 }
 0x30d   : > { %v3498_v34 = vsel %vm6884_vm15, %v3496_v59, %v3497_v30  ;;  %v5005_v58 = vsel %vm1192_vm4, %v4973_v4, %v8639_v50  ;;  %v4971_v16 = vsel %vm1159_vm3, %v4939_v38, %v8474_v33  ;;  %v4577_v52 = vpop.permute.xlu0 %4576  ;;  %v3925_v47 = vor.u32 %v3924_v12, %v8802_v3  ;;  %vm9201_vm10 = vmmov %vm9193_vm6 }
 0x30e   : > { %4506 = vrot.lane.b32.xlu1 %v5947_v31, %s6354_s8  ;;  %v5037_v42 = vsel %vm9190_vm12, %v5005_v58, %v8460_v57  ;;  %v3495_v60 = vsel %vm6884_vm15, %v5851_v55, %v3494_v21  ;;  %v5003_v15 = vsel %vm1192_vm4, %v4971_v16, %v9191_v6  ;;  %v5867_v40 = vrot.slane %v3947_v11, 9  ;;  %v8827_v48 = vpop.permute.xlu1 %4322  ;;  %v9199_v11 = vld [vmem:[#allocation5_spill] sm:$0xff]  ;;  %vm9202_vm12 = vmmov %vm9196_vm5 }
 0x30f   : > { %v5963_v39 = vcombine.low %v3495_v60, %v3498_v34  ;;  %v4103_v0 = vrot.slane %v8774_v26, 5  ;;  %v5878_v57 = vcombine.low %v6336_v62, %v6337_v2  ;;  %v5035_v32 = vsel %vm9192_vm14, %v5003_v15, %v8500_v19  ;;  %v9198_v34 = vld [vmem:[#allocation10_spill] sm:$0xff]  ;;  %vm9205_vm14 = vmmov %vm9196_vm5  ;;  %v6340_v62 = vld [vmem:[#allocation2 + $0x88] sm:$0xf] }
 0x310   : > { %v3530_v50 = vld [vmem:[#allocation2 + $0xcc] sm:$0xf]  ;;  %v5069_v23 = vsel %vm9193_vm6, %v5037_v42, %v8659_v36  ;;  %v5067_v21 = vsel %vm9194_vm7, %v5035_v32, %v8764_v13  ;;  %v5877_v29 = vcombine.low %v6339_v27, %v6338_v1  ;;  %v3926_v19 = vrot.slane %v3925_v47, 4  ;;  %v6341_v2 = vld [vmem:[#allocation2 + $0x84] sm:$0xf] }
 0x311   : > { %v3909_v20 = vshrl.u32 %v3530_v50, 16  ;;  %v3912_v56 = vshll.u32 %v3530_v50, 16  ;;  %v3547_v33 = vld [vmem:[#allocation2 + $0xd4] sm:$0x1]  ;;  %v5979_v10 = vcombine.low %v3530_v50, %v8774_v26  ;;  %v4673_v14 = vpop.permute.xlu0 %4672  ;;  %v5099_v36 = vsel %vm9195_vm9, %v5067_v21, %v8605_v24  ;;  %v9197_v24 = vld [vmem:[#allocation7_spill] sm:$0xff]  ;;  %vm9207_vm9 = vmmov %vm9196_vm5 }
 0x312   : > { %4586 = vrot.lane.b32.xlu1 %v5963_v39, %s6355_s9  ;;  %v3928_v49 = vshll.u32 %v3547_v33, 16  ;;  %v4105_v59 = vrot.slane %v4103_v0, 4  ;;  %6229 = vmatmul.mubr.msk.bf16.gmra.mrb[12].mxu1 %vm1324_vm8, %v5099_v36  ;;  %v5101_v26 = vsel %vm9196_vm5, %v5069_v23, %v8568_v22  ;;  %v4873_v30 = vsel %vm1044_vm0, %v5877_v29, %v4239_v46  ;;  %v4751_v38 = vpop.permute.xlu1 %4750 }
 0x313   : > { %v3911_v7 = vrot.slane %v3909_v20, 4  ;;  %v3914_v51 = vrot.slane %v3912_v56, 5  ;;  %v4106_v35 = vrot.slane %v3547_v33, 5  ;;  %v4876_v8 = vsel %vm1044_vm0, %v5878_v57, %v8732_v18  ;;  %6232 = vmatprep.mubr.msk.bf16.mxu1 %vm1324_vm8, %v5101_v26 }
 0x314   : > { %v3930_v44 = vrot.slane %v3928_v49, 5  ;;  %v4911_v61 = vsel %vm1093_vm1, %v4873_v30, %v8652_v28  ;;  %v4104_v46 = vsel %vm6884_vm15, %v5867_v40, %v4103_v0  ;;  %v4913_v4 = vsel %vm1093_vm1, %v4876_v8, %v8729_v17 }
 0x315   : > { %v3915_v13 = vor.u32 %v3914_v51, %v3911_v7  ;;  %v4943_v12 = vsel %vm1126_vm2, %v4911_v61, %v9197_v24  ;;  %v5882_v58 = vcombine.low %v9198_v34, %v8591_v37  ;;  %v5883_v42 = vcombine.low %v9199_v11, %v8666_v54  ;;  %v6342_v7 = vld [vmem:[#allocation2 + $0x94] sm:$0xf]  ;;  %v9208_v51 = vld [vmem:[#allocation9_spill] sm:$0xff] }
 0x316   : > { %4682 = vrot.lane.b32.xlu1 %v5979_v10, %s6356_s14  ;;  %v3931_v22 = vsel %vm6872_vm11, %v3926_v19, %v3930_v44  ;;  %v4975_v18 = vsel %vm1159_vm3, %v4943_v12, %v8679_v45  ;;  %v4107_v45 = vsel %vm6884_vm15, %v4105_v59, %v4106_v35  ;;  %v4945_v17 = vsel %vm1126_vm2, %v4913_v4, %v8758_v41  ;;  %vm9204_vm15 = vmmov %vm9193_vm6  ;;  %v4243_v39 = vpop.permute.xlu1 %4242  ;;  %s8942_s14 = scalar_lea.vmem %s9085_s5, %s6071_s7  ;;  %v6018_v11 = vld [vmem:[%s6413_s29 + $0x61] sm:$0xff] }
 0x317   : > { %v3916_v31 = vrot.slane %v3915_v13, 4  ;;  %v5007_v28 = vsel %vm1192_vm4, %v4975_v18, %v8633_v9  ;;  %v4753_v55 = vpop.permute.xlu0 %4752  ;;  %v4977_v47 = vsel %vm1159_vm3, %v4945_v17, %v8796_v5  ;;  %v6011_v63 = vcombine.low %v4104_v46, %v4107_v45  ;;  %v9213_v45 = vld [vmem:[#allocation8_spill] sm:$0xff] }
 0x318   : > { %v5039_v9 = vsel %vm9200_vm13, %v5007_v28, %v8707_v25  ;;  %v5009_v15 = vsel %vm1192_vm4, %v4977_v47, %v4577_v52  ;;  %v5879_v57 = vcombine.low %v6341_v2, %v6340_v62  ;;  %v5880_v19 = vcombine.low %v9208_v51, %v6342_v7  ;;  %v6015_v51 = vld [vmem:[%s6413_s29 + $0x39] sm:$0xff] }
 0x319   : > { %v3921_v16 = vsel %vm6872_vm11, %v3916_v31, %v8802_v3  ;;  %v5071_v6 = vsel %vm9201_vm10, %v5039_v9, %v4751_v38  ;;  %vm9203_vm11 = vmmov %vm9200_vm13 }
 0x31a   : > { %v5995_v60 = vcombine.low %v3921_v16, %v3931_v22  ;;  %v5103_v53 = vsel %vm9202_vm12, %v5071_v6, %v8701_v43  ;;  %v5041_v3 = vsel %vm9203_vm11, %v5009_v15, %v4673_v14  ;;  %v4419_v52 = vpop.permute.xlu1 %4418  ;;  %v4879_v20 = vsel %vm1044_vm0, %v5879_v57, %v4243_v39  ;;  %vm9206_vm6 = vmmov %vm9203_vm11  ;;  %v9212_v16 = vld [vmem:[#allocation4_spill] sm:$0xff] }
 0x31b   : > { %6233 = vmatmul.mubr.msk.bf16.gmra.mrb[16].mxu1 %vm1324_vm8, %v5103_v53  ;;  %v5073_v25 = vsel %vm9204_vm15, %v5041_v3, %v4753_v55  ;;  %v4915_v32 = vsel %vm1093_vm1, %v4879_v20, %v8827_v48  ;;  %vm9209_vm5 = vmmov %vm9206_vm6  ;;  %v5881_v17 = vcombine.low %v9213_v45, %v9212_v16 }
 0x31c   : > { %4762 = vrot.lane.b32.xlu1 %v5995_v60, %s6357_s21  ;;  %v4833_v41 = vpop.permute.xlu0 %4832  ;;  %v4947_v23 = vsel %vm1126_vm2, %v4915_v32, %v4419_v52  ;;  %vm9210_vm13 = vmmov %vm9194_vm7 }
 0x31d   : > { %v5105_v5 = vsel %vm9205_vm14, %v5073_v25, %v4833_v41  ;;  %vm9211_vm10 = vmmov %vm9207_vm9 }
 0x31e   : > { %6236 = vmatprep.mubr.msk.bf16.mxu1 %vm1324_vm8, %v5105_v5  ;;  %vm9214_vm12 = vmmov %vm9209_vm5 }
 0x31f   : > { %vm9215_vm11 = vmmov %vm9194_vm7 }
 0x320   : > { %4842 = vrot.lane.b32.xlu1 %v6011_v63, %s6358_s24  ;;  %vm9216_vm15 = vmmov %vm9207_vm9 }
 0x321   : > { %vm9217_vm14 = vmmov %vm9209_vm5 }
 0x325   : > { %v4499_v50 = vpop.permute.xlu1 %4498 }
 0x326   : > { %v4979_v10 = vsel %vm1159_vm3, %v4947_v23, %v4499_v50 }
 0x329   : > { %v4835_v43 = vpop.permute.xlu0 %4834 }
 0x32f   : > { %v4579_v40 = vpop.permute.xlu1 %4578 }
 0x330   : > { %v5011_v49 = vsel %vm1192_vm4, %v4979_v10, %v4579_v40  ;;  %v8929_v10 = vld [vmem:[%s9084_s4] ss:$0 sm:$0xff] }
 0x332   : > { %v4325_v0 = vpop.permute.xlu0 %4324 }
 0x333   : > { %v4675_v56 = vpop.permute.xlu1 %4674 }
 0x334   : > { %v5043_v21 = vsel %vm9206_vm6, %v5011_v49, %v4675_v56  ;;  %vm9218_vm6 = vmmov %vm9194_vm7  ;;  %v6014_v49 = vld [vmem:[%s6413_s29 + $0x31] sm:$0xff] }
 0x336   : > { %v4421_v33 = vpop.permute.xlu0 %4420 }
 0x33b   : > { %v4755_v1 = vpop.permute.xlu1 %4754 }
 0x33c   : > { %v4501_v27 = vpop.permute.xlu0 %4500  ;;  %v5075_v29 = vsel %vm9194_vm7, %v5043_v21, %v4755_v1  ;;  %vm9219_vm7 = vmmov %vm9207_vm9 }
 0x33d   : > { %v5107_v14 = vsel %vm9207_vm9, %v5075_v29, %v4835_v43  ;;  %v6012_v29 = vld [vmem:[%s6413_s29 + $0x19] sm:$0xff]  ;;  %vm9220_vm9 = vmmov %vm9209_vm5 }
 0x33e   : > { %6237 = vmatmul.mubr.msk.bf16.gmra.mrb[20].mxu1 %vm1324_vm8, %v5107_v14 }
 0x340   : > { %v4581_v36 = vpop.permute.xlu0 %4580 }
 0x341   : > { %v4245_v48 = vpop.permute.xlu1 %4244 }
 0x342   : > { %v4882_v44 = vsel %vm1044_vm0, %v5880_v19, %v4245_v48 }
 0x343   : > { %v4917_v59 = vsel %vm1093_vm1, %v4882_v44, %v4325_v0  ;;  %v6013_v44 = vld [vmem:[%s6413_s29 + $0x21] sm:$0xff] }
 0x344   : > { %v4949_v26 = vsel %vm1126_vm2, %v4917_v59, %v4421_v33  ;;  %v4677_v13 = vpop.permute.xlu0 %4676 }
 0x345   : > { %v4981_v35 = vsel %vm1159_vm3, %v4949_v26, %v4501_v27 }
 0x346   : > { %v5013_v61 = vsel %vm1192_vm4, %v4981_v35, %v4581_v36 }
 0x347   : > { %v4247_v30 = vpop.permute.xlu1 %4246  ;;  %v5045_v12 = vsel %vm9209_vm5, %v5013_v61, %v4677_v13  ;;  %vm9221_vm5 = vmmov %vm9218_vm6 }
 0x348   : > { %v4885_v60 = vsel %vm1044_vm0, %v5881_v17, %v4247_v30 }
 0x34b   : > { %v4327_v8 = vpop.permute.xlu1 %4326 }
 0x34c   : > { %v4919_v47 = vsel %vm1093_vm1, %v4885_v60, %v4327_v8  ;;  %v6016_v60 = vld [vmem:[%s6413_s29 + $0x49] sm:$0xff] }
 0x34d   : > { %v4757_v24 = vpop.permute.xlu0 %4756 }
 0x34e   : > { %v5077_v22 = vsel %vm9210_vm13, %v5045_v12, %v4757_v24  ;;  %vm9222_vm13 = vmmov %vm9219_vm7 }
 0x34f   : > { %v4423_v31 = vpop.permute.xlu1 %4422 }
 0x350   : > { %v4951_v15 = vsel %vm1126_vm2, %v4919_v47, %v4423_v31 }
 0x351   : > { %v4837_v46 = vpop.permute.xlu0 %4836 }
 0x352   : > { %v5109_v18 = vsel %vm9211_vm10, %v5077_v22, %v4837_v46 }
 0x353   : > { %6240 = vmatprep.mubr.msk.bf16.mxu1 %vm1324_vm8, %v5109_v18 }
 0x355   : > { %v4839_v4 = vpop.permute.xlu0 %4838 }
 0x356   : > { %v4503_v38 = vpop.permute.xlu1 %4502 }
 0x357   : > { %v4983_v53 = vsel %vm1159_vm3, %v4951_v15, %v4503_v38  ;;  %v6019_v15 = vld [vmem:[%s6413_s29 + $0x69] sm:$0xff] }
 0x35a   : > { %v4583_v28 = vpop.permute.xlu1 %4582 }
 0x35b   : > { %v5015_v63 = vsel %vm1192_vm4, %v4983_v53, %v4583_v28 }
 0x35c   : > { %v4329_v55 = vpop.permute.xlu0 %4328 }
 0x35e   : > { %v4679_v9 = vpop.permute.xlu1 %4678 }
 0x35f   : > { %v5047_v3 = vsel %vm9214_vm12, %v5015_v63, %v4679_v9 }
 0x360   : > { %v4425_v6 = vpop.permute.xlu0 %4424 }
 0x364   : > { %v4759_v25 = vpop.permute.xlu1 %4758 }
 0x365   : > { %v5079_v41 = vsel %vm9215_vm11, %v5047_v3, %v4759_v25  ;;  %v6017_v25 = vld [vmem:[%s6413_s29 + $0x51] sm:$0xff] }
 0x366   : > { %v4505_v39 = vpop.permute.xlu0 %4504  ;;  %v5111_v5 = vsel %vm9216_vm15, %v5079_v41, %v4839_v4 }
 0x367   : > { %6241 = vmatmul.mubr.msk.bf16.gmra.mrb[24].mxu1 %vm1324_vm8, %v5111_v5 }
 0x36a   : > { %v4585_v52 = vpop.permute.xlu0 %4584 }
 0x36b   : > { %v4249_v50 = vpop.permute.xlu1 %4248 }
 0x36c   : > { %v4888_v43 = vsel %vm1044_vm0, %v5882_v58, %v4249_v50 }
 0x36d   : > { %v4921_v40 = vsel %vm1093_vm1, %v4888_v43, %v4329_v55 }
 0x36e   : > { %v4681_v0 = vpop.permute.xlu0 %4680  ;;  %v4953_v62 = vsel %vm1126_vm2, %v4921_v40, %v4425_v6 }
 0x36f   : > { %v4985_v57 = vsel %vm1159_vm3, %v4953_v62, %v4505_v39 }
 0x370   : > { %v5017_v33 = vsel %vm1192_vm4, %v4985_v57, %v4585_v52 }
 0x371   : > { %v4251_v2 = vpop.permute.xlu1 %4250  ;;  %v5049_v37 = vsel %vm9217_vm14, %v5017_v33, %v4681_v0 }
 0x372   : > { %v4891_v46 = vsel %vm1044_vm0, %v5883_v42, %v4251_v2  ;;  %v6022_v2 = vld [vmem:[%s6413_s29 + $0x91] sm:$0xff] }
 0x375   : > { %v4331_v20 = vpop.permute.xlu1 %4330 }
 0x376   : > { %v4761_v56 = vpop.permute.xlu0 %4760  ;;  %v4923_v18 = vsel %vm1093_vm1, %v4891_v46, %v4331_v20 }
 0x377   : > { %v5081_v58 = vsel %vm9218_vm6, %v5049_v37, %v4761_v56  ;;  %v6020_v56 = vld [vmem:[%s6413_s29 + $0x79] sm:$0xff] }
 0x379   : > { %v4427_v34 = vpop.permute.xlu1 %4426 }
 0x37a   : > { %v4955_v38 = vsel %vm1126_vm2, %v4923_v18, %v4427_v34  ;;  %v6023_v34 = vld [vmem:[%s6413_s29 + $0x99] sm:$0xff] }
 0x37b   : > { %v4841_v32 = vpop.permute.xlu0 %4840 }
 0x37c   : > { %v5113_v23 = vsel %vm9219_vm7, %v5081_v58, %v4841_v32 }
 0x37d   : > { %6244 = vmatprep.mubr.msk.bf16.mxu1 %vm1324_vm8, %v5113_v23 }
 0x380   : > { %v6218_v21 = vpop.f32.mrb[0].mxu1  ;;  %v4507_v1 = vpop.permute.xlu1 %4506 }
 0x381   : > { %v5294_v27 = vadd.f32 %v6218_v21, %v8929_v10  ;;  %v5285_v14 = vpop.f32.mrb[1].mxu1  ;;  %v4987_v28 = vsel %vm1159_vm3, %v4955_v38, %v4507_v1 }
 0x382   : > { %v5286_v7 = vadd.f32 %v8929_v10, %v5285_v14  ;;  %v6219_v19 = vpop.f32.mrb[2].mxu1 }
 0x383   : > { %v5414_v48 = vadd.f32 %v6014_v49, %v5294_v27  ;;  %v5297_v36 = vadd.f32 %v6219_v19, %v8929_v10  ;;  %v5288_v59 = vpop.f32.mrb[3].mxu1  ;;  %v6021_v49 = vld [vmem:[%s6413_s29 + $0x81] sm:$0xff] }
 0x384   : > { %v5412_v26 = vadd.f32 %v6012_v29, %v5286_v7  ;;  %v5289_v30 = vadd.f32 %v8929_v10, %v5288_v59  ;;  %v4587_v13 = vpop.permute.xlu1 %4586 }
 0x385   : > { %v5446_v35 = vmax.f32 %v5414_v48, 0.0  ;;  %v5415_v8 = vadd.f32 %v6015_v51, %v5297_v36  ;;  %v5019_v55 = vsel %vm1192_vm4, %v4987_v28, %v4587_v13  ;;  %v6026_v36 = vld [vmem:[%s6413_s29 + $0xc1] sm:$0xff] }
 0x386   : > { %v5444_v61 = vmax.f32 %v5412_v26, 0.0  ;;  %v5413_v24 = vadd.f32 %v6013_v44, %v5289_v30  ;;  %v6024_v26 = vld [vmem:[%s6413_s29 + $0xa9] sm:$0xff] }
 0x387   : > { %5478 = vst.msk [vmem:[%s8942_s14 + $0x10] sm:$0xff] %vm1044_vm0, %v5446_v35  ;;  %v5447_v12 = vmax.f32 %v5415_v8, 0.0  ;;  %v6027_v35 = vld [vmem:[%s6413_s29 + $0xc9] sm:$0xff] }
 0x388   : > { %5476 = vst.msk [vmem:[%s8942_s14] sm:$0xff] %vm1044_vm0, %v5444_v61  ;;  %v5445_v31 = vmax.f32 %v5413_v24, 0.0  ;;  %v4683_v22 = vpop.permute.xlu1 %4682 }
 0x389   : > { %5479 = vst.msk [vmem:[%s8942_s14 + $0x18] sm:$0xff] %vm1044_vm0, %v5447_v12  ;;  %v5051_v16 = vsel %vm9220_vm9, %v5019_v55, %v4683_v22  ;;  %v6025_v12 = vld [vmem:[%s6413_s29 + $0xb1] sm:$0xff] }
 0x38a   : > { %5477 = vst.msk [vmem:[%s8942_s14 + $0x8] sm:$0xff] %vm1044_vm0, %v5445_v31 }
 0x38e   : > { %v4763_v4 = vpop.permute.xlu1 %4762 }
 0x38f   : > { %v5083_v45 = vsel %vm9221_vm5, %v5051_v16, %v4763_v4 }
 0x392   : > { %v4843_v17 = vpop.permute.xlu1 %4842 }
 0x393   : > { %v5115_v54 = vsel %vm9222_vm13, %v5083_v45, %v4843_v17  ;;  %v6030_v45 = vld [vmem:[%s6413_s29 + $0xf1] sm:$0xff] }
 0x394   : > { %6245 = vmatmul.mubr.msk.bf16.gmra.mrb[28].mxu1 %vm1324_vm8, %v5115_v54 }
 0x3b2   : > { %v6222_v42 = vpop.f32.mrb[4].mxu1 }
 0x3b3   : > { %v5310_v9 = vadd.f32 %v6222_v42, %v8929_v10  ;;  %v5301_v47 = vpop.f32.mrb[5].mxu1 }
 0x3b4   : > { %v5302_v6 = vadd.f32 %v8929_v10, %v5301_v47  ;;  %v6223_v53 = vpop.f32.mrb[6].mxu1 }
 0x3b5   : > { %v5418_v63 = vadd.f32 %v6018_v11, %v5310_v9  ;;  %v5313_v3 = vadd.f32 %v6223_v53, %v8929_v10  ;;  %v5304_v41 = vpop.f32.mrb[7].mxu1  ;;  %v6028_v11 = vld [vmem:[%s6413_s29 + $0xd9] sm:$0xff]  ;;  %v6029_v53 = vld [vmem:[%s6413_s29 + $0xe1] sm:$0xff] }
 0x3b6   : > { %v5416_v39 = vadd.f32 %v6016_v60, %v5302_v6  ;;  %v5305_v5 = vadd.f32 %v8929_v10, %v5304_v41  ;;  %v6031_v60 = vld [vmem:[%s6413_s29 + $0xf9] sm:$0xff] }
 0x3b7   : > { %v5450_v52 = vmax.f32 %v5418_v63, 0.0  ;;  %v5419_v50 = vadd.f32 %v6019_v15, %v5313_v3 }
 0x3b8   : > { %v5448_v43 = vmax.f32 %v5416_v39, 0.0  ;;  %v5417_v40 = vadd.f32 %v6017_v25, %v5305_v5 }
 0x3b9   : > { %5482 = vst.msk [vmem:[%s8942_s14 + $0x30] sm:$0xff] %vm1044_vm0, %v5450_v52  ;;  %v5451_v0 = vmax.f32 %v5419_v50, 0.0 }
 0x3ba   : > { %5480 = vst.msk [vmem:[%s8942_s14 + $0x20] sm:$0xff] %vm1044_vm0, %v5448_v43  ;;  %v5449_v62 = vmax.f32 %v5417_v40, 0.0  ;;  %v6034_v40 = vld [vmem:[%s6413_s29 + $0x121] sm:$0xff] }
 0x3bb   : > { %5483 = vst.msk [vmem:[%s8942_s14 + $0x38] sm:$0xff] %vm1044_vm0, %v5451_v0 }
 0x3bc   : > { %5481 = vst.msk [vmem:[%s8942_s14 + $0x28] sm:$0xff] %vm1044_vm0, %v5449_v62 }
 0x3da   : > { %v6226_v57 = vpop.f32.mrb[8].mxu1 }
 0x3db   : > { %v5326_v20 = vadd.f32 %v6226_v57, %v8929_v10  ;;  %v5317_v33 = vpop.f32.mrb[9].mxu1 }
 0x3dc   : > { %v5318_v37 = vadd.f32 %v8929_v10, %v5317_v33  ;;  %v6227_v58 = vpop.f32.mrb[10].mxu1 }
 0x3dd   : > { %v5422_v32 = vadd.f32 %v6022_v2, %v5326_v20  ;;  %v5329_v23 = vadd.f32 %v6227_v58, %v8929_v10  ;;  %v5320_v21 = vpop.f32.mrb[11].mxu1  ;;  %v6032_v2 = vld [vmem:[%s6413_s29 + $0x109] sm:$0xff]  ;;  %v6033_v58 = vld [vmem:[%s6413_s29 + $0x111] sm:$0xff] }
 0x3de   : > { %v5420_v1 = vadd.f32 %v6020_v56, %v5318_v37  ;;  %v5321_v27 = vadd.f32 %v8929_v10, %v5320_v21  ;;  %v6035_v56 = vld [vmem:[%s6413_s29 + $0x129] sm:$0xff] }
 0x3df   : > { %v5454_v29 = vmax.f32 %v5422_v32, 0.0  ;;  %v5423_v14 = vadd.f32 %v6023_v34, %v5329_v23 }
 0x3e0   : > { %v5452_v7 = vmax.f32 %v5420_v1, 0.0  ;;  %v5421_v51 = vadd.f32 %v6021_v49, %v5321_v27 }
 0x3e1   : > { %5486 = vst.msk [vmem:[%s8942_s14 + $0x50] sm:$0xff] %vm1044_vm0, %v5454_v29  ;;  %v5455_v19 = vmax.f32 %v5423_v14, 0.0 }
 0x3e2   : > { %5484 = vst.msk [vmem:[%s8942_s14 + $0x40] sm:$0xff] %vm1044_vm0, %v5452_v7  ;;  %v5453_v48 = vmax.f32 %v5421_v51, 0.0  ;;  %v6038_v51 = vld [vmem:[%s6413_s29 + $0x151] sm:$0xff] }
 0x3e3   : > { %5487 = vst.msk [vmem:[%s8942_s14 + $0x58] sm:$0xff] %vm1044_vm0, %v5455_v19 }
 0x3e4   : > { %5485 = vst.msk [vmem:[%s8942_s14 + $0x48] sm:$0xff] %vm1044_vm0, %v5453_v48 }
 0x3e5   : > { %v6230_v44 = vpop.f32.mrb[12].mxu1 }
 0x3e6   : > { %v5342_v59 = vadd.f32 %v6230_v44, %v8929_v10  ;;  %v5333_v30 = vpop.f32.mrb[13].mxu1 }
 0x3e7   : > { %v5334_v13 = vadd.f32 %v8929_v10, %v5333_v30  ;;  %v6231_v8 = vpop.f32.mrb[14].mxu1 }
 0x3e8   : > { %v5426_v61 = vadd.f32 %v6026_v36, %v5342_v59  ;;  %v5345_v24 = vadd.f32 %v6231_v8, %v8929_v10  ;;  %v5336_v31 = vpop.f32.mrb[15].mxu1  ;;  %v6036_v36 = vld [vmem:[%s6413_s29 + $0x139] sm:$0xff]  ;;  %v6037_v8 = vld [vmem:[%s6413_s29 + $0x141] sm:$0xff] }
 0x3e9   : > { %v5424_v22 = vadd.f32 %v6024_v26, %v5334_v13  ;;  %v5337_v46 = vadd.f32 %v8929_v10, %v5336_v31  ;;  %v6039_v26 = vld [vmem:[%s6413_s29 + $0x159] sm:$0xff] }
 0x3ea   : > { %v5458_v18 = vmax.f32 %v5426_v61, 0.0  ;;  %v5427_v38 = vadd.f32 %v6027_v35, %v5345_v24 }
 0x3eb   : > { %v5456_v4 = vmax.f32 %v5424_v22, 0.0  ;;  %v5425_v28 = vadd.f32 %v6025_v12, %v5337_v46 }
 0x3ec   : > { %5490 = vst.msk [vmem:[%s8942_s14 + $0x70] sm:$0xff] %vm1044_vm0, %v5458_v18  ;;  %v5459_v55 = vmax.f32 %v5427_v38, 0.0 }
 0x3ed   : > { %5488 = vst.msk [vmem:[%s8942_s14 + $0x60] sm:$0xff] %vm1044_vm0, %v5456_v4  ;;  %v5457_v16 = vmax.f32 %v5425_v28, 0.0  ;;  %v6042_v28 = vld [vmem:[%s6413_s29 + $0x181] sm:$0xff] }
 0x3ee   : > { %v6234_v17 = vpop.f32.mrb[16].mxu1  ;;  %5491 = vst.msk [vmem:[%s8942_s14 + $0x78] sm:$0xff] %vm1044_vm0, %v5459_v55 }
 0x3ef   : > { %v5358_v54 = vadd.f32 %v6234_v17, %v8929_v10  ;;  %v5349_v42 = vpop.f32.mrb[17].mxu1  ;;  %5489 = vst.msk [vmem:[%s8942_s14 + $0x68] sm:$0xff] %vm1044_vm0, %v5457_v16 }
 0x3f0   : > { %v5350_v9 = vadd.f32 %v8929_v10, %v5349_v42  ;;  %v6235_v47 = vpop.f32.mrb[18].mxu1 }
 0x3f1   : > { %v5430_v6 = vadd.f32 %v6030_v45, %v5358_v54  ;;  %v5361_v15 = vadd.f32 %v6235_v47, %v8929_v10  ;;  %v5352_v63 = vpop.f32.mrb[19].mxu1  ;;  %v6040_v45 = vld [vmem:[%s6413_s29 + $0x169] sm:$0xff]  ;;  %v6041_v47 = vld [vmem:[%s6413_s29 + $0x171] sm:$0xff] }
 0x3f2   : > { %v5428_v3 = vadd.f32 %v6028_v11, %v5350_v9  ;;  %v5353_v25 = vadd.f32 %v8929_v10, %v5352_v63  ;;  %v6043_v11 = vld [vmem:[%s6413_s29 + $0x189] sm:$0xff] }
 0x3f3   : > { %v5462_v41 = vmax.f32 %v5430_v6, 0.0  ;;  %v5431_v39 = vadd.f32 %v6031_v60, %v5361_v15 }
 0x3f4   : > { %v5460_v5 = vmax.f32 %v5428_v3, 0.0  ;;  %v5429_v52 = vadd.f32 %v6029_v53, %v5353_v25 }
 0x3f5   : > { %5494 = vst.msk [vmem:[%s8942_s14 + $0x90] sm:$0xff] %vm1044_vm0, %v5462_v41  ;;  %v5463_v50 = vmax.f32 %v5431_v39, 0.0 }
 0x3f6   : > { %5492 = vst.msk [vmem:[%s8942_s14 + $0x80] sm:$0xff] %vm1044_vm0, %v5460_v5  ;;  %v5461_v43 = vmax.f32 %v5429_v52, 0.0 }
 0x3f7   : > { %5495 = vst.msk [vmem:[%s8942_s14 + $0x98] sm:$0xff] %vm1044_vm0, %v5463_v50 }
 0x3f8   : > { %5493 = vst.msk [vmem:[%s8942_s14 + $0x88] sm:$0xff] %vm1044_vm0, %v5461_v43 }
 0x411   : > { %v6238_v0 = vpop.f32.mrb[20].mxu1 }
 0x412   : > { %v5374_v62 = vadd.f32 %v6238_v0, %v8929_v10  ;;  %v5365_v57 = vpop.f32.mrb[21].mxu1 }
 0x413   : > { %v5366_v20 = vadd.f32 %v8929_v10, %v5365_v57  ;;  %v6239_v33 = vpop.f32.mrb[22].mxu1 }
 0x414   : > { %v5434_v37 = vadd.f32 %v6034_v40, %v5374_v62  ;;  %v5377_v34 = vadd.f32 %v6239_v33, %v8929_v10  ;;  %v5368_v32 = vpop.f32.mrb[23].mxu1 }
 0x415   : > { %v5432_v23 = vadd.f32 %v6032_v2, %v5366_v20  ;;  %v5369_v49 = vadd.f32 %v8929_v10, %v5368_v32 }
 0x416   : > { %v5466_v21 = vmax.f32 %v5434_v37, 0.0  ;;  %v5435_v1 = vadd.f32 %v6035_v56, %v5377_v34 }
 0x417   : > { %v5464_v27 = vmax.f32 %v5432_v23, 0.0  ;;  %v5433_v29 = vadd.f32 %v6033_v58, %v5369_v49 }
 0x418   : > { %5498 = vst.msk [vmem:[%s8942_s14 + $0xb0] sm:$0xff] %vm1044_vm0, %v5466_v21  ;;  %v5467_v14 = vmax.f32 %v5435_v1, 0.0 }
 0x419   : > { %5496 = vst.msk [vmem:[%s8942_s14 + $0xa0] sm:$0xff] %vm1044_vm0, %v5464_v27  ;;  %v5465_v7 = vmax.f32 %v5433_v29, 0.0 }
 0x41a   : > { %5499 = vst.msk [vmem:[%s8942_s14 + $0xb8] sm:$0xff] %vm1044_vm0, %v5467_v14 }
 0x41b   : > { %5497 = vst.msk [vmem:[%s8942_s14 + $0xa8] sm:$0xff] %vm1044_vm0, %v5465_v7 }
 0x43a   : > { %v6242_v19 = vpop.f32.mrb[24].mxu1 }
 0x43b   : > { %v5390_v48 = vadd.f32 %v6242_v19, %v8929_v10  ;;  %v5381_v44 = vpop.f32.mrb[25].mxu1 }
 0x43c   : > { %v5382_v59 = vadd.f32 %v8929_v10, %v5381_v44  ;;  %v6243_v30 = vpop.f32.mrb[26].mxu1 }
 0x43d   : > { %v5438_v13 = vadd.f32 %v6038_v51, %v5390_v48  ;;  %v5393_v35 = vadd.f32 %v6243_v30, %v8929_v10  ;;  %v5384_v61 = vpop.f32.mrb[27].mxu1 }
 0x43e   : > { %v5436_v24 = vadd.f32 %v6036_v36, %v5382_v59  ;;  %v5385_v12 = vadd.f32 %v8929_v10, %v5384_v61 }
 0x43f   : > { %v5470_v31 = vmax.f32 %v5438_v13, 0.0  ;;  %v5439_v22 = vadd.f32 %v6039_v26, %v5393_v35 }
 0x440   : > { %v5468_v46 = vmax.f32 %v5436_v24, 0.0  ;;  %v5437_v18 = vadd.f32 %v6037_v8, %v5385_v12 }
 0x441   : > { %5502 = vst.msk [vmem:[%s8942_s14 + $0xd0] sm:$0xff] %vm1044_vm0, %v5470_v31  ;;  %v5471_v38 = vmax.f32 %v5439_v22, 0.0 }
 0x442   : > { %5500 = vst.msk [vmem:[%s8942_s14 + $0xc0] sm:$0xff] %vm1044_vm0, %v5468_v46  ;;  %v5469_v4 = vmax.f32 %v5437_v18, 0.0 }
 0x443   : > { %5503 = vst.msk [vmem:[%s8942_s14 + $0xd8] sm:$0xff] %vm1044_vm0, %v5471_v38 }
 0x444   : > { %5501 = vst.msk [vmem:[%s8942_s14 + $0xc8] sm:$0xff] %vm1044_vm0, %v5469_v4 }
 0x467   : > { %v6246_v55 = vpop.f32.mrb[28].mxu1 }
 0x468   : > { %v5406_v16 = vadd.f32 %v6246_v55, %v8929_v10  ;;  %v5397_v17 = vpop.f32.mrb[29].mxu1 }
 0x469   : > { %v5398_v54 = vadd.f32 %v8929_v10, %v5397_v17  ;;  %v6247_v42 = vpop.f32.mrb[30].mxu1 }
 0x46a   : > { %v5442_v9 = vadd.f32 %v6042_v28, %v5406_v16  ;;  %v5409_v60 = vadd.f32 %v6247_v42, %v8929_v10  ;;  %v5400_v6 = vpop.f32.mrb[31].mxu1 }
 0x46b   : > { %v5440_v15 = vadd.f32 %v6040_v45, %v5398_v54  ;;  %v5401_v53 = vadd.f32 %v8929_v10, %v5400_v6 }
 0x46c   : > { %v5474_v63 = vmax.f32 %v5442_v9, 0.0  ;;  %v5443_v3 = vadd.f32 %v6043_v11, %v5409_v60 }
 0x46d   : > { %v5472_v25 = vmax.f32 %v5440_v15, 0.0  ;;  %v5441_v41 = vadd.f32 %v6041_v47, %v5401_v53 }
 0x46e   : > { %5506 = vst.msk [vmem:[%s8942_s14 + $0xf0] sm:$0xff] %vm1044_vm0, %v5474_v63  ;;  %v5475_v39 = vmax.f32 %v5443_v3, 0.0 }
 0x46f   : > { %5504 = vst.msk [vmem:[%s8942_s14 + $0xe0] sm:$0xff] %vm1044_vm0, %v5472_v25  ;;  %v5473_v5 = vmax.f32 %v5441_v41, 0.0 }
 0x470   : > { %5507 = vst.msk [vmem:[%s8942_s14 + $0xf8] sm:$0xff] %vm1044_vm0, %v5475_v39 }
 0x471   : > { %5505 = vst.msk [vmem:[%s8942_s14 + $0xe8] sm:$0xff] %vm1044_vm0, %v5473_v5 }
 0x472 PF: > { %s15_s18 = sadd.s32 1, %s6349_s18  }
 0x473   : > { %p12_p4 = scmp.ge.s32.totalorder %s15_s18, 4  }
 0x475   :  { %14 = sbr.rel (!%p12_p4) target bundleno = 1 (0x1), region = 75 }

</bundles_post_ra>
